<compile_context>
chip_gen: v7x
topology: tpu7x:2x2x1
jax: 0.10.0
libtpu: 0.0.40
codegen_flags: <defaults>
</compile_context>

<pallas_src>
import math
import numpy as np
import jax
import jax.numpy as jnp
from jax.experimental import pallas as pl
from jax.experimental.pallas import tpu as pltpu

IN_PAD = 8                        # stem input channels padded 3 -> 8 (sublane align)
VMEM_LIMIT = 32 * 1024 * 1024     # fits scoped VMEM on v5e/v6e/v7x


def _sigmoid(z):
    return 1.0 / (1.0 + jnp.exp(-z))


# ---------------------------------------------------------------------------
# Fused kernel (whole SCM forward for one image, (C, N) lane-dense layout)
# ---------------------------------------------------------------------------

def make_scm_kernel(img_w):
    def kernel(*refs):
        f32, bf16 = jnp.float32, jnp.bfloat16
        mask_ref, x_ref = refs[0], refs[1]
        out_ref = refs[-1]
        prm = refs[2:-1]
        cur = [0]

        def take(n):
            r = prm[cur[0]:cur[0] + n]
            cur[0] += n
            return r

        mask = mask_ref[...]                                  # (9, N) f32
        n_pix = mask.shape[1]

        def conv3x3(xc, w_ref, b_ref):
            """(Cout, N) = W (Cout, 9*Cin) @ masked, lane-shifted taps (9*Cin, N)."""
            taps = []
            k = 0
            for dy in (-1, 0, 1):
                for dx in (-1, 0, 1):
                    s = dy * img_w + dx
                    sh = xc if s == 0 else pltpu.roll(xc, (-s) % n_pix, axis=1)
                    taps.append(sh * mask[k:k + 1, :])        # border mask kills wrap
                    k += 1
            t = jnp.concatenate(taps, axis=0).astype(bf16)    # (9*Cin, N)
            return jnp.dot(w_ref[...], t, preferred_element_type=f32) + b_ref[...]

        def conv1x1(xc, w_ref, b_ref):
            return (jnp.dot(w_ref[...], xc.astype(bf16),
                            preferred_element_type=f32) + b_ref[...])

        def ca_layer(r, w1t_ref, b1_ref, w2_ref, b2_ref):
            # global avg pool -> 1x1 -> relu -> 1x1 -> sigmoid -> scale (all VPU/XLU)
            m = jnp.mean(r, axis=1, keepdims=True)                            # (C, 1)
            h = jnp.sum(w1t_ref[...] * m, axis=0, keepdims=True) + b1_ref[...]
            h = jnp.maximum(h, 0.0)                                           # (1, C//8)
            z = jnp.sum(w2_ref[...] * h, axis=1, keepdims=True) + b2_ref[...]  # (C, 1)
            return r * _sigmoid(z)

        def pa_layer(r, w1t_ref, b1_ref, w2_ref, b2_ref):
            # per-pixel attention: 1x1 -> relu -> (C//8 -> 1) -> sigmoid -> scale
            w1 = w1t_ref[...]            # (C, C//8)
            b1 = b1_ref[...]             # (C//8, 1)
            w2 = w2_ref[...]             # (C//8, 1)
            z = jnp.zeros((1, n_pix), f32) + b2_ref[...]
            for j in range(w1.shape[1]):                      # C//8 <= 2, static loop
                hj = (jnp.sum(r * w1[:, j:j + 1], axis=0, keepdims=True)
                      + b1[j:j + 1, :])
                z = z + w2[j:j + 1, :] * jnp.maximum(hj, 0.0)
            return r * _sigmoid(z)

        def group(gin, p):
            (wc1, bc1, wc2, bc2, caw1, cab1, caw2, cab2,
             paw1, pab1, paw2, pab2, wt, bt) = p
            r = jnp.maximum(conv3x3(gin, wc1, bc1), 0.0) + gin   # Block: relu(conv1)+x
            r = conv3x3(r, wc2, bc2)
            r = ca_layer(r, caw1, cab1, caw2, cab2)
            r = pa_layer(r, paw1, pab1, paw2, pab2)
            r = r + gin                                          # Block residual
            return conv3x3(r, wt, bt) + gin                      # tail conv + Group res

        x = x_ref[0].astype(f32)                                 # (IN_PAD, N)

        w_sc1, b_sc1 = take(2)
        g1 = take(14)
        w_sc3, b_sc3 = take(2)
        g2 = take(14)
        w_sc5, b_sc5, wf_x, wf_u, b_f = take(5)

        t = jnp.maximum(conv3x3(x, w_sc1, b_sc1), 0.0)   # BasicConv 3->p4, 3x3, relu
        t = group(t, g1)                                 # Group1
        t = jnp.maximum(conv1x1(t, w_sc3, b_sc3), 0.0)   # BasicConv p4->p2, 1x1, relu
        t = group(t, g2)                                 # Group2
        u = jnp.maximum(conv1x1(t, w_sc5, b_sc5), 0.0)   # BasicConv p2->out-3, 1x1, relu

        # final 1x1 conv over cat([x, u], channel): concat fused as two matmuls
        out = (jnp.dot(wf_x[...], x.astype(bf16), preferred_element_type=f32)
               + jnp.dot(wf_u[...], u.astype(bf16), preferred_element_type=f32)
               + b_f[...])
        out_ref[0] = out.astype(out_ref.dtype)

    return kernel


# ---------------------------------------------------------------------------
# pallas_call wrapper
# ---------------------------------------------------------------------------

def _bcast_spec(a):
    nd = a.ndim
    return pl.BlockSpec(a.shape, lambda i, _nd=nd: (0,) * _nd)


def flatten_params(P):
    return (list(P["sc1"]) + list(P["g1"]) + list(P["sc3"])
            + list(P["g2"]) + list(P["sc5"]) + list(P["final"]))


def scm_forward(x_nchw, params, H, W):
    B, cx, _, _ = x_nchw.shape
    N = H * W
    out_plane = params["final"][2].shape[0]

    x = x_nchw.reshape(B, cx, N)                               # free NCHW reshape
    x = jnp.pad(x, ((0, 0), (0, IN_PAD - cx), (0, 0)))         # pad channels 3 -> 8
    mask = make_tap_mask(H, W)                                 # (9, N) f32

    inputs = [mask, x] + flatten_params(params)
    in_specs = ([pl.BlockSpec((9, N), lambda i: (0, 0)),
                 pl.BlockSpec((1, IN_PAD, N), lambda i: (i, 0, 0))]
                + [_bcast_spec(a) for a in inputs[2:]])

    out = pl.pallas_call(
        make_scm_kernel(W),
        out_shape=jax.ShapeDtypeStruct((B, out_plane, N), jnp.float32),
        grid=(B,),
        in_specs=in_specs,
        out_specs=pl.BlockSpec((1, out_plane, N), lambda i: (i, 0, 0)),
        compiler_params=pltpu.CompilerParams(
            dimension_semantics=("parallel",),
            vmem_limit_bytes=VMEM_LIMIT),
    )(*inputs)
    return out.reshape(B, out_plane, H, W)                     # free reshape back


# ---------------------------------------------------------------------------
# Host-side constants / synthetic parameters (pre-shaped for the kernel)
# ---------------------------------------------------------------------------

def make_tap_mask(H, W):
    """(9, H*W) f32; row k = validity of tap (dy, dx) at each flat position."""
    n = np.arange(H * W)
    h, w = n // W, n % W
    rows = []
    for dy in (-1, 0, 1):
        for dx in (-1, 0, 1):
            valid = (h + dy >= 0) & (h + dy < H) & (w + dx >= 0) & (w + dx < W)
            rows.append(valid.astype(np.float32))
    return jnp.asarray(np.stack(rows, axis=0))


def conv3_params(key, cin, cout, cin_pad=None):
    """3x3 conv as (cout, 9*cin_pad) bf16, tap-major column blocks; bias (cout, 1)."""
    cin_pad = cin if cin_pad is None else cin_pad
    kw, kb = jax.random.split(key)
    w = jax.random.normal(kw, (cout, cin, 3, 3), jnp.float32) / math.sqrt(9 * cin)
    w = jnp.transpose(w, (0, 2, 3, 1))                     # (cout, kh, kw, cin)
    if cin_pad != cin:
        w = jnp.pad(w, ((0, 0), (0, 0), (0, 0), (0, cin_pad - cin)))
    w2d = w.reshape(cout, 9 * cin_pad).astype(jnp.bfloat16)
    b = 0.01 * jax.random.normal(kb, (cout, 1), jnp.float32)
    return w2d, b


def conv1_params(key, cin, cout):
    kw, kb = jax.random.split(key)
    w = (jax.random.normal(kw, (cout, cin), jnp.float32) / math.sqrt(cin)).astype(jnp.bfloat16)
    b = 0.01 * jax.random.normal(kb, (cout, 1), jnp.float32)
    return w, b


def group_params(key, d):
    c8 = d // 8
    ks = jax.random.split(key, 7)
    wc1, bc1 = conv3_params(ks[0], d, d)
    wc2, bc2 = conv3_params(ks[1], d, d)

    k1, k2 = jax.random.split(ks[2])
    ca_w1 = jax.random.normal(k1, (c8, d), jnp.float32) / math.sqrt(d)
    ca_b1 = 0.01 * jax.random.normal(k2, (1, c8), jnp.float32)
    k3, k4 = jax.random.split(ks[3])
    ca_w2 = jax.random.normal(k3, (d, c8), jnp.float32) / math.sqrt(c8)
    ca_b2 = 0.01 * jax.random.normal(k4, (d, 1), jnp.float32)

    k5, k6 = jax.random.split(ks[4])
    pa_w1 = jax.random.normal(k5, (c8, d), jnp.float32) / math.sqrt(d)
    pa_b1 = 0.01 * jax.random.normal(k6, (c8, 1), jnp.float32)
    k7, k8 = jax.random.split(ks[5])
    pa_w2 = jax.random.normal(k7, (c8, 1), jnp.float32) / math.sqrt(c8)
    pa_b2 = 0.01 * jax.random.normal(k8, (1, 1), jnp.float32)

    wt, bt = conv3_params(ks[6], d, d)
    # CA / PA first-layer weights stored transposed: (d, c8) = W1.T
    return (wc1, bc1, wc2, bc2,
            ca_w1.T, ca_b1, ca_w2, ca_b2,
            pa_w1.T, pa_b1, pa_w2, pa_b2,
            wt, bt)


def init_params(key, out_plane):
    p4, p2 = out_plane // 4, out_plane // 2
    ks = jax.random.split(key, 6)
    kfw, kfb = jax.random.split(ks[5])
    wf = jax.random.normal(kfw, (out_plane, out_plane), jnp.float32) / math.sqrt(out_plane)
    bf = 0.01 * jax.random.normal(kfb, (out_plane, 1), jnp.float32)
    # final 1x1 conv over cat([x, main(x)]): columns split so the concat fuses;
    # the x-part is zero-padded to IN_PAD channels to match the padded input.
    wf_x = jnp.pad(wf[:, :3], ((0, 0), (0, IN_PAD - 3))).astype(jnp.bfloat16)
    wf_u = wf[:, 3:].astype(jnp.bfloat16)
    return {
        "sc1": conv3_params(ks[0], 3, p4, cin_pad=IN_PAD),
        "g1": group_params(ks[1], p4),
        "sc3": conv1_params(ks[2], p4, p2),
        "g2": group_params(ks[3], p2),
        "sc5": conv1_params(ks[4], p2, out_plane - 3),
        "final": (wf_x, wf_u, bf),
    }


# ---------------------------------------------------------------------------

if __name__ == "__main__":
    out_plane = 32
    B, H, W = 2, 16, 16

    key = jax.random.PRNGKey(0)
    k_in, k_par = jax.random.split(key)
    x = jax.random.normal(k_in, (B, 3, H, W), jnp.float32)   # NCHW, like PyTorch
    params = init_params(k_par, out_plane)

    fwd = jax.jit(lambda inp: scm_forward(inp, params, H, W))
    y = fwd(x)
    jax.block_until_ready(y)

    assert y.shape == (B, out_plane, H, W), y.shape
    assert bool(jnp.all(jnp.isfinite(y)))
    print("KERNEL_OK")
</pallas_src>

<mosaic_0001>
module attributes {stable_mosaic.version = 11 : i64} {
  func.func @kernel(%arg0: i32, %arg1: memref<9x256xf32, #tpu.memory_space<vmem>>, %arg2: memref<1x8x256xf32, #tpu.memory_space<vmem>>, %arg3: memref<8x72xbf16, #tpu.memory_space<vmem>>, %arg4: memref<8x1xf32, #tpu.memory_space<vmem>>, %arg5: memref<8x72xbf16, #tpu.memory_space<vmem>>, %arg6: memref<8x1xf32, #tpu.memory_space<vmem>>, %arg7: memref<8x72xbf16, #tpu.memory_space<vmem>>, %arg8: memref<8x1xf32, #tpu.memory_space<vmem>>, %arg9: memref<8x1xf32, #tpu.memory_space<vmem>>, %arg10: memref<1x1xf32, #tpu.memory_space<vmem>>, %arg11: memref<8x1xf32, #tpu.memory_space<vmem>>, %arg12: memref<8x1xf32, #tpu.memory_space<vmem>>, %arg13: memref<8x1xf32, #tpu.memory_space<vmem>>, %arg14: memref<1x1xf32, #tpu.memory_space<vmem>>, %arg15: memref<1x1xf32, #tpu.memory_space<vmem>>, %arg16: memref<1x1xf32, #tpu.memory_space<vmem>>, %arg17: memref<8x72xbf16, #tpu.memory_space<vmem>>, %arg18: memref<8x1xf32, #tpu.memory_space<vmem>>, %arg19: memref<16x8xbf16, #tpu.memory_space<vmem>>, %arg20: memref<16x1xf32, #tpu.memory_space<vmem>>, %arg21: memref<16x144xbf16, #tpu.memory_space<vmem>>, %arg22: memref<16x1xf32, #tpu.memory_space<vmem>>, %arg23: memref<16x144xbf16, #tpu.memory_space<vmem>>, %arg24: memref<16x1xf32, #tpu.memory_space<vmem>>, %arg25: memref<16x2xf32, #tpu.memory_space<vmem>>, %arg26: memref<1x2xf32, #tpu.memory_space<vmem>>, %arg27: memref<16x2xf32, #tpu.memory_space<vmem>>, %arg28: memref<16x1xf32, #tpu.memory_space<vmem>>, %arg29: memref<16x2xf32, #tpu.memory_space<vmem>>, %arg30: memref<2x1xf32, #tpu.memory_space<vmem>>, %arg31: memref<2x1xf32, #tpu.memory_space<vmem>>, %arg32: memref<1x1xf32, #tpu.memory_space<vmem>>, %arg33: memref<16x144xbf16, #tpu.memory_space<vmem>>, %arg34: memref<16x1xf32, #tpu.memory_space<vmem>>, %arg35: memref<29x16xbf16, #tpu.memory_space<vmem>>, %arg36: memref<29x1xf32, #tpu.memory_space<vmem>>, %arg37: memref<32x8xbf16, #tpu.memory_space<vmem>>, %arg38: memref<32x29xbf16, #tpu.memory_space<vmem>>, %arg39: memref<32x1xf32, #tpu.memory_space<vmem>>, %arg40: memref<1x32x256xf32, #tpu.memory_space<vmem>>) attributes {dimension_semantics = [#tpu.dimension_semantics<parallel>], iteration_bounds = array<i64: 2>, scalar_prefetch = 0 : i64, scratch_operands = 0 : i64, tpu.core_type = #tpu.core_type<tc>, window_params = [{pipeline_mode = #tpu.pipeline_mode<synchronous>, transform_indices = @transform_0, window_bounds = array<i64: 9, 256>}, {transform_indices = @transform_1, window_bounds = array<i64: 1, 8, 256>}, {pipeline_mode = #tpu.pipeline_mode<synchronous>, transform_indices = @transform_2, window_bounds = array<i64: 8, 72>}, {pipeline_mode = #tpu.pipeline_mode<synchronous>, transform_indices = @transform_3, window_bounds = array<i64: 8, 1>}, {pipeline_mode = #tpu.pipeline_mode<synchronous>, transform_indices = @transform_4, window_bounds = array<i64: 8, 72>}, {pipeline_mode = #tpu.pipeline_mode<synchronous>, transform_indices = @transform_5, window_bounds = array<i64: 8, 1>}, {pipeline_mode = #tpu.pipeline_mode<synchronous>, transform_indices = @transform_6, window_bounds = array<i64: 8, 72>}, {pipeline_mode = #tpu.pipeline_mode<synchronous>, transform_indices = @transform_7, window_bounds = array<i64: 8, 1>}, {pipeline_mode = #tpu.pipeline_mode<synchronous>, transform_indices = @transform_8, window_bounds = array<i64: 8, 1>}, {pipeline_mode = #tpu.pipeline_mode<synchronous>, transform_indices = @transform_9, window_bounds = array<i64: 1, 1>}, {pipeline_mode = #tpu.pipeline_mode<synchronous>, transform_indices = @transform_10, window_bounds = array<i64: 8, 1>}, {pipeline_mode = #tpu.pipeline_mode<synchronous>, transform_indices = @transform_11, window_bounds = array<i64: 8, 1>}, {pipeline_mode = #tpu.pipeline_mode<synchronous>, transform_indices = @transform_12, window_bounds = array<i64: 8, 1>}, {pipeline_mode = #tpu.pipeline_mode<synchronous>, transform_indices = @transform_13, window_bounds = array<i64: 1, 1>}, {pipeline_mode = #tpu.pipeline_mode<synchronous>, transform_indices = @transform_14, window_bounds = array<i64: 1, 1>}, {pipeline_mode = #tpu.pipeline_mode<synchronous>, transform_indices = @transform_15, window_bounds = array<i64: 1, 1>}, {pipeline_mode = #tpu.pipeline_mode<synchronous>, transform_indices = @transform_16, window_bounds = array<i64: 8, 72>}, {pipeline_mode = #tpu.pipeline_mode<synchronous>, transform_indices = @transform_17, window_bounds = array<i64: 8, 1>}, {pipeline_mode = #tpu.pipeline_mode<synchronous>, transform_indices = @transform_18, window_bounds = array<i64: 16, 8>}, {pipeline_mode = #tpu.pipeline_mode<synchronous>, transform_indices = @transform_19, window_bounds = array<i64: 16, 1>}, {pipeline_mode = #tpu.pipeline_mode<synchronous>, transform_indices = @transform_20, window_bounds = array<i64: 16, 144>}, {pipeline_mode = #tpu.pipeline_mode<synchronous>, transform_indices = @transform_21, window_bounds = array<i64: 16, 1>}, {pipeline_mode = #tpu.pipeline_mode<synchronous>, transform_indices = @transform_22, window_bounds = array<i64: 16, 144>}, {pipeline_mode = #tpu.pipeline_mode<synchronous>, transform_indices = @transform_23, window_bounds = array<i64: 16, 1>}, {pipeline_mode = #tpu.pipeline_mode<synchronous>, transform_indices = @transform_24, window_bounds = array<i64: 16, 2>}, {pipeline_mode = #tpu.pipeline_mode<synchronous>, transform_indices = @transform_25, window_bounds = array<i64: 1, 2>}, {pipeline_mode = #tpu.pipeline_mode<synchronous>, transform_indices = @transform_26, window_bounds = array<i64: 16, 2>}, {pipeline_mode = #tpu.pipeline_mode<synchronous>, transform_indices = @transform_27, window_bounds = array<i64: 16, 1>}, {pipeline_mode = #tpu.pipeline_mode<synchronous>, transform_indices = @transform_28, window_bounds = array<i64: 16, 2>}, {pipeline_mode = #tpu.pipeline_mode<synchronous>, transform_indices = @transform_29, window_bounds = array<i64: 2, 1>}, {pipeline_mode = #tpu.pipeline_mode<synchronous>, transform_indices = @transform_30, window_bounds = array<i64: 2, 1>}, {pipeline_mode = #tpu.pipeline_mode<synchronous>, transform_indices = @transform_31, window_bounds = array<i64: 1, 1>}, {pipeline_mode = #tpu.pipeline_mode<synchronous>, transform_indices = @transform_32, window_bounds = array<i64: 16, 144>}, {pipeline_mode = #tpu.pipeline_mode<synchronous>, transform_indices = @transform_33, window_bounds = array<i64: 16, 1>}, {pipeline_mode = #tpu.pipeline_mode<synchronous>, transform_indices = @transform_34, window_bounds = array<i64: 29, 16>}, {pipeline_mode = #tpu.pipeline_mode<synchronous>, transform_indices = @transform_35, window_bounds = array<i64: 29, 1>}, {pipeline_mode = #tpu.pipeline_mode<synchronous>, transform_indices = @transform_36, window_bounds = array<i64: 32, 8>}, {pipeline_mode = #tpu.pipeline_mode<synchronous>, transform_indices = @transform_37, window_bounds = array<i64: 32, 29>}, {pipeline_mode = #tpu.pipeline_mode<synchronous>, transform_indices = @transform_38, window_bounds = array<i64: 32, 1>}, {transform_indices = @transform_39, window_bounds = array<i64: 1, 32, 256>}]} {
    %c0 = arith.constant 0 : index
    %c0_0 = arith.constant 0 : index
    %0 = vector.load %arg1[%c0, %c0_0] : memref<9x256xf32, #tpu.memory_space<vmem>>, vector<9x256xf32>
    %c0_1 = arith.constant 0 : index
    %c0_2 = arith.constant 0 : index
    %c0_3 = arith.constant 0 : index
    %1 = vector.load %arg2[%c0_1, %c0_2, %c0_3] : memref<1x8x256xf32, #tpu.memory_space<vmem>>, vector<1x8x256xf32>
    %2 = vector.shape_cast %1 : vector<1x8x256xf32> to vector<8x256xf32>
    %c17_i32 = arith.constant 17 : i32
    %3 = tpu.dynamic_rotate %2 by %c17_i32 dim 1 : vector<8x256xf32>, i32 -> vector<8x256xf32>
    %4 = vector.extract_strided_slice %0 {offsets = [0, 0], sizes = [1, 256], strides = [1, 1]} : vector<9x256xf32> to vector<1x256xf32>
    %5 = vector.broadcast %4 : vector<1x256xf32> to vector<8x256xf32>
    %6 = arith.mulf %3, %5 : vector<8x256xf32>
    %c16_i32 = arith.constant 16 : i32
    %7 = tpu.dynamic_rotate %2 by %c16_i32 dim 1 : vector<8x256xf32>, i32 -> vector<8x256xf32>
    %8 = vector.extract_strided_slice %0 {offsets = [1, 0], sizes = [1, 256], strides = [1, 1]} : vector<9x256xf32> to vector<1x256xf32>
    %9 = vector.broadcast %8 : vector<1x256xf32> to vector<8x256xf32>
    %10 = arith.mulf %7, %9 : vector<8x256xf32>
    %c15_i32 = arith.constant 15 : i32
    %11 = tpu.dynamic_rotate %2 by %c15_i32 dim 1 : vector<8x256xf32>, i32 -> vector<8x256xf32>
    %12 = vector.extract_strided_slice %0 {offsets = [2, 0], sizes = [1, 256], strides = [1, 1]} : vector<9x256xf32> to vector<1x256xf32>
    %13 = vector.broadcast %12 : vector<1x256xf32> to vector<8x256xf32>
    %14 = arith.mulf %11, %13 : vector<8x256xf32>
    %c1_i32 = arith.constant 1 : i32
    %15 = tpu.dynamic_rotate %2 by %c1_i32 dim 1 : vector<8x256xf32>, i32 -> vector<8x256xf32>
    %16 = vector.extract_strided_slice %0 {offsets = [3, 0], sizes = [1, 256], strides = [1, 1]} : vector<9x256xf32> to vector<1x256xf32>
    %17 = vector.broadcast %16 : vector<1x256xf32> to vector<8x256xf32>
    %18 = arith.mulf %15, %17 : vector<8x256xf32>
    %19 = vector.extract_strided_slice %0 {offsets = [4, 0], sizes = [1, 256], strides = [1, 1]} : vector<9x256xf32> to vector<1x256xf32>
    %20 = vector.broadcast %19 : vector<1x256xf32> to vector<8x256xf32>
    %21 = arith.mulf %2, %20 : vector<8x256xf32>
    %c255_i32 = arith.constant 255 : i32
    %22 = tpu.dynamic_rotate %2 by %c255_i32 dim 1 : vector<8x256xf32>, i32 -> vector<8x256xf32>
    %23 = vector.extract_strided_slice %0 {offsets = [5, 0], sizes = [1, 256], strides = [1, 1]} : vector<9x256xf32> to vector<1x256xf32>
    %24 = vector.broadcast %23 : vector<1x256xf32> to vector<8x256xf32>
    %25 = arith.mulf %22, %24 : vector<8x256xf32>
    %c241_i32 = arith.constant 241 : i32
    %26 = tpu.dynamic_rotate %2 by %c241_i32 dim 1 : vector<8x256xf32>, i32 -> vector<8x256xf32>
    %27 = vector.extract_strided_slice %0 {offsets = [6, 0], sizes = [1, 256], strides = [1, 1]} : vector<9x256xf32> to vector<1x256xf32>
    %28 = vector.broadcast %27 : vector<1x256xf32> to vector<8x256xf32>
    %29 = arith.mulf %26, %28 : vector<8x256xf32>
    %c240_i32 = arith.constant 240 : i32
    %30 = tpu.dynamic_rotate %2 by %c240_i32 dim 1 : vector<8x256xf32>, i32 -> vector<8x256xf32>
    %31 = vector.extract_strided_slice %0 {offsets = [7, 0], sizes = [1, 256], strides = [1, 1]} : vector<9x256xf32> to vector<1x256xf32>
    %32 = vector.broadcast %31 : vector<1x256xf32> to vector<8x256xf32>
    %33 = arith.mulf %30, %32 : vector<8x256xf32>
    %c239_i32 = arith.constant 239 : i32
    %34 = tpu.dynamic_rotate %2 by %c239_i32 dim 1 : vector<8x256xf32>, i32 -> vector<8x256xf32>
    %35 = vector.extract_strided_slice %0 {offsets = [8, 0], sizes = [1, 256], strides = [1, 1]} : vector<9x256xf32> to vector<1x256xf32>
    %36 = vector.broadcast %35 : vector<1x256xf32> to vector<8x256xf32>
    %37 = arith.mulf %34, %36 : vector<8x256xf32>
    %38 = tpu.concatenate %6, %10, %14, %18, %21, %25, %29, %33, %37 in 0 : vector<8x256xf32>, vector<8x256xf32>, vector<8x256xf32>, vector<8x256xf32>, vector<8x256xf32>, vector<8x256xf32>, vector<8x256xf32>, vector<8x256xf32>, vector<8x256xf32> -> vector<72x256xf32>
    %39 = arith.truncf %38 : vector<72x256xf32> to vector<72x256xbf16>
    %c0_4 = arith.constant 0 : index
    %c0_5 = arith.constant 0 : index
    %40 = vector.load %arg3[%c0_4, %c0_5] : memref<8x72xbf16, #tpu.memory_space<vmem>>, vector<8x72xbf16>
    %cst = arith.constant dense<0.000000e+00> : vector<8x256xf32>
    %41 = tpu.matmul %40, %39, %cst {dimension_numbers = #tpu.dot_dimension_numbers<[1], [0], [0], [1], [0, 0, 1, 1], [], []>} : vector<8x72xbf16>, vector<72x256xbf16>, vector<8x256xf32> -> vector<8x256xf32>
    %c0_6 = arith.constant 0 : index
    %c0_7 = arith.constant 0 : index
    %42 = vector.load %arg4[%c0_6, %c0_7] : memref<8x1xf32, #tpu.memory_space<vmem>>, vector<8x1xf32>
    %43 = vector.broadcast %42 : vector<8x1xf32> to vector<8x256xf32>
    %44 = arith.addf %41, %43 : vector<8x256xf32>
    %cst_8 = arith.constant 0.000000e+00 : f32
    %45 = vector.broadcast %cst_8 : f32 to vector<8x256xf32>
    %46 = arith.maximumf %44, %45 : vector<8x256xf32>
    %c17_i32_9 = arith.constant 17 : i32
    %47 = tpu.dynamic_rotate %46 by %c17_i32_9 dim 1 : vector<8x256xf32>, i32 -> vector<8x256xf32>
    %48 = vector.extract_strided_slice %0 {offsets = [0, 0], sizes = [1, 256], strides = [1, 1]} : vector<9x256xf32> to vector<1x256xf32>
    %49 = vector.broadcast %48 : vector<1x256xf32> to vector<8x256xf32>
    %50 = arith.mulf %47, %49 : vector<8x256xf32>
    %c16_i32_10 = arith.constant 16 : i32
    %51 = tpu.dynamic_rotate %46 by %c16_i32_10 dim 1 : vector<8x256xf32>, i32 -> vector<8x256xf32>
    %52 = vector.extract_strided_slice %0 {offsets = [1, 0], sizes = [1, 256], strides = [1, 1]} : vector<9x256xf32> to vector<1x256xf32>
    %53 = vector.broadcast %52 : vector<1x256xf32> to vector<8x256xf32>
    %54 = arith.mulf %51, %53 : vector<8x256xf32>
    %c15_i32_11 = arith.constant 15 : i32
    %55 = tpu.dynamic_rotate %46 by %c15_i32_11 dim 1 : vector<8x256xf32>, i32 -> vector<8x256xf32>
    %56 = vector.extract_strided_slice %0 {offsets = [2, 0], sizes = [1, 256], strides = [1, 1]} : vector<9x256xf32> to vector<1x256xf32>
    %57 = vector.broadcast %56 : vector<1x256xf32> to vector<8x256xf32>
    %58 = arith.mulf %55, %57 : vector<8x256xf32>
    %c1_i32_12 = arith.constant 1 : i32
    %59 = tpu.dynamic_rotate %46 by %c1_i32_12 dim 1 : vector<8x256xf32>, i32 -> vector<8x256xf32>
    %60 = vector.extract_strided_slice %0 {offsets = [3, 0], sizes = [1, 256], strides = [1, 1]} : vector<9x256xf32> to vector<1x256xf32>
    %61 = vector.broadcast %60 : vector<1x256xf32> to vector<8x256xf32>
    %62 = arith.mulf %59, %61 : vector<8x256xf32>
    %63 = vector.extract_strided_slice %0 {offsets = [4, 0], sizes = [1, 256], strides = [1, 1]} : vector<9x256xf32> to vector<1x256xf32>
    %64 = vector.broadcast %63 : vector<1x256xf32> to vector<8x256xf32>
    %65 = arith.mulf %46, %64 : vector<8x256xf32>
    %c255_i32_13 = arith.constant 255 : i32
    %66 = tpu.dynamic_rotate %46 by %c255_i32_13 dim 1 : vector<8x256xf32>, i32 -> vector<8x256xf32>
    %67 = vector.extract_strided_slice %0 {offsets = [5, 0], sizes = [1, 256], strides = [1, 1]} : vector<9x256xf32> to vector<1x256xf32>
    %68 = vector.broadcast %67 : vector<1x256xf32> to vector<8x256xf32>
    %69 = arith.mulf %66, %68 : vector<8x256xf32>
    %c241_i32_14 = arith.constant 241 : i32
    %70 = tpu.dynamic_rotate %46 by %c241_i32_14 dim 1 : vector<8x256xf32>, i32 -> vector<8x256xf32>
    %71 = vector.extract_strided_slice %0 {offsets = [6, 0], sizes = [1, 256], strides = [1, 1]} : vector<9x256xf32> to vector<1x256xf32>
    %72 = vector.broadcast %71 : vector<1x256xf32> to vector<8x256xf32>
    %73 = arith.mulf %70, %72 : vector<8x256xf32>
    %c240_i32_15 = arith.constant 240 : i32
    %74 = tpu.dynamic_rotate %46 by %c240_i32_15 dim 1 : vector<8x256xf32>, i32 -> vector<8x256xf32>
    %75 = vector.extract_strided_slice %0 {offsets = [7, 0], sizes = [1, 256], strides = [1, 1]} : vector<9x256xf32> to vector<1x256xf32>
    %76 = vector.broadcast %75 : vector<1x256xf32> to vector<8x256xf32>
    %77 = arith.mulf %74, %76 : vector<8x256xf32>
    %c239_i32_16 = arith.constant 239 : i32
    %78 = tpu.dynamic_rotate %46 by %c239_i32_16 dim 1 : vector<8x256xf32>, i32 -> vector<8x256xf32>
    %79 = vector.extract_strided_slice %0 {offsets = [8, 0], sizes = [1, 256], strides = [1, 1]} : vector<9x256xf32> to vector<1x256xf32>
    %80 = vector.broadcast %79 : vector<1x256xf32> to vector<8x256xf32>
    %81 = arith.mulf %78, %80 : vector<8x256xf32>
    %82 = tpu.concatenate %50, %54, %58, %62, %65, %69, %73, %77, %81 in 0 : vector<8x256xf32>, vector<8x256xf32>, vector<8x256xf32>, vector<8x256xf32>, vector<8x256xf32>, vector<8x256xf32>, vector<8x256xf32>, vector<8x256xf32>, vector<8x256xf32> -> vector<72x256xf32>
    %83 = arith.truncf %82 : vector<72x256xf32> to vector<72x256xbf16>
    %c0_17 = arith.constant 0 : index
    %c0_18 = arith.constant 0 : index
    %84 = vector.load %arg5[%c0_17, %c0_18] : memref<8x72xbf16, #tpu.memory_space<vmem>>, vector<8x72xbf16>
    %cst_19 = arith.constant dense<0.000000e+00> : vector<8x256xf32>
    %85 = tpu.matmul %84, %83, %cst_19 {dimension_numbers = #tpu.dot_dimension_numbers<[1], [0], [0], [1], [0, 0, 1, 1], [], []>} : vector<8x72xbf16>, vector<72x256xbf16>, vector<8x256xf32> -> vector<8x256xf32>
    %c0_20 = arith.constant 0 : index
    %c0_21 = arith.constant 0 : index
    %86 = vector.load %arg6[%c0_20, %c0_21] : memref<8x1xf32, #tpu.memory_space<vmem>>, vector<8x1xf32>
    %87 = vector.broadcast %86 : vector<8x1xf32> to vector<8x256xf32>
    %88 = arith.addf %85, %87 : vector<8x256xf32>
    %cst_22 = arith.constant 0.000000e+00 : f32
    %89 = vector.broadcast %cst_22 : f32 to vector<8x256xf32>
    %90 = arith.maximumf %88, %89 : vector<8x256xf32>
    %91 = arith.addf %90, %46 : vector<8x256xf32>
    %c17_i32_23 = arith.constant 17 : i32
    %92 = tpu.dynamic_rotate %91 by %c17_i32_23 dim 1 : vector<8x256xf32>, i32 -> vector<8x256xf32>
    %93 = vector.extract_strided_slice %0 {offsets = [0, 0], sizes = [1, 256], strides = [1, 1]} : vector<9x256xf32> to vector<1x256xf32>
    %94 = vector.broadcast %93 : vector<1x256xf32> to vector<8x256xf32>
    %95 = arith.mulf %92, %94 : vector<8x256xf32>
    %c16_i32_24 = arith.constant 16 : i32
    %96 = tpu.dynamic_rotate %91 by %c16_i32_24 dim 1 : vector<8x256xf32>, i32 -> vector<8x256xf32>
    %97 = vector.extract_strided_slice %0 {offsets = [1, 0], sizes = [1, 256], strides = [1, 1]} : vector<9x256xf32> to vector<1x256xf32>
    %98 = vector.broadcast %97 : vector<1x256xf32> to vector<8x256xf32>
    %99 = arith.mulf %96, %98 : vector<8x256xf32>
    %c15_i32_25 = arith.constant 15 : i32
    %100 = tpu.dynamic_rotate %91 by %c15_i32_25 dim 1 : vector<8x256xf32>, i32 -> vector<8x256xf32>
    %101 = vector.extract_strided_slice %0 {offsets = [2, 0], sizes = [1, 256], strides = [1, 1]} : vector<9x256xf32> to vector<1x256xf32>
    %102 = vector.broadcast %101 : vector<1x256xf32> to vector<8x256xf32>
    %103 = arith.mulf %100, %102 : vector<8x256xf32>
    %c1_i32_26 = arith.constant 1 : i32
    %104 = tpu.dynamic_rotate %91 by %c1_i32_26 dim 1 : vector<8x256xf32>, i32 -> vector<8x256xf32>
    %105 = vector.extract_strided_slice %0 {offsets = [3, 0], sizes = [1, 256], strides = [1, 1]} : vector<9x256xf32> to vector<1x256xf32>
    %106 = vector.broadcast %105 : vector<1x256xf32> to vector<8x256xf32>
    %107 = arith.mulf %104, %106 : vector<8x256xf32>
    %108 = vector.extract_strided_slice %0 {offsets = [4, 0], sizes = [1, 256], strides = [1, 1]} : vector<9x256xf32> to vector<1x256xf32>
    %109 = vector.broadcast %108 : vector<1x256xf32> to vector<8x256xf32>
    %110 = arith.mulf %91, %109 : vector<8x256xf32>
    %c255_i32_27 = arith.constant 255 : i32
    %111 = tpu.dynamic_rotate %91 by %c255_i32_27 dim 1 : vector<8x256xf32>, i32 -> vector<8x256xf32>
    %112 = vector.extract_strided_slice %0 {offsets = [5, 0], sizes = [1, 256], strides = [1, 1]} : vector<9x256xf32> to vector<1x256xf32>
    %113 = vector.broadcast %112 : vector<1x256xf32> to vector<8x256xf32>
    %114 = arith.mulf %111, %113 : vector<8x256xf32>
    %c241_i32_28 = arith.constant 241 : i32
    %115 = tpu.dynamic_rotate %91 by %c241_i32_28 dim 1 : vector<8x256xf32>, i32 -> vector<8x256xf32>
    %116 = vector.extract_strided_slice %0 {offsets = [6, 0], sizes = [1, 256], strides = [1, 1]} : vector<9x256xf32> to vector<1x256xf32>
    %117 = vector.broadcast %116 : vector<1x256xf32> to vector<8x256xf32>
    %118 = arith.mulf %115, %117 : vector<8x256xf32>
    %c240_i32_29 = arith.constant 240 : i32
    %119 = tpu.dynamic_rotate %91 by %c240_i32_29 dim 1 : vector<8x256xf32>, i32 -> vector<8x256xf32>
    %120 = vector.extract_strided_slice %0 {offsets = [7, 0], sizes = [1, 256], strides = [1, 1]} : vector<9x256xf32> to vector<1x256xf32>
    %121 = vector.broadcast %120 : vector<1x256xf32> to vector<8x256xf32>
    %122 = arith.mulf %119, %121 : vector<8x256xf32>
    %c239_i32_30 = arith.constant 239 : i32
    %123 = tpu.dynamic_rotate %91 by %c239_i32_30 dim 1 : vector<8x256xf32>, i32 -> vector<8x256xf32>
    %124 = vector.extract_strided_slice %0 {offsets = [8, 0], sizes = [1, 256], strides = [1, 1]} : vector<9x256xf32> to vector<1x256xf32>
    %125 = vector.broadcast %124 : vector<1x256xf32> to vector<8x256xf32>
    %126 = arith.mulf %123, %125 : vector<8x256xf32>
    %127 = tpu.concatenate %95, %99, %103, %107, %110, %114, %118, %122, %126 in 0 : vector<8x256xf32>, vector<8x256xf32>, vector<8x256xf32>, vector<8x256xf32>, vector<8x256xf32>, vector<8x256xf32>, vector<8x256xf32>, vector<8x256xf32>, vector<8x256xf32> -> vector<72x256xf32>
    %128 = arith.truncf %127 : vector<72x256xf32> to vector<72x256xbf16>
    %c0_31 = arith.constant 0 : index
    %c0_32 = arith.constant 0 : index
    %129 = vector.load %arg7[%c0_31, %c0_32] : memref<8x72xbf16, #tpu.memory_space<vmem>>, vector<8x72xbf16>
    %cst_33 = arith.constant dense<0.000000e+00> : vector<8x256xf32>
    %130 = tpu.matmul %129, %128, %cst_33 {dimension_numbers = #tpu.dot_dimension_numbers<[1], [0], [0], [1], [0, 0, 1, 1], [], []>} : vector<8x72xbf16>, vector<72x256xbf16>, vector<8x256xf32> -> vector<8x256xf32>
    %c0_34 = arith.constant 0 : index
    %c0_35 = arith.constant 0 : index
    %131 = vector.load %arg8[%c0_34, %c0_35] : memref<8x1xf32, #tpu.memory_space<vmem>>, vector<8x1xf32>
    %132 = vector.broadcast %131 : vector<8x1xf32> to vector<8x256xf32>
    %133 = arith.addf %130, %132 : vector<8x256xf32>
    %cst_36 = arith.constant dense<0.000000e+00> : vector<8xf32>
    %134 = vector.multi_reduction <add>, %133, %cst_36 [1] : vector<8x256xf32> to vector<8xf32>
    %135 = vector.shape_cast %134 : vector<8xf32> to vector<8x1xf32>
    %cst_37 = arith.constant 2.560000e+02 : f32
    %136 = vector.broadcast %cst_37 : f32 to vector<8x1xf32>
    %137 = arith.divf %135, %136 : vector<8x1xf32>
    %c0_38 = arith.constant 0 : index
    %c0_39 = arith.constant 0 : index
    %138 = vector.load %arg9[%c0_38, %c0_39] : memref<8x1xf32, #tpu.memory_space<vmem>>, vector<8x1xf32>
    %139 = arith.mulf %138, %137 : vector<8x1xf32>
    %cst_40 = arith.constant dense<0.000000e+00> : vector<1xf32>
    %140 = vector.multi_reduction <add>, %139, %cst_40 [0] : vector<8x1xf32> to vector<1xf32>
    %141 = vector.shape_cast %140 : vector<1xf32> to vector<1x1xf32>
    %c0_41 = arith.constant 0 : index
    %c0_42 = arith.constant 0 : index
    %142 = vector.load %arg10[%c0_41, %c0_42] : memref<1x1xf32, #tpu.memory_space<vmem>>, vector<1x1xf32>
    %143 = arith.addf %141, %142 : vector<1x1xf32>
    %cst_43 = arith.constant 0.000000e+00 : f32
    %144 = vector.broadcast %cst_43 : f32 to vector<1x1xf32>
    %145 = arith.maximumf %143, %144 : vector<1x1xf32>
    %c0_44 = arith.constant 0 : index
    %c0_45 = arith.constant 0 : index
    %146 = vector.load %arg11[%c0_44, %c0_45] : memref<8x1xf32, #tpu.memory_space<vmem>>, vector<8x1xf32>
    %147 = vector.broadcast %145 : vector<1x1xf32> to vector<8x1xf32>
    %148 = arith.mulf %146, %147 : vector<8x1xf32>
    %cst_46 = arith.constant dense<0.000000e+00> : vector<8xf32>
    %149 = vector.multi_reduction <add>, %148, %cst_46 [1] : vector<8x1xf32> to vector<8xf32>
    %150 = vector.shape_cast %149 : vector<8xf32> to vector<8x1xf32>
    %c0_47 = arith.constant 0 : index
    %c0_48 = arith.constant 0 : index
    %151 = vector.load %arg12[%c0_47, %c0_48] : memref<8x1xf32, #tpu.memory_space<vmem>>, vector<8x1xf32>
    %152 = arith.addf %150, %151 : vector<8x1xf32>
    %cst_49 = arith.constant 0.000000e+00 : f32
    %153 = vector.broadcast %cst_49 : f32 to vector<8x1xf32>
    %154 = arith.subf %153, %152 : vector<8x1xf32>
    %155 = math.exp %154 : vector<8x1xf32>
    %cst_50 = arith.constant 1.000000e+00 : f32
    %156 = vector.broadcast %cst_50 : f32 to vector<8x1xf32>
    %157 = arith.addf %156, %155 : vector<8x1xf32>
    %cst_51 = arith.constant 1.000000e+00 : f32
    %158 = vector.broadcast %cst_51 : f32 to vector<8x1xf32>
    %159 = arith.divf %158, %157 : vector<8x1xf32>
    %160 = vector.broadcast %159 : vector<8x1xf32> to vector<8x256xf32>
    %161 = arith.mulf %133, %160 : vector<8x256xf32>
    %c0_52 = arith.constant 0 : index
    %c0_53 = arith.constant 0 : index
    %162 = vector.load %arg13[%c0_52, %c0_53] : memref<8x1xf32, #tpu.memory_space<vmem>>, vector<8x1xf32>
    %c0_54 = arith.constant 0 : index
    %c0_55 = arith.constant 0 : index
    %163 = vector.load %arg14[%c0_54, %c0_55] : memref<1x1xf32, #tpu.memory_space<vmem>>, vector<1x1xf32>
    %c0_56 = arith.constant 0 : index
    %c0_57 = arith.constant 0 : index
    %164 = vector.load %arg15[%c0_56, %c0_57] : memref<1x1xf32, #tpu.memory_space<vmem>>, vector<1x1xf32>
    %cst_58 = arith.constant 0.000000e+00 : f32
    %165 = vector.broadcast %cst_58 : f32 to vector<1x256xf32>
    %c0_59 = arith.constant 0 : index
    %c0_60 = arith.constant 0 : index
    %166 = vector.load %arg16[%c0_59, %c0_60] : memref<1x1xf32, #tpu.memory_space<vmem>>, vector<1x1xf32>
    %167 = vector.broadcast %166 : vector<1x1xf32> to vector<1x256xf32>
    %168 = arith.addf %165, %167 : vector<1x256xf32>
    %169 = vector.broadcast %162 : vector<8x1xf32> to vector<8x256xf32>
    %170 = arith.mulf %161, %169 : vector<8x256xf32>
    %cst_61 = arith.constant dense<0.000000e+00> : vector<256xf32>
    %171 = vector.multi_reduction <add>, %170, %cst_61 [0] : vector<8x256xf32> to vector<256xf32>
    %172 = vector.shape_cast %171 : vector<256xf32> to vector<1x256xf32>
    %173 = vector.broadcast %163 : vector<1x1xf32> to vector<1x256xf32>
    %174 = arith.addf %172, %173 : vector<1x256xf32>
    %cst_62 = arith.constant 0.000000e+00 : f32
    %175 = vector.broadcast %cst_62 : f32 to vector<1x256xf32>
    %176 = arith.maximumf %174, %175 : vector<1x256xf32>
    %177 = vector.broadcast %164 : vector<1x1xf32> to vector<1x256xf32>
    %178 = arith.mulf %177, %176 : vector<1x256xf32>
    %179 = arith.addf %168, %178 : vector<1x256xf32>
    %cst_63 = arith.constant 0.000000e+00 : f32
    %180 = vector.broadcast %cst_63 : f32 to vector<1x256xf32>
    %181 = arith.subf %180, %179 : vector<1x256xf32>
    %182 = math.exp %181 : vector<1x256xf32>
    %cst_64 = arith.constant 1.000000e+00 : f32
    %183 = vector.broadcast %cst_64 : f32 to vector<1x256xf32>
    %184 = arith.addf %183, %182 : vector<1x256xf32>
    %cst_65 = arith.constant 1.000000e+00 : f32
    %185 = vector.broadcast %cst_65 : f32 to vector<1x256xf32>
    %186 = arith.divf %185, %184 : vector<1x256xf32>
    %187 = vector.broadcast %186 : vector<1x256xf32> to vector<8x256xf32>
    %188 = arith.mulf %161, %187 : vector<8x256xf32>
    %189 = arith.addf %188, %46 : vector<8x256xf32>
    %c17_i32_66 = arith.constant 17 : i32
    %190 = tpu.dynamic_rotate %189 by %c17_i32_66 dim 1 : vector<8x256xf32>, i32 -> vector<8x256xf32>
    %191 = vector.extract_strided_slice %0 {offsets = [0, 0], sizes = [1, 256], strides = [1, 1]} : vector<9x256xf32> to vector<1x256xf32>
    %192 = vector.broadcast %191 : vector<1x256xf32> to vector<8x256xf32>
    %193 = arith.mulf %190, %192 : vector<8x256xf32>
    %c16_i32_67 = arith.constant 16 : i32
    %194 = tpu.dynamic_rotate %189 by %c16_i32_67 dim 1 : vector<8x256xf32>, i32 -> vector<8x256xf32>
    %195 = vector.extract_strided_slice %0 {offsets = [1, 0], sizes = [1, 256], strides = [1, 1]} : vector<9x256xf32> to vector<1x256xf32>
    %196 = vector.broadcast %195 : vector<1x256xf32> to vector<8x256xf32>
    %197 = arith.mulf %194, %196 : vector<8x256xf32>
    %c15_i32_68 = arith.constant 15 : i32
    %198 = tpu.dynamic_rotate %189 by %c15_i32_68 dim 1 : vector<8x256xf32>, i32 -> vector<8x256xf32>
    %199 = vector.extract_strided_slice %0 {offsets = [2, 0], sizes = [1, 256], strides = [1, 1]} : vector<9x256xf32> to vector<1x256xf32>
    %200 = vector.broadcast %199 : vector<1x256xf32> to vector<8x256xf32>
    %201 = arith.mulf %198, %200 : vector<8x256xf32>
    %c1_i32_69 = arith.constant 1 : i32
    %202 = tpu.dynamic_rotate %189 by %c1_i32_69 dim 1 : vector<8x256xf32>, i32 -> vector<8x256xf32>
    %203 = vector.extract_strided_slice %0 {offsets = [3, 0], sizes = [1, 256], strides = [1, 1]} : vector<9x256xf32> to vector<1x256xf32>
    %204 = vector.broadcast %203 : vector<1x256xf32> to vector<8x256xf32>
    %205 = arith.mulf %202, %204 : vector<8x256xf32>
    %206 = vector.extract_strided_slice %0 {offsets = [4, 0], sizes = [1, 256], strides = [1, 1]} : vector<9x256xf32> to vector<1x256xf32>
    %207 = vector.broadcast %206 : vector<1x256xf32> to vector<8x256xf32>
    %208 = arith.mulf %189, %207 : vector<8x256xf32>
    %c255_i32_70 = arith.constant 255 : i32
    %209 = tpu.dynamic_rotate %189 by %c255_i32_70 dim 1 : vector<8x256xf32>, i32 -> vector<8x256xf32>
    %210 = vector.extract_strided_slice %0 {offsets = [5, 0], sizes = [1, 256], strides = [1, 1]} : vector<9x256xf32> to vector<1x256xf32>
    %211 = vector.broadcast %210 : vector<1x256xf32> to vector<8x256xf32>
    %212 = arith.mulf %209, %211 : vector<8x256xf32>
    %c241_i32_71 = arith.constant 241 : i32
    %213 = tpu.dynamic_rotate %189 by %c241_i32_71 dim 1 : vector<8x256xf32>, i32 -> vector<8x256xf32>
    %214 = vector.extract_strided_slice %0 {offsets = [6, 0], sizes = [1, 256], strides = [1, 1]} : vector<9x256xf32> to vector<1x256xf32>
    %215 = vector.broadcast %214 : vector<1x256xf32> to vector<8x256xf32>
    %216 = arith.mulf %213, %215 : vector<8x256xf32>
    %c240_i32_72 = arith.constant 240 : i32
    %217 = tpu.dynamic_rotate %189 by %c240_i32_72 dim 1 : vector<8x256xf32>, i32 -> vector<8x256xf32>
    %218 = vector.extract_strided_slice %0 {offsets = [7, 0], sizes = [1, 256], strides = [1, 1]} : vector<9x256xf32> to vector<1x256xf32>
    %219 = vector.broadcast %218 : vector<1x256xf32> to vector<8x256xf32>
    %220 = arith.mulf %217, %219 : vector<8x256xf32>
    %c239_i32_73 = arith.constant 239 : i32
    %221 = tpu.dynamic_rotate %189 by %c239_i32_73 dim 1 : vector<8x256xf32>, i32 -> vector<8x256xf32>
    %222 = vector.extract_strided_slice %0 {offsets = [8, 0], sizes = [1, 256], strides = [1, 1]} : vector<9x256xf32> to vector<1x256xf32>
    %223 = vector.broadcast %222 : vector<1x256xf32> to vector<8x256xf32>
    %224 = arith.mulf %221, %223 : vector<8x256xf32>
    %225 = tpu.concatenate %193, %197, %201, %205, %208, %212, %216, %220, %224 in 0 : vector<8x256xf32>, vector<8x256xf32>, vector<8x256xf32>, vector<8x256xf32>, vector<8x256xf32>, vector<8x256xf32>, vector<8x256xf32>, vector<8x256xf32>, vector<8x256xf32> -> vector<72x256xf32>
    %226 = arith.truncf %225 : vector<72x256xf32> to vector<72x256xbf16>
    %c0_74 = arith.constant 0 : index
    %c0_75 = arith.constant 0 : index
    %227 = vector.load %arg17[%c0_74, %c0_75] : memref<8x72xbf16, #tpu.memory_space<vmem>>, vector<8x72xbf16>
    %cst_76 = arith.constant dense<0.000000e+00> : vector<8x256xf32>
    %228 = tpu.matmul %227, %226, %cst_76 {dimension_numbers = #tpu.dot_dimension_numbers<[1], [0], [0], [1], [0, 0, 1, 1], [], []>} : vector<8x72xbf16>, vector<72x256xbf16>, vector<8x256xf32> -> vector<8x256xf32>
    %c0_77 = arith.constant 0 : index
    %c0_78 = arith.constant 0 : index
    %229 = vector.load %arg18[%c0_77, %c0_78] : memref<8x1xf32, #tpu.memory_space<vmem>>, vector<8x1xf32>
    %230 = vector.broadcast %229 : vector<8x1xf32> to vector<8x256xf32>
    %231 = arith.addf %228, %230 : vector<8x256xf32>
    %232 = arith.addf %231, %46 : vector<8x256xf32>
    %c0_79 = arith.constant 0 : index
    %c0_80 = arith.constant 0 : index
    %233 = vector.load %arg19[%c0_79, %c0_80] : memref<16x8xbf16, #tpu.memory_space<vmem>>, vector<16x8xbf16>
    %234 = arith.truncf %232 : vector<8x256xf32> to vector<8x256xbf16>
    %cst_81 = arith.constant dense<0.000000e+00> : vector<16x256xf32>
    %235 = tpu.matmul %233, %234, %cst_81 {dimension_numbers = #tpu.dot_dimension_numbers<[1], [0], [0], [1], [0, 0, 1, 1], [], []>} : vector<16x8xbf16>, vector<8x256xbf16>, vector<16x256xf32> -> vector<16x256xf32>
    %c0_82 = arith.constant 0 : index
    %c0_83 = arith.constant 0 : index
    %236 = vector.load %arg20[%c0_82, %c0_83] : memref<16x1xf32, #tpu.memory_space<vmem>>, vector<16x1xf32>
    %237 = vector.broadcast %236 : vector<16x1xf32> to vector<16x256xf32>
    %238 = arith.addf %235, %237 : vector<16x256xf32>
    %cst_84 = arith.constant 0.000000e+00 : f32
    %239 = vector.broadcast %cst_84 : f32 to vector<16x256xf32>
    %240 = arith.maximumf %238, %239 : vector<16x256xf32>
    %c17_i32_85 = arith.constant 17 : i32
    %241 = tpu.dynamic_rotate %240 by %c17_i32_85 dim 1 : vector<16x256xf32>, i32 -> vector<16x256xf32>
    %242 = vector.extract_strided_slice %0 {offsets = [0, 0], sizes = [1, 256], strides = [1, 1]} : vector<9x256xf32> to vector<1x256xf32>
    %243 = vector.broadcast %242 : vector<1x256xf32> to vector<16x256xf32>
    %244 = arith.mulf %241, %243 : vector<16x256xf32>
    %c16_i32_86 = arith.constant 16 : i32
    %245 = tpu.dynamic_rotate %240 by %c16_i32_86 dim 1 : vector<16x256xf32>, i32 -> vector<16x256xf32>
    %246 = vector.extract_strided_slice %0 {offsets = [1, 0], sizes = [1, 256], strides = [1, 1]} : vector<9x256xf32> to vector<1x256xf32>
    %247 = vector.broadcast %246 : vector<1x256xf32> to vector<16x256xf32>
    %248 = arith.mulf %245, %247 : vector<16x256xf32>
    %c15_i32_87 = arith.constant 15 : i32
    %249 = tpu.dynamic_rotate %240 by %c15_i32_87 dim 1 : vector<16x256xf32>, i32 -> vector<16x256xf32>
    %250 = vector.extract_strided_slice %0 {offsets = [2, 0], sizes = [1, 256], strides = [1, 1]} : vector<9x256xf32> to vector<1x256xf32>
    %251 = vector.broadcast %250 : vector<1x256xf32> to vector<16x256xf32>
    %252 = arith.mulf %249, %251 : vector<16x256xf32>
    %c1_i32_88 = arith.constant 1 : i32
    %253 = tpu.dynamic_rotate %240 by %c1_i32_88 dim 1 : vector<16x256xf32>, i32 -> vector<16x256xf32>
    %254 = vector.extract_strided_slice %0 {offsets = [3, 0], sizes = [1, 256], strides = [1, 1]} : vector<9x256xf32> to vector<1x256xf32>
    %255 = vector.broadcast %254 : vector<1x256xf32> to vector<16x256xf32>
    %256 = arith.mulf %253, %255 : vector<16x256xf32>
    %257 = vector.extract_strided_slice %0 {offsets = [4, 0], sizes = [1, 256], strides = [1, 1]} : vector<9x256xf32> to vector<1x256xf32>
    %258 = vector.broadcast %257 : vector<1x256xf32> to vector<16x256xf32>
    %259 = arith.mulf %240, %258 : vector<16x256xf32>
    %c255_i32_89 = arith.constant 255 : i32
    %260 = tpu.dynamic_rotate %240 by %c255_i32_89 dim 1 : vector<16x256xf32>, i32 -> vector<16x256xf32>
    %261 = vector.extract_strided_slice %0 {offsets = [5, 0], sizes = [1, 256], strides = [1, 1]} : vector<9x256xf32> to vector<1x256xf32>
    %262 = vector.broadcast %261 : vector<1x256xf32> to vector<16x256xf32>
    %263 = arith.mulf %260, %262 : vector<16x256xf32>
    %c241_i32_90 = arith.constant 241 : i32
    %264 = tpu.dynamic_rotate %240 by %c241_i32_90 dim 1 : vector<16x256xf32>, i32 -> vector<16x256xf32>
    %265 = vector.extract_strided_slice %0 {offsets = [6, 0], sizes = [1, 256], strides = [1, 1]} : vector<9x256xf32> to vector<1x256xf32>
    %266 = vector.broadcast %265 : vector<1x256xf32> to vector<16x256xf32>
    %267 = arith.mulf %264, %266 : vector<16x256xf32>
    %c240_i32_91 = arith.constant 240 : i32
    %268 = tpu.dynamic_rotate %240 by %c240_i32_91 dim 1 : vector<16x256xf32>, i32 -> vector<16x256xf32>
    %269 = vector.extract_strided_slice %0 {offsets = [7, 0], sizes = [1, 256], strides = [1, 1]} : vector<9x256xf32> to vector<1x256xf32>
    %270 = vector.broadcast %269 : vector<1x256xf32> to vector<16x256xf32>
    %271 = arith.mulf %268, %270 : vector<16x256xf32>
    %c239_i32_92 = arith.constant 239 : i32
    %272 = tpu.dynamic_rotate %240 by %c239_i32_92 dim 1 : vector<16x256xf32>, i32 -> vector<16x256xf32>
    %273 = vector.extract_strided_slice %0 {offsets = [8, 0], sizes = [1, 256], strides = [1, 1]} : vector<9x256xf32> to vector<1x256xf32>
    %274 = vector.broadcast %273 : vector<1x256xf32> to vector<16x256xf32>
    %275 = arith.mulf %272, %274 : vector<16x256xf32>
    %276 = tpu.concatenate %244, %248, %252, %256, %259, %263, %267, %271, %275 in 0 : vector<16x256xf32>, vector<16x256xf32>, vector<16x256xf32>, vector<16x256xf32>, vector<16x256xf32>, vector<16x256xf32>, vector<16x256xf32>, vector<16x256xf32>, vector<16x256xf32> -> vector<144x256xf32>
    %277 = arith.truncf %276 : vector<144x256xf32> to vector<144x256xbf16>
    %c0_93 = arith.constant 0 : index
    %c0_94 = arith.constant 0 : index
    %278 = vector.load %arg21[%c0_93, %c0_94] : memref<16x144xbf16, #tpu.memory_space<vmem>>, vector<16x144xbf16>
    %cst_95 = arith.constant dense<0.000000e+00> : vector<16x256xf32>
    %279 = tpu.matmul %278, %277, %cst_95 {dimension_numbers = #tpu.dot_dimension_numbers<[1], [0], [0], [1], [0, 0, 1, 1], [], []>} : vector<16x144xbf16>, vector<144x256xbf16>, vector<16x256xf32> -> vector<16x256xf32>
    %c0_96 = arith.constant 0 : index
    %c0_97 = arith.constant 0 : index
    %280 = vector.load %arg22[%c0_96, %c0_97] : memref<16x1xf32, #tpu.memory_space<vmem>>, vector<16x1xf32>
    %281 = vector.broadcast %280 : vector<16x1xf32> to vector<16x256xf32>
    %282 = arith.addf %279, %281 : vector<16x256xf32>
    %cst_98 = arith.constant 0.000000e+00 : f32
    %283 = vector.broadcast %cst_98 : f32 to vector<16x256xf32>
    %284 = arith.maximumf %282, %283 : vector<16x256xf32>
    %285 = arith.addf %284, %240 : vector<16x256xf32>
    %c17_i32_99 = arith.constant 17 : i32
    %286 = tpu.dynamic_rotate %285 by %c17_i32_99 dim 1 : vector<16x256xf32>, i32 -> vector<16x256xf32>
    %287 = vector.extract_strided_slice %0 {offsets = [0, 0], sizes = [1, 256], strides = [1, 1]} : vector<9x256xf32> to vector<1x256xf32>
    %288 = vector.broadcast %287 : vector<1x256xf32> to vector<16x256xf32>
    %289 = arith.mulf %286, %288 : vector<16x256xf32>
    %c16_i32_100 = arith.constant 16 : i32
    %290 = tpu.dynamic_rotate %285 by %c16_i32_100 dim 1 : vector<16x256xf32>, i32 -> vector<16x256xf32>
    %291 = vector.extract_strided_slice %0 {offsets = [1, 0], sizes = [1, 256], strides = [1, 1]} : vector<9x256xf32> to vector<1x256xf32>
    %292 = vector.broadcast %291 : vector<1x256xf32> to vector<16x256xf32>
    %293 = arith.mulf %290, %292 : vector<16x256xf32>
    %c15_i32_101 = arith.constant 15 : i32
    %294 = tpu.dynamic_rotate %285 by %c15_i32_101 dim 1 : vector<16x256xf32>, i32 -> vector<16x256xf32>
    %295 = vector.extract_strided_slice %0 {offsets = [2, 0], sizes = [1, 256], strides = [1, 1]} : vector<9x256xf32> to vector<1x256xf32>
    %296 = vector.broadcast %295 : vector<1x256xf32> to vector<16x256xf32>
    %297 = arith.mulf %294, %296 : vector<16x256xf32>
    %c1_i32_102 = arith.constant 1 : i32
    %298 = tpu.dynamic_rotate %285 by %c1_i32_102 dim 1 : vector<16x256xf32>, i32 -> vector<16x256xf32>
    %299 = vector.extract_strided_slice %0 {offsets = [3, 0], sizes = [1, 256], strides = [1, 1]} : vector<9x256xf32> to vector<1x256xf32>
    %300 = vector.broadcast %299 : vector<1x256xf32> to vector<16x256xf32>
    %301 = arith.mulf %298, %300 : vector<16x256xf32>
    %302 = vector.extract_strided_slice %0 {offsets = [4, 0], sizes = [1, 256], strides = [1, 1]} : vector<9x256xf32> to vector<1x256xf32>
    %303 = vector.broadcast %302 : vector<1x256xf32> to vector<16x256xf32>
    %304 = arith.mulf %285, %303 : vector<16x256xf32>
    %c255_i32_103 = arith.constant 255 : i32
    %305 = tpu.dynamic_rotate %285 by %c255_i32_103 dim 1 : vector<16x256xf32>, i32 -> vector<16x256xf32>
    %306 = vector.extract_strided_slice %0 {offsets = [5, 0], sizes = [1, 256], strides = [1, 1]} : vector<9x256xf32> to vector<1x256xf32>
    %307 = vector.broadcast %306 : vector<1x256xf32> to vector<16x256xf32>
    %308 = arith.mulf %305, %307 : vector<16x256xf32>
    %c241_i32_104 = arith.constant 241 : i32
    %309 = tpu.dynamic_rotate %285 by %c241_i32_104 dim 1 : vector<16x256xf32>, i32 -> vector<16x256xf32>
    %310 = vector.extract_strided_slice %0 {offsets = [6, 0], sizes = [1, 256], strides = [1, 1]} : vector<9x256xf32> to vector<1x256xf32>
    %311 = vector.broadcast %310 : vector<1x256xf32> to vector<16x256xf32>
    %312 = arith.mulf %309, %311 : vector<16x256xf32>
    %c240_i32_105 = arith.constant 240 : i32
    %313 = tpu.dynamic_rotate %285 by %c240_i32_105 dim 1 : vector<16x256xf32>, i32 -> vector<16x256xf32>
    %314 = vector.extract_strided_slice %0 {offsets = [7, 0], sizes = [1, 256], strides = [1, 1]} : vector<9x256xf32> to vector<1x256xf32>
    %315 = vector.broadcast %314 : vector<1x256xf32> to vector<16x256xf32>
    %316 = arith.mulf %313, %315 : vector<16x256xf32>
    %c239_i32_106 = arith.constant 239 : i32
    %317 = tpu.dynamic_rotate %285 by %c239_i32_106 dim 1 : vector<16x256xf32>, i32 -> vector<16x256xf32>
    %318 = vector.extract_strided_slice %0 {offsets = [8, 0], sizes = [1, 256], strides = [1, 1]} : vector<9x256xf32> to vector<1x256xf32>
    %319 = vector.broadcast %318 : vector<1x256xf32> to vector<16x256xf32>
    %320 = arith.mulf %317, %319 : vector<16x256xf32>
    %321 = tpu.concatenate %289, %293, %297, %301, %304, %308, %312, %316, %320 in 0 : vector<16x256xf32>, vector<16x256xf32>, vector<16x256xf32>, vector<16x256xf32>, vector<16x256xf32>, vector<16x256xf32>, vector<16x256xf32>, vector<16x256xf32>, vector<16x256xf32> -> vector<144x256xf32>
    %322 = arith.truncf %321 : vector<144x256xf32> to vector<144x256xbf16>
    %c0_107 = arith.constant 0 : index
    %c0_108 = arith.constant 0 : index
    %323 = vector.load %arg23[%c0_107, %c0_108] : memref<16x144xbf16, #tpu.memory_space<vmem>>, vector<16x144xbf16>
    %cst_109 = arith.constant dense<0.000000e+00> : vector<16x256xf32>
    %324 = tpu.matmul %323, %322, %cst_109 {dimension_numbers = #tpu.dot_dimension_numbers<[1], [0], [0], [1], [0, 0, 1, 1], [], []>} : vector<16x144xbf16>, vector<144x256xbf16>, vector<16x256xf32> -> vector<16x256xf32>
    %c0_110 = arith.constant 0 : index
    %c0_111 = arith.constant 0 : index
    %325 = vector.load %arg24[%c0_110, %c0_111] : memref<16x1xf32, #tpu.memory_space<vmem>>, vector<16x1xf32>
    %326 = vector.broadcast %325 : vector<16x1xf32> to vector<16x256xf32>
    %327 = arith.addf %324, %326 : vector<16x256xf32>
    %cst_112 = arith.constant dense<0.000000e+00> : vector<16xf32>
    %328 = vector.multi_reduction <add>, %327, %cst_112 [1] : vector<16x256xf32> to vector<16xf32>
    %329 = vector.shape_cast %328 : vector<16xf32> to vector<16x1xf32>
    %cst_113 = arith.constant 2.560000e+02 : f32
    %330 = vector.broadcast %cst_113 : f32 to vector<16x1xf32>
    %331 = arith.divf %329, %330 : vector<16x1xf32>
    %c0_114 = arith.constant 0 : index
    %c0_115 = arith.constant 0 : index
    %332 = vector.load %arg25[%c0_114, %c0_115] : memref<16x2xf32, #tpu.memory_space<vmem>>, vector<16x2xf32>
    %333 = vector.broadcast %331 : vector<16x1xf32> to vector<16x2xf32>
    %334 = arith.mulf %332, %333 : vector<16x2xf32>
    %cst_116 = arith.constant dense<0.000000e+00> : vector<2xf32>
    %335 = vector.multi_reduction <add>, %334, %cst_116 [0] : vector<16x2xf32> to vector<2xf32>
    %336 = vector.shape_cast %335 : vector<2xf32> to vector<1x2xf32>
    %c0_117 = arith.constant 0 : index
    %c0_118 = arith.constant 0 : index
    %337 = vector.load %arg26[%c0_117, %c0_118] : memref<1x2xf32, #tpu.memory_space<vmem>>, vector<1x2xf32>
    %338 = arith.addf %336, %337 : vector<1x2xf32>
    %cst_119 = arith.constant 0.000000e+00 : f32
    %339 = vector.broadcast %cst_119 : f32 to vector<1x2xf32>
    %340 = arith.maximumf %338, %339 : vector<1x2xf32>
    %c0_120 = arith.constant 0 : index
    %c0_121 = arith.constant 0 : index
    %341 = vector.load %arg27[%c0_120, %c0_121] : memref<16x2xf32, #tpu.memory_space<vmem>>, vector<16x2xf32>
    %342 = vector.broadcast %340 : vector<1x2xf32> to vector<16x2xf32>
    %343 = arith.mulf %341, %342 : vector<16x2xf32>
    %cst_122 = arith.constant dense<0.000000e+00> : vector<16xf32>
    %344 = vector.multi_reduction <add>, %343, %cst_122 [1] : vector<16x2xf32> to vector<16xf32>
    %345 = vector.shape_cast %344 : vector<16xf32> to vector<16x1xf32>
    %c0_123 = arith.constant 0 : index
    %c0_124 = arith.constant 0 : index
    %346 = vector.load %arg28[%c0_123, %c0_124] : memref<16x1xf32, #tpu.memory_space<vmem>>, vector<16x1xf32>
    %347 = arith.addf %345, %346 : vector<16x1xf32>
    %cst_125 = arith.constant 0.000000e+00 : f32
    %348 = vector.broadcast %cst_125 : f32 to vector<16x1xf32>
    %349 = arith.subf %348, %347 : vector<16x1xf32>
    %350 = math.exp %349 : vector<16x1xf32>
    %cst_126 = arith.constant 1.000000e+00 : f32
    %351 = vector.broadcast %cst_126 : f32 to vector<16x1xf32>
    %352 = arith.addf %351, %350 : vector<16x1xf32>
    %cst_127 = arith.constant 1.000000e+00 : f32
    %353 = vector.broadcast %cst_127 : f32 to vector<16x1xf32>
    %354 = arith.divf %353, %352 : vector<16x1xf32>
    %355 = vector.broadcast %354 : vector<16x1xf32> to vector<16x256xf32>
    %356 = arith.mulf %327, %355 : vector<16x256xf32>
    %c0_128 = arith.constant 0 : index
    %c0_129 = arith.constant 0 : index
    %357 = vector.load %arg29[%c0_128, %c0_129] : memref<16x2xf32, #tpu.memory_space<vmem>>, vector<16x2xf32>
    %c0_130 = arith.constant 0 : index
    %c0_131 = arith.constant 0 : index
    %358 = vector.load %arg30[%c0_130, %c0_131] : memref<2x1xf32, #tpu.memory_space<vmem>>, vector<2x1xf32>
    %c0_132 = arith.constant 0 : index
    %c0_133 = arith.constant 0 : index
    %359 = vector.load %arg31[%c0_132, %c0_133] : memref<2x1xf32, #tpu.memory_space<vmem>>, vector<2x1xf32>
    %cst_134 = arith.constant 0.000000e+00 : f32
    %360 = vector.broadcast %cst_134 : f32 to vector<1x256xf32>
    %c0_135 = arith.constant 0 : index
    %c0_136 = arith.constant 0 : index
    %361 = vector.load %arg32[%c0_135, %c0_136] : memref<1x1xf32, #tpu.memory_space<vmem>>, vector<1x1xf32>
    %362 = vector.broadcast %361 : vector<1x1xf32> to vector<1x256xf32>
    %363 = arith.addf %360, %362 : vector<1x256xf32>
    %364 = vector.extract_strided_slice %357 {offsets = [0, 0], sizes = [16, 1], strides = [1, 1]} : vector<16x2xf32> to vector<16x1xf32>
    %365 = vector.broadcast %364 : vector<16x1xf32> to vector<16x256xf32>
    %366 = arith.mulf %356, %365 : vector<16x256xf32>
    %cst_137 = arith.constant dense<0.000000e+00> : vector<256xf32>
    %367 = vector.multi_reduction <add>, %366, %cst_137 [0] : vector<16x256xf32> to vector<256xf32>
    %368 = vector.shape_cast %367 : vector<256xf32> to vector<1x256xf32>
    %369 = vector.extract_strided_slice %358 {offsets = [0, 0], sizes = [1, 1], strides = [1, 1]} : vector<2x1xf32> to vector<1x1xf32>
    %370 = vector.broadcast %369 : vector<1x1xf32> to vector<1x256xf32>
    %371 = arith.addf %368, %370 : vector<1x256xf32>
    %372 = vector.extract_strided_slice %359 {offsets = [0, 0], sizes = [1, 1], strides = [1, 1]} : vector<2x1xf32> to vector<1x1xf32>
    %cst_138 = arith.constant 0.000000e+00 : f32
    %373 = vector.broadcast %cst_138 : f32 to vector<1x256xf32>
    %374 = arith.maximumf %371, %373 : vector<1x256xf32>
    %375 = vector.broadcast %372 : vector<1x1xf32> to vector<1x256xf32>
    %376 = arith.mulf %375, %374 : vector<1x256xf32>
    %377 = arith.addf %363, %376 : vector<1x256xf32>
    %378 = vector.extract_strided_slice %357 {offsets = [0, 1], sizes = [16, 1], strides = [1, 1]} : vector<16x2xf32> to vector<16x1xf32>
    %379 = vector.broadcast %378 : vector<16x1xf32> to vector<16x256xf32>
    %380 = arith.mulf %356, %379 : vector<16x256xf32>
    %cst_139 = arith.constant dense<0.000000e+00> : vector<256xf32>
    %381 = vector.multi_reduction <add>, %380, %cst_139 [0] : vector<16x256xf32> to vector<256xf32>
    %382 = vector.shape_cast %381 : vector<256xf32> to vector<1x256xf32>
    %383 = vector.extract_strided_slice %358 {offsets = [1, 0], sizes = [1, 1], strides = [1, 1]} : vector<2x1xf32> to vector<1x1xf32>
    %384 = vector.broadcast %383 : vector<1x1xf32> to vector<1x256xf32>
    %385 = arith.addf %382, %384 : vector<1x256xf32>
    %386 = vector.extract_strided_slice %359 {offsets = [1, 0], sizes = [1, 1], strides = [1, 1]} : vector<2x1xf32> to vector<1x1xf32>
    %cst_140 = arith.constant 0.000000e+00 : f32
    %387 = vector.broadcast %cst_140 : f32 to vector<1x256xf32>
    %388 = arith.maximumf %385, %387 : vector<1x256xf32>
    %389 = vector.broadcast %386 : vector<1x1xf32> to vector<1x256xf32>
    %390 = arith.mulf %389, %388 : vector<1x256xf32>
    %391 = arith.addf %377, %390 : vector<1x256xf32>
    %cst_141 = arith.constant 0.000000e+00 : f32
    %392 = vector.broadcast %cst_141 : f32 to vector<1x256xf32>
    %393 = arith.subf %392, %391 : vector<1x256xf32>
    %394 = math.exp %393 : vector<1x256xf32>
    %cst_142 = arith.constant 1.000000e+00 : f32
    %395 = vector.broadcast %cst_142 : f32 to vector<1x256xf32>
    %396 = arith.addf %395, %394 : vector<1x256xf32>
    %cst_143 = arith.constant 1.000000e+00 : f32
    %397 = vector.broadcast %cst_143 : f32 to vector<1x256xf32>
    %398 = arith.divf %397, %396 : vector<1x256xf32>
    %399 = vector.broadcast %398 : vector<1x256xf32> to vector<16x256xf32>
    %400 = arith.mulf %356, %399 : vector<16x256xf32>
    %401 = arith.addf %400, %240 : vector<16x256xf32>
    %c17_i32_144 = arith.constant 17 : i32
    %402 = tpu.dynamic_rotate %401 by %c17_i32_144 dim 1 : vector<16x256xf32>, i32 -> vector<16x256xf32>
    %403 = vector.extract_strided_slice %0 {offsets = [0, 0], sizes = [1, 256], strides = [1, 1]} : vector<9x256xf32> to vector<1x256xf32>
    %404 = vector.broadcast %403 : vector<1x256xf32> to vector<16x256xf32>
    %405 = arith.mulf %402, %404 : vector<16x256xf32>
    %c16_i32_145 = arith.constant 16 : i32
    %406 = tpu.dynamic_rotate %401 by %c16_i32_145 dim 1 : vector<16x256xf32>, i32 -> vector<16x256xf32>
    %407 = vector.extract_strided_slice %0 {offsets = [1, 0], sizes = [1, 256], strides = [1, 1]} : vector<9x256xf32> to vector<1x256xf32>
    %408 = vector.broadcast %407 : vector<1x256xf32> to vector<16x256xf32>
    %409 = arith.mulf %406, %408 : vector<16x256xf32>
    %c15_i32_146 = arith.constant 15 : i32
    %410 = tpu.dynamic_rotate %401 by %c15_i32_146 dim 1 : vector<16x256xf32>, i32 -> vector<16x256xf32>
    %411 = vector.extract_strided_slice %0 {offsets = [2, 0], sizes = [1, 256], strides = [1, 1]} : vector<9x256xf32> to vector<1x256xf32>
    %412 = vector.broadcast %411 : vector<1x256xf32> to vector<16x256xf32>
    %413 = arith.mulf %410, %412 : vector<16x256xf32>
    %c1_i32_147 = arith.constant 1 : i32
    %414 = tpu.dynamic_rotate %401 by %c1_i32_147 dim 1 : vector<16x256xf32>, i32 -> vector<16x256xf32>
    %415 = vector.extract_strided_slice %0 {offsets = [3, 0], sizes = [1, 256], strides = [1, 1]} : vector<9x256xf32> to vector<1x256xf32>
    %416 = vector.broadcast %415 : vector<1x256xf32> to vector<16x256xf32>
    %417 = arith.mulf %414, %416 : vector<16x256xf32>
    %418 = vector.extract_strided_slice %0 {offsets = [4, 0], sizes = [1, 256], strides = [1, 1]} : vector<9x256xf32> to vector<1x256xf32>
    %419 = vector.broadcast %418 : vector<1x256xf32> to vector<16x256xf32>
    %420 = arith.mulf %401, %419 : vector<16x256xf32>
    %c255_i32_148 = arith.constant 255 : i32
    %421 = tpu.dynamic_rotate %401 by %c255_i32_148 dim 1 : vector<16x256xf32>, i32 -> vector<16x256xf32>
    %422 = vector.extract_strided_slice %0 {offsets = [5, 0], sizes = [1, 256], strides = [1, 1]} : vector<9x256xf32> to vector<1x256xf32>
    %423 = vector.broadcast %422 : vector<1x256xf32> to vector<16x256xf32>
    %424 = arith.mulf %421, %423 : vector<16x256xf32>
    %c241_i32_149 = arith.constant 241 : i32
    %425 = tpu.dynamic_rotate %401 by %c241_i32_149 dim 1 : vector<16x256xf32>, i32 -> vector<16x256xf32>
    %426 = vector.extract_strided_slice %0 {offsets = [6, 0], sizes = [1, 256], strides = [1, 1]} : vector<9x256xf32> to vector<1x256xf32>
    %427 = vector.broadcast %426 : vector<1x256xf32> to vector<16x256xf32>
    %428 = arith.mulf %425, %427 : vector<16x256xf32>
    %c240_i32_150 = arith.constant 240 : i32
    %429 = tpu.dynamic_rotate %401 by %c240_i32_150 dim 1 : vector<16x256xf32>, i32 -> vector<16x256xf32>
    %430 = vector.extract_strided_slice %0 {offsets = [7, 0], sizes = [1, 256], strides = [1, 1]} : vector<9x256xf32> to vector<1x256xf32>
    %431 = vector.broadcast %430 : vector<1x256xf32> to vector<16x256xf32>
    %432 = arith.mulf %429, %431 : vector<16x256xf32>
    %c239_i32_151 = arith.constant 239 : i32
    %433 = tpu.dynamic_rotate %401 by %c239_i32_151 dim 1 : vector<16x256xf32>, i32 -> vector<16x256xf32>
    %434 = vector.extract_strided_slice %0 {offsets = [8, 0], sizes = [1, 256], strides = [1, 1]} : vector<9x256xf32> to vector<1x256xf32>
    %435 = vector.broadcast %434 : vector<1x256xf32> to vector<16x256xf32>
    %436 = arith.mulf %433, %435 : vector<16x256xf32>
    %437 = tpu.concatenate %405, %409, %413, %417, %420, %424, %428, %432, %436 in 0 : vector<16x256xf32>, vector<16x256xf32>, vector<16x256xf32>, vector<16x256xf32>, vector<16x256xf32>, vector<16x256xf32>, vector<16x256xf32>, vector<16x256xf32>, vector<16x256xf32> -> vector<144x256xf32>
    %438 = arith.truncf %437 : vector<144x256xf32> to vector<144x256xbf16>
    %c0_152 = arith.constant 0 : index
    %c0_153 = arith.constant 0 : index
    %439 = vector.load %arg33[%c0_152, %c0_153] : memref<16x144xbf16, #tpu.memory_space<vmem>>, vector<16x144xbf16>
    %cst_154 = arith.constant dense<0.000000e+00> : vector<16x256xf32>
    %440 = tpu.matmul %439, %438, %cst_154 {dimension_numbers = #tpu.dot_dimension_numbers<[1], [0], [0], [1], [0, 0, 1, 1], [], []>} : vector<16x144xbf16>, vector<144x256xbf16>, vector<16x256xf32> -> vector<16x256xf32>
    %c0_155 = arith.constant 0 : index
    %c0_156 = arith.constant 0 : index
    %441 = vector.load %arg34[%c0_155, %c0_156] : memref<16x1xf32, #tpu.memory_space<vmem>>, vector<16x1xf32>
    %442 = vector.broadcast %441 : vector<16x1xf32> to vector<16x256xf32>
    %443 = arith.addf %440, %442 : vector<16x256xf32>
    %444 = arith.addf %443, %240 : vector<16x256xf32>
    %c0_157 = arith.constant 0 : index
    %c0_158 = arith.constant 0 : index
    %445 = vector.load %arg35[%c0_157, %c0_158] : memref<29x16xbf16, #tpu.memory_space<vmem>>, vector<29x16xbf16>
    %446 = arith.truncf %444 : vector<16x256xf32> to vector<16x256xbf16>
    %cst_159 = arith.constant dense<0.000000e+00> : vector<29x256xf32>
    %447 = tpu.matmul %445, %446, %cst_159 {dimension_numbers = #tpu.dot_dimension_numbers<[1], [0], [0], [1], [0, 0, 1, 1], [], []>} : vector<29x16xbf16>, vector<16x256xbf16>, vector<29x256xf32> -> vector<29x256xf32>
    %c0_160 = arith.constant 0 : index
    %c0_161 = arith.constant 0 : index
    %448 = vector.load %arg36[%c0_160, %c0_161] : memref<29x1xf32, #tpu.memory_space<vmem>>, vector<29x1xf32>
    %449 = vector.broadcast %448 : vector<29x1xf32> to vector<29x256xf32>
    %450 = arith.addf %447, %449 : vector<29x256xf32>
    %cst_162 = arith.constant 0.000000e+00 : f32
    %451 = vector.broadcast %cst_162 : f32 to vector<29x256xf32>
    %452 = arith.maximumf %450, %451 : vector<29x256xf32>
    %c0_163 = arith.constant 0 : index
    %c0_164 = arith.constant 0 : index
    %453 = vector.load %arg37[%c0_163, %c0_164] : memref<32x8xbf16, #tpu.memory_space<vmem>>, vector<32x8xbf16>
    %454 = arith.truncf %2 : vector<8x256xf32> to vector<8x256xbf16>
    %cst_165 = arith.constant dense<0.000000e+00> : vector<32x256xf32>
    %455 = tpu.matmul %453, %454, %cst_165 {dimension_numbers = #tpu.dot_dimension_numbers<[1], [0], [0], [1], [0, 0, 1, 1], [], []>} : vector<32x8xbf16>, vector<8x256xbf16>, vector<32x256xf32> -> vector<32x256xf32>
    %c0_166 = arith.constant 0 : index
    %c0_167 = arith.constant 0 : index
    %456 = vector.load %arg38[%c0_166, %c0_167] : memref<32x29xbf16, #tpu.memory_space<vmem>>, vector<32x29xbf16>
    %457 = arith.truncf %452 : vector<29x256xf32> to vector<29x256xbf16>
    %cst_168 = arith.constant dense<0.000000e+00> : vector<32x256xf32>
    %458 = tpu.matmul %456, %457, %cst_168 {dimension_numbers = #tpu.dot_dimension_numbers<[1], [0], [0], [1], [0, 0, 1, 1], [], []>} : vector<32x29xbf16>, vector<29x256xbf16>, vector<32x256xf32> -> vector<32x256xf32>
    %459 = arith.addf %455, %458 : vector<32x256xf32>
    %c0_169 = arith.constant 0 : index
    %c0_170 = arith.constant 0 : index
    %460 = vector.load %arg39[%c0_169, %c0_170] : memref<32x1xf32, #tpu.memory_space<vmem>>, vector<32x1xf32>
    %461 = vector.broadcast %460 : vector<32x1xf32> to vector<32x256xf32>
    %462 = arith.addf %459, %461 : vector<32x256xf32>
    %c0_171 = arith.constant 0 : index
    %c0_172 = arith.constant 0 : index
    %c0_173 = arith.constant 0 : index
    %463 = vector.load %arg40[%c0_171, %c0_172, %c0_173] : memref<1x32x256xf32, #tpu.memory_space<vmem>>, vector<1x32x256xf32>
    %464 = vector.shape_cast %463 : vector<1x32x256xf32> to vector<32x256xf32>
    %465 = vector.shape_cast %462 : vector<32x256xf32> to vector<1x32x256xf32>
    tpu.vector_store %arg40[%c0_171, %c0_172, %c0_173], %465 {strides = array<i32>} : memref<1x32x256xf32, #tpu.memory_space<vmem>>, vector<1x32x256xf32>,
    return
  }
  func.func @transform_0(%arg0: i32) -> (i32, i32) {
    %c0_i32 = arith.constant 0 : i32
    %c0_i32_0 = arith.constant 0 : i32
    %c0_i32_1 = arith.constant 0 : i32
    return %c0_i32, %c0_i32_0 : i32, i32
  }
  func.func @transform_1(%arg0: i32) -> (i32, i32, i32) {
    %c0_i32 = arith.constant 0 : i32
    %c0_i32_0 = arith.constant 0 : i32
    %c0_i32_1 = arith.constant 0 : i32
    return %arg0, %c0_i32, %c0_i32_0 : i32, i32, i32
  }
  func.func @transform_2(%arg0: i32) -> (i32, i32) {
    %c0_i32 = arith.constant 0 : i32
    %c0_i32_0 = arith.constant 0 : i32
    %c0_i32_1 = arith.constant 0 : i32
    return %c0_i32, %c0_i32_0 : i32, i32
  }
  func.func @transform_3(%arg0: i32) -> (i32, i32) {
    %c0_i32 = arith.constant 0 : i32
    %c0_i32_0 = arith.constant 0 : i32
    %c0_i32_1 = arith.constant 0 : i32
    return %c0_i32, %c0_i32_0 : i32, i32
  }
  func.func @transform_4(%arg0: i32) -> (i32, i32) {
    %c0_i32 = arith.constant 0 : i32
    %c0_i32_0 = arith.constant 0 : i32
    %c0_i32_1 = arith.constant 0 : i32
    return %c0_i32, %c0_i32_0 : i32, i32
  }
  func.func @transform_5(%arg0: i32) -> (i32, i32) {
    %c0_i32 = arith.constant 0 : i32
    %c0_i32_0 = arith.constant 0 : i32
    %c0_i32_1 = arith.constant 0 : i32
    return %c0_i32, %c0_i32_0 : i32, i32
  }
  func.func @transform_6(%arg0: i32) -> (i32, i32) {
    %c0_i32 = arith.constant 0 : i32
    %c0_i32_0 = arith.constant 0 : i32
    %c0_i32_1 = arith.constant 0 : i32
    return %c0_i32, %c0_i32_0 : i32, i32
  }
  func.func @transform_7(%arg0: i32) -> (i32, i32) {
    %c0_i32 = arith.constant 0 : i32
    %c0_i32_0 = arith.constant 0 : i32
    %c0_i32_1 = arith.constant 0 : i32
    return %c0_i32, %c0_i32_0 : i32, i32
  }
  func.func @transform_8(%arg0: i32) -> (i32, i32) {
    %c0_i32 = arith.constant 0 : i32
    %c0_i32_0 = arith.constant 0 : i32
    %c0_i32_1 = arith.constant 0 : i32
    return %c0_i32, %c0_i32_0 : i32, i32
  }
  func.func @transform_9(%arg0: i32) -> (i32, i32) {
    %c0_i32 = arith.constant 0 : i32
    %c0_i32_0 = arith.constant 0 : i32
    %c0_i32_1 = arith.constant 0 : i32
    return %c0_i32, %c0_i32_0 : i32, i32
  }
  func.func @transform_10(%arg0: i32) -> (i32, i32) {
    %c0_i32 = arith.constant 0 : i32
    %c0_i32_0 = arith.constant 0 : i32
    %c0_i32_1 = arith.constant 0 : i32
    return %c0_i32, %c0_i32_0 : i32, i32
  }
  func.func @transform_11(%arg0: i32) -> (i32, i32) {
    %c0_i32 = arith.constant 0 : i32
    %c0_i32_0 = arith.constant 0 : i32
    %c0_i32_1 = arith.constant 0 : i32
    return %c0_i32, %c0_i32_0 : i32, i32
  }
  func.func @transform_12(%arg0: i32) -> (i32, i32) {
    %c0_i32 = arith.constant 0 : i32
    %c0_i32_0 = arith.constant 0 : i32
    %c0_i32_1 = arith.constant 0 : i32
    return %c0_i32, %c0_i32_0 : i32, i32
  }
  func.func @transform_13(%arg0: i32) -> (i32, i32) {
    %c0_i32 = arith.constant 0 : i32
    %c0_i32_0 = arith.constant 0 : i32
    %c0_i32_1 = arith.constant 0 : i32
    return %c0_i32, %c0_i32_0 : i32, i32
  }
  func.func @transform_14(%arg0: i32) -> (i32, i32) {
    %c0_i32 = arith.constant 0 : i32
    %c0_i32_0 = arith.constant 0 : i32
    %c0_i32_1 = arith.constant 0 : i32
    return %c0_i32, %c0_i32_0 : i32, i32
  }
  func.func @transform_15(%arg0: i32) -> (i32, i32) {
    %c0_i32 = arith.constant 0 : i32
    %c0_i32_0 = arith.constant 0 : i32
    %c0_i32_1 = arith.constant 0 : i32
    return %c0_i32, %c0_i32_0 : i32, i32
  }
  func.func @transform_16(%arg0: i32) -> (i32, i32) {
    %c0_i32 = arith.constant 0 : i32
    %c0_i32_0 = arith.constant 0 : i32
    %c0_i32_1 = arith.constant 0 : i32
    return %c0_i32, %c0_i32_0 : i32, i32
  }
  func.func @transform_17(%arg0: i32) -> (i32, i32) {
    %c0_i32 = arith.constant 0 : i32
    %c0_i32_0 = arith.constant 0 : i32
    %c0_i32_1 = arith.constant 0 : i32
    return %c0_i32, %c0_i32_0 : i32, i32
  }
  func.func @transform_18(%arg0: i32) -> (i32, i32) {
    %c0_i32 = arith.constant 0 : i32
    %c0_i32_0 = arith.constant 0 : i32
    %c0_i32_1 = arith.constant 0 : i32
    return %c0_i32, %c0_i32_0 : i32, i32
  }
  func.func @transform_19(%arg0: i32) -> (i32, i32) {
    %c0_i32 = arith.constant 0 : i32
    %c0_i32_0 = arith.constant 0 : i32
    %c0_i32_1 = arith.constant 0 : i32
    return %c0_i32, %c0_i32_0 : i32, i32
  }
  func.func @transform_20(%arg0: i32) -> (i32, i32) {
    %c0_i32 = arith.constant 0 : i32
    %c0_i32_0 = arith.constant 0 : i32
    %c0_i32_1 = arith.constant 0 : i32
    return %c0_i32, %c0_i32_0 : i32, i32
  }
  func.func @transform_21(%arg0: i32) -> (i32, i32) {
    %c0_i32 = arith.constant 0 : i32
    %c0_i32_0 = arith.constant 0 : i32
    %c0_i32_1 = arith.constant 0 : i32
    return %c0_i32, %c0_i32_0 : i32, i32
  }
  func.func @transform_22(%arg0: i32) -> (i32, i32) {
    %c0_i32 = arith.constant 0 : i32
    %c0_i32_0 = arith.constant 0 : i32
    %c0_i32_1 = arith.constant 0 : i32
    return %c0_i32, %c0_i32_0 : i32, i32
  }
  func.func @transform_23(%arg0: i32) -> (i32, i32) {
    %c0_i32 = arith.constant 0 : i32
    %c0_i32_0 = arith.constant 0 : i32
    %c0_i32_1 = arith.constant 0 : i32
    return %c0_i32, %c0_i32_0 : i32, i32
  }
  func.func @transform_24(%arg0: i32) -> (i32, i32) {
    %c0_i32 = arith.constant 0 : i32
    %c0_i32_0 = arith.constant 0 : i32
    %c0_i32_1 = arith.constant 0 : i32
    return %c0_i32, %c0_i32_0 : i32, i32
  }
  func.func @transform_25(%arg0: i32) -> (i32, i32) {
    %c0_i32 = arith.constant 0 : i32
    %c0_i32_0 = arith.constant 0 : i32
    %c0_i32_1 = arith.constant 0 : i32
    return %c0_i32, %c0_i32_0 : i32, i32
  }
  func.func @transform_26(%arg0: i32) -> (i32, i32) {
    %c0_i32 = arith.constant 0 : i32
    %c0_i32_0 = arith.constant 0 : i32
    %c0_i32_1 = arith.constant 0 : i32
    return %c0_i32, %c0_i32_0 : i32, i32
  }
  func.func @transform_27(%arg0: i32) -> (i32, i32) {
    %c0_i32 = arith.constant 0 : i32
    %c0_i32_0 = arith.constant 0 : i32
    %c0_i32_1 = arith.constant 0 : i32
    return %c0_i32, %c0_i32_0 : i32, i32
  }
  func.func @transform_28(%arg0: i32) -> (i32, i32) {
    %c0_i32 = arith.constant 0 : i32
    %c0_i32_0 = arith.constant 0 : i32
    %c0_i32_1 = arith.constant 0 : i32
    return %c0_i32, %c0_i32_0 : i32, i32
  }
  func.func @transform_29(%arg0: i32) -> (i32, i32) {
    %c0_i32 = arith.constant 0 : i32
    %c0_i32_0 = arith.constant 0 : i32
    %c0_i32_1 = arith.constant 0 : i32
    return %c0_i32, %c0_i32_0 : i32, i32
  }
  func.func @transform_30(%arg0: i32) -> (i32, i32) {
    %c0_i32 = arith.constant 0 : i32
    %c0_i32_0 = arith.constant 0 : i32
    %c0_i32_1 = arith.constant 0 : i32
    return %c0_i32, %c0_i32_0 : i32, i32
  }
  func.func @transform_31(%arg0: i32) -> (i32, i32) {
    %c0_i32 = arith.constant 0 : i32
    %c0_i32_0 = arith.constant 0 : i32
    %c0_i32_1 = arith.constant 0 : i32
    return %c0_i32, %c0_i32_0 : i32, i32
  }
  func.func @transform_32(%arg0: i32) -> (i32, i32) {
    %c0_i32 = arith.constant 0 : i32
    %c0_i32_0 = arith.constant 0 : i32
    %c0_i32_1 = arith.constant 0 : i32
    return %c0_i32, %c0_i32_0 : i32, i32
  }
  func.func @transform_33(%arg0: i32) -> (i32, i32) {
    %c0_i32 = arith.constant 0 : i32
    %c0_i32_0 = arith.constant 0 : i32
    %c0_i32_1 = arith.constant 0 : i32
    return %c0_i32, %c0_i32_0 : i32, i32
  }
  func.func @transform_34(%arg0: i32) -> (i32, i32) {
    %c0_i32 = arith.constant 0 : i32
    %c0_i32_0 = arith.constant 0 : i32
    %c0_i32_1 = arith.constant 0 : i32
    return %c0_i32, %c0_i32_0 : i32, i32
  }
  func.func @transform_35(%arg0: i32) -> (i32, i32) {
    %c0_i32 = arith.constant 0 : i32
    %c0_i32_0 = arith.constant 0 : i32
    %c0_i32_1 = arith.constant 0 : i32
    return %c0_i32, %c0_i32_0 : i32, i32
  }
  func.func @transform_36(%arg0: i32) -> (i32, i32) {
    %c0_i32 = arith.constant 0 : i32
    %c0_i32_0 = arith.constant 0 : i32
    %c0_i32_1 = arith.constant 0 : i32
    return %c0_i32, %c0_i32_0 : i32, i32
  }
  func.func @transform_37(%arg0: i32) -> (i32, i32) {
    %c0_i32 = arith.constant 0 : i32
    %c0_i32_0 = arith.constant 0 : i32
    %c0_i32_1 = arith.constant 0 : i32
    return %c0_i32, %c0_i32_0 : i32, i32
  }
  func.func @transform_38(%arg0: i32) -> (i32, i32) {
    %c0_i32 = arith.constant 0 : i32
    %c0_i32_0 = arith.constant 0 : i32
    %c0_i32_1 = arith.constant 0 : i32
    return %c0_i32, %c0_i32_0 : i32, i32
  }
  func.func @transform_39(%arg0: i32) -> (i32, i32, i32) {
    %c0_i32 = arith.constant 0 : i32
    %c0_i32_0 = arith.constant 0 : i32
    %c0_i32_1 = arith.constant 0 : i32
    return %arg0, %c0_i32, %c0_i32_0 : i32, i32, i32
  }
}

</mosaic_0001>

<bundles_post_ra>
// kernel: _lambda_.1
= control target key start
LH: loop header
LB: loop body
LE: loop exit
PB: predicated region body
PF: predicated region fallthrough
CT: control target
= control target key end

     0   :  { %s4250_s6 = smov 1   ;;  %s4251_s10 = smov 2   ;;  %s5807_s0 = inlined_call_operand.smem [shape: u32[40], index: -1, kind: input, shape index: {}] }
   0x1   :  { %s4320_s5 = sld [smem:[%s5807_s0]]   ;;  %s4252_s14 = smov 3  }
   0x2   :  { %s4325_s9 = sld [smem:[%s5807_s0 + %s4250_s6]]   ;;  %s4253_s18 = smov 4  }
   0x3   :  { %s4330_s13 = sld [smem:[%s5807_s0 + %s4251_s10]]   ;;  %s4254_s22 = smov 5  }
   0x4   :  { %s4335_s17 = sld [smem:[%s5807_s0 + %s4252_s14]]   ;;  %s4255_s26 = smov 6  }
   0x5   :  { %s4340_s21 = sld [smem:[%s5807_s0 + %s4253_s18]]   ;;  %s4256_s30 = smov 7  }
   0x6   :  { %s4345_s25 = sld [smem:[%s5807_s0 + %s4254_s22]]   ;;  %s4257_s4 = smov 8  }
   0x7   :  { %5840 = sst [smem:[#allocation33_spill]] %s4320_s5  ;;  %s4258_s10 = smov 9  }
   0x8   :  { %5841 = sst [smem:[#allocation34_spill]] %s4325_s9  ;;  %s4259_s15 = smov 10  }
   0x9   :  { %s4350_s29 = sld [smem:[%s5807_s0 + %s4255_s26]]   ;;  %s4260_s20 = smov 11  }
   0xa   :  { %s4355_s3 = sld [smem:[%s5807_s0 + %s4256_s30]]   ;;  %s4261_s26 = smov 12  }
   0xb   :  { %s4360_s8 = sld [smem:[%s5807_s0 + %s4257_s4]]   ;;  %s4262_s1 = smov 16  }
   0xc   :  { %s3532_s14 = sld [smem:[%s5807_s0 + %s4258_s10]]   ;;  %s4263_s7 = smov 17  }
   0xd   :  { %s4368_s19 = sld [smem:[%s5807_s0 + %s4259_s15]]   ;;  %s4264_s15 = smov 18  }
   0xe   :  { %s4373_s24 = sld [smem:[%s5807_s0 + %s4260_s20]]   ;;  %s4265_s22 = smov 19  }
   0xf   :  { %s4378_s30 = sld [smem:[%s5807_s0 + %s4261_s26]]   ;;  %s4266_s28 = smov 20  }
  0x10   :  { %s4383_s6 = sld [smem:[%s5807_s0 + %s4262_s1]]   ;;  %s4286_s1 = smov 14  }
  0x11   :  { %s4388_s12 = sld [smem:[%s5807_s0 + %s4263_s7]]   ;;  %s4267_s7 = smov 21  }
  0x12   :  { %s4393_s20 = sld [smem:[%s5807_s0 + %s4264_s15]]   ;;  %v84_v0 = vstv %s3532_s14  ;;  %s4268_s14 = smov 22  }
  0x13   :  { %s4398_s27 = sld [smem:[%s5807_s0 + %s4265_s22]]   ;;  %85 = vst [vmem:[#allocation2] sm:$0x1] %v84_v0  ;;  %s4269_s22 = smov 23  }
  0x14   :  { %s4403_s4 = sld [smem:[%s5807_s0 + %s4266_s28]]   ;;  %s4270_s28 = smov 24  }
  0x15   :  { %s4408_s15 = sld [smem:[%s5807_s0 + %s4267_s7]]   ;;  %s4271_s7 = smov 25  }
  0x16   :  { %s4413_s23 = sld [smem:[%s5807_s0 + %s4268_s14]]   ;;  %s4272_s14 = smov 26  }
  0x17   :  { %s4287_s5 = smov 15  }
  0x18   :  { %5842 = sst [smem:[#allocation35_spill]] %s4393_s20  ;;  %s4273_s20 = smov 27  }
  0x19   :  { %5843 = sst [smem:[#allocation36_spill]] %s4398_s27 }
  0x1a   :  { %5844 = sst [smem:[#allocation37_spill]] %s4403_s4 }
  0x1b   :  { %5845 = sst [smem:[#allocation38_spill]] %s4408_s15 }
  0x1c   :  { %5846 = sst [smem:[#allocation39_spill]] %s4413_s23 }
  0x1d   :  { %s4418_s27 = sld [smem:[%s5807_s0 + %s4269_s22]]  }
  0x1e   :  { %s4423_s4 = sld [smem:[%s5807_s0 + %s4270_s28]]   ;;  %s4274_s28 = smov 28  }
  0x1f   :  { %s4428_s15 = sld [smem:[%s5807_s0 + %s4271_s7]]   ;;  %s4275_s7 = smov 29  }
  0x20   :  { %s4433_s23 = sld [smem:[%s5807_s0 + %s4272_s14]]   ;;  %s4276_s14 = smov 30  }
  0x21   :  { %s3538_s11 = sld [smem:[%s5807_s0 + %s4287_s5]]  }
  0x23   :  { %5847 = sst [smem:[#allocation40_spill]] %s4418_s27 }
  0x24   :  { %5848 = sst [smem:[#allocation41_spill]] %s4423_s4 }
  0x25   :  { %5849 = sst [smem:[#allocation42_spill]] %s4428_s15 }
  0x26   :  { %5850 = sst [smem:[#allocation43_spill]] %s4433_s23 }
  0x27   :  { %s4438_s27 = sld [smem:[%s5807_s0 + %s4273_s20]]   ;;  %s4277_s20 = smov 32   ;;  %v90_v3 = vstv %s3538_s11 }
  0x28   :  { %s4443_s4 = sld [smem:[%s5807_s0 + %s4274_s28]]   ;;  %s4278_s28 = smov 33   ;;  %91 = vst [vmem:[#allocation5] sm:$0x1] %v90_v3 }
  0x29   :  { %s4448_s15 = sld [smem:[%s5807_s0 + %s4275_s7]]   ;;  %s4279_s7 = smov 34  }
  0x2a   :  { %s4453_s23 = sld [smem:[%s5807_s0 + %s4276_s14]]   ;;  %s4280_s14 = smov 35  }
  0x2d   :  { %5851 = sst [smem:[#allocation44_spill]] %s4438_s27 }
  0x2e   :  { %5852 = sst [smem:[#allocation45_spill]] %s4443_s4 }
  0x2f   :  { %5853 = sst [smem:[#allocation46_spill]] %s4448_s15 }
  0x30   :  { %5854 = sst [smem:[#allocation47_spill]] %s4453_s23 }
  0x31   :  { %s4458_s27 = sld [smem:[%s5807_s0 + %s4277_s20]]   ;;  %s4281_s20 = smov 36  }
  0x32   :  { %s4463_s4 = sld [smem:[%s5807_s0 + %s4278_s28]]   ;;  %s4282_s28 = smov 37  }
  0x33   :  { %s4468_s15 = sld [smem:[%s5807_s0 + %s4279_s7]]   ;;  %s4283_s7 = smov 38  }
  0x34   :  { %s4473_s23 = sld [smem:[%s5807_s0 + %s4280_s14]]   ;;  %s4284_s14 = smov 39  }
  0x37   :  { %5855 = sst [smem:[#allocation48_spill]] %s4458_s27 }
  0x38   :  { %5856 = sst [smem:[#allocation49_spill]] %s4463_s4 }
  0x39   :  { %5857 = sst [smem:[#allocation50_spill]] %s4468_s15 }
  0x3a   :  { %5858 = sst [smem:[#allocation51_spill]] %s4473_s23 }
  0x3b   :  { %s4478_s27 = sld [smem:[%s5807_s0 + %s4281_s20]]   ;;  %s4285_s20 = smov 13  }
  0x3c   :  { %s4483_s4 = sld [smem:[%s5807_s0 + %s4282_s28]]  }
  0x3d   :  { %s4488_s15 = sld [smem:[%s5807_s0 + %s4283_s7]]  }
  0x3e   :  { %s4493_s23 = sld [smem:[%s5807_s0 + %s4284_s14]]  }
  0x41   :  { %5859 = sst [smem:[#allocation52_spill]] %s4478_s27 }
  0x42   :  { %5860 = sst [smem:[#allocation53_spill]] %s4483_s4 }
  0x43   :  { %5861 = sst [smem:[#allocation54_spill]] %s4488_s15  ;;  %s4288_s15 = smov 31  }
  0x44   :  { %s3536_s27 = sld [smem:[%s5807_s0 + %s4285_s20]]  }
  0x45   :  { %s3537_s4 = sld [smem:[%s5807_s0 + %s4286_s1]]  }
  0x46   :  { %s3554_s14 = sld [smem:[%s5807_s0 + %s4288_s15]]  }
  0x4a   :  { %v86_v1 = vstv %s3536_s27 }
  0x4b   :  { %87 = vst [vmem:[#allocation3] sm:$0x1] %v86_v1  ;;  %v88_v2 = vstv %s3537_s4 }
  0x4c   :  { %89 = vst [vmem:[#allocation4] sm:$0x1] %v88_v2  ;;  %v92_v4 = vstv %s3554_s14 }
  0x4d   :  { %93 = vst [vmem:[#allocation6] sm:$0x1] %v92_v4 }
  0x4e   :  { %94 = vsyncpa [#allocation8], 0 }
  0x4f   :  { %95 = vsyncpa [#allocation10], 0 }
  0x50   :  { %96 = vsyncpa [#allocation13], 0 }
  0x51   :  { %97 = vsyncpa [#allocation16], 0 }
  0x52   :  { %98 = vsyncpa [#allocation19], 0 }
  0x53   :  { %99 = vsyncpa [#allocation22], 0 }
  0x54   :  { %100 = vsyncpa [#allocation25], 0  ;;  %s4507_s5 = smov 0  }
  0x55 LB: > { %s4289_s0 = smov [#allocation9]   ;;  %s4513_s27 = sadd.s32 4294967295, %s4248_s5   ;;  %s4248_s5 = sphi %s4507_s5, %s106_s5  }
  0x56   : > { %s988_s9 = sshll.u32 %s4289_s0, 4  ;;  %p3565_p0 = scmp.ge.s32.totalorder %s4248_s5, 1  ;;  %s4518_s9 = int_to_ptr.vmem [resolvable:$true] %s988_s9 }
  0x57   : > { %p961_p1 = scmp.lt.s32.totalorder %s4248_s5, 3  ;;  %p5825_p2 = scmp.eq.s32.totalorder %s4513_s27, 0 }
  0x58   : > { %s4290_s15 = smov [#allocation12]   ;;  %s4291_s20 = smov [#allocation15]  }
  0x59   : > { %p4520_p3 = pnand %p3565_p0, %p961_p1  ;;  %s1010_s18 = sshll.u32 %s4290_s15, 4  ;;  %s4526_s18 = int_to_ptr.vmem [resolvable:$true] %s1010_s18 }
  0x5a   : > { %s1032_s22 = sshll.u32 %s4291_s20, 4  ;;  %s4292_s1 = smov [#allocation18]   ;;  %s4534_s22 = int_to_ptr.vmem [resolvable:$true] %s1032_s22 }
  0x5b   : > { %s5862_s4 = scalar_select %p4520_p3, 1, 0 }
  0x5c   : > { %p3691_p4 = pneg %p4520_p3  ;;  %s1057_s28 = sshll.u32 %s4292_s1, 4  ;;  %s4536_s28 = int_to_ptr.vmem [resolvable:$true] %s1057_s28 }
  0x5d   : > { %s3878_s2 = scalar_lea.hbm %s4335_s17, 128 }
  0x5e   : > { %p4530_p5 = pnand %p5825_p2, %p3691_p4  ;;  %p3879_p6 = scmp.ne.s32.totalorder %s4335_s17, %s3878_s2 }
  0x5f   : > { %p3885_p10 = scmp.lt.u32.totalorder %s3878_s2, %s4335_s17 }
  0x60   : > { %p4542_p7 = pneg %p4530_p5 }
  0x62   : > { %p3881_p8 = pnand %p4542_p7, %p3879_p6 }
  0x64   : > { %p3882_p9 = pneg %p3881_p8 }
  0x66   : > { %p3887_p11 = pnand %p3885_p10, %p3882_p9 }
  0x68   : > { %3890 = shalt.err (!%p3887_p11)
}
  0x69   : > { %s3891_s7 = scalar_lea.vmem %s4518_s9, 128  ;;  %p3899_p1 = scmp.lt.s32.totalorder %s4518_s9, %s4518_s9 }
  0x6a   : > { %p3892_p12 = scmp.ne.s32.totalorder %s4518_s9, %s3891_s7  ;;  %p3900_p4 = scmp.lt.s32.totalorder %s3891_s7, %s3891_s7 }
  0x6c   : > { %p3894_p13 = pnand %p3892_p12, %p4542_p7  ;;  %p3901_p2 = por %p3900_p4, %p3899_p1 }
  0x6e   : > { %p3895_p0 = pneg %p3894_p13 }
  0x70   : > { %p3902_p3 = pnand %p3901_p2, %p3895_p0 }
  0x72   : > { %3905 = shalt.err (!%p3902_p3)
}
  0x73   : > { %3697 = dma.hbm_to_vmem [thread:$0]  (!%p4530_p5), %s4335_s17, 128, %s4518_s9, [#allocation10]  }
  0x74   : > { %s3906_s11 = scalar_lea.hbm %s4345_s25, 128 }
  0x75   : > { %p3907_p6 = scmp.ne.s32.totalorder %s4345_s25, %s3906_s11  ;;  %p3913_p10 = scmp.lt.u32.totalorder %s3906_s11, %s4345_s25 }
  0x77   : > { %p3909_p8 = pnand %p3907_p6, %p4542_p7 }
  0x79   : > { %p3910_p9 = pneg %p3909_p8 }
  0x7b   : > { %p3915_p11 = pnand %p3913_p10, %p3910_p9 }
  0x7d   : > { %3918 = shalt.err (!%p3915_p11)
}
  0x7e   : > { %s3919_s16 = scalar_lea.vmem %s4526_s18, 128  ;;  %p3927_p13 = scmp.lt.s32.totalorder %s4526_s18, %s4526_s18 }
  0x7f   : > { %p3920_p2 = scmp.ne.s32.totalorder %s4526_s18, %s3919_s16  ;;  %p3928_p0 = scmp.lt.s32.totalorder %s3919_s16, %s3919_s16 }
  0x81   : > { %p3922_p3 = pnand %p3920_p2, %p4542_p7  ;;  %p3929_p1 = por %p3928_p0, %p3927_p13 }
  0x83   : > { %p3923_p12 = pneg %p3922_p3 }
  0x85   : > { %p3930_p4 = pnand %p3929_p1, %p3923_p12 }
  0x87   : > { %3933 = shalt.err (!%p3930_p4)
}
  0x88   : > { %3703 = dma.hbm_to_vmem [thread:$0]  (!%p4530_p5), %s4345_s25, 128, %s4526_s18, [#allocation13]  }
  0x89   : > { %s3934_s14 = scalar_lea.hbm %s4355_s3, 128 }
  0x8a   : > { %p3935_p6 = scmp.ne.s32.totalorder %s4355_s3, %s3934_s14  ;;  %p3941_p10 = scmp.lt.u32.totalorder %s3934_s14, %s4355_s3 }
  0x8c   : > { %p3937_p8 = pnand %p3935_p6, %p4542_p7 }
  0x8e   : > { %p3938_p9 = pneg %p3937_p8 }
  0x90   : > { %p3943_p11 = pnand %p3941_p10, %p3938_p9 }
  0x92   : > { %3946 = shalt.err (!%p3943_p11)
}
  0x93   : > { %s3947_s0 = scalar_lea.vmem %s4534_s22, 128  ;;  %p3955_p13 = scmp.lt.s32.totalorder %s4534_s22, %s4534_s22 }
  0x94   : > { %p3948_p2 = scmp.ne.s32.totalorder %s4534_s22, %s3947_s0  ;;  %p3956_p0 = scmp.lt.s32.totalorder %s3947_s0, %s3947_s0 }
  0x96   : > { %p3950_p3 = pnand %p3948_p2, %p4542_p7  ;;  %p3957_p1 = por %p3956_p0, %p3955_p13 }
  0x98   : > { %p3951_p12 = pneg %p3950_p3 }
  0x9a   : > { %p3958_p4 = pnand %p3957_p1, %p3951_p12 }
  0x9c   : > { %3961 = shalt.err (!%p3958_p4)
}
  0x9d   : > { %3709 = dma.hbm_to_vmem [thread:$0]  (!%p4530_p5), %s4355_s3, 128, %s4534_s22, [#allocation16]  }
  0x9e   : > { %s3962_s9 = scalar_lea.hbm %s4368_s19, 128 }
  0x9f   : > { %p3963_p6 = scmp.ne.s32.totalorder %s4368_s19, %s3962_s9  ;;  %p3969_p10 = scmp.lt.u32.totalorder %s3962_s9, %s4368_s19 }
  0xa1   : > { %p3965_p8 = pnand %p3963_p6, %p4542_p7 }
  0xa3   : > { %p3966_p9 = pneg %p3965_p8 }
  0xa5   : > { %p3971_p11 = pnand %p3969_p10, %p3966_p9 }
  0xa7   : > { %3974 = shalt.err (!%p3971_p11)
}
  0xa8   : > { %s3975_s15 = scalar_lea.vmem %s4536_s28, 128  ;;  %p3983_p13 = scmp.lt.s32.totalorder %s4536_s28, %s4536_s28 }
  0xa9   : > { %p3976_p2 = scmp.ne.s32.totalorder %s4536_s28, %s3975_s15  ;;  %p3984_p0 = scmp.lt.s32.totalorder %s3975_s15, %s3975_s15 }
  0xab   : > { %p3978_p3 = pnand %p3976_p2, %p4542_p7  ;;  %p3985_p1 = por %p3984_p0, %p3983_p13 }
  0xad   : > { %p3979_p12 = pneg %p3978_p3 }
  0xaf   : > { %p3986_p4 = pnand %p3985_p1, %p3979_p12 }
  0xb1   : > { %3989 = shalt.err (!%p3986_p4)
}
  0xb2   : > { %3715 = dma.hbm_to_vmem [thread:$0]  (!%p4530_p5), %s4368_s19, 128, %s4536_s28, [#allocation19]  }
  0xb3   : > { %s4293_s18 = smov [#allocation21]   ;;  %s4294_s22 = smov [#allocation7]  }
  0xb4   : > { %s1079_s20 = sshll.u32 %s4293_s18, 4  ;;  %s977_s1 = sshll.u32 %s4294_s22, 4  ;;  %s1080_s20 = int_to_ptr.vmem [resolvable:$true] %s1079_s20  ;;  %s978_s1 = int_to_ptr.vmem [resolvable:$true] %s977_s1 }
  0xb5   : > { %s3990_s2 = scalar_lea.hbm %s4378_s30, 128 }
  0xb6   : > { %p3991_p6 = scmp.ne.s32.totalorder %s4378_s30, %s3990_s2  ;;  %p3997_p10 = scmp.lt.u32.totalorder %s3990_s2, %s4378_s30 }
  0xb8   : > { %p3993_p8 = pnand %p3991_p6, %p4542_p7 }
  0xba   : > { %p3994_p9 = pneg %p3993_p8 }
  0xbc   : > { %p3999_p11 = pnand %p3997_p10, %p3994_p9 }
  0xbe   : > { %4002 = shalt.err (!%p3999_p11)
}
  0xbf   : > { %s4003_s7 = scalar_lea.vmem %s1080_s20, 128  ;;  %p4011_p13 = scmp.lt.s32.totalorder %s1080_s20, %s1080_s20 }
  0xc0   : > { %p4004_p2 = scmp.ne.s32.totalorder %s1080_s20, %s4003_s7  ;;  %p4012_p0 = scmp.lt.s32.totalorder %s4003_s7, %s4003_s7 }
  0xc2   : > { %p4006_p3 = pnand %p4004_p2, %p4542_p7  ;;  %p4013_p1 = por %p4012_p0, %p4011_p13 }
  0xc4   : > { %p4007_p12 = pneg %p4006_p3 }
  0xc6   : > { %p4014_p4 = pnand %p4013_p1, %p4007_p12 }
  0xc8   : > { %4017 = shalt.err (!%p4014_p4)
}
  0xc9   : > { %3721 = dma.hbm_to_vmem [thread:$0]  (!%p4530_p5), %s4378_s30, 128, %s1080_s20, [#allocation22]  }
  0xca   : > { %s4018_s28 = scalar_lea.hbm %s4330_s13, 64 }
  0xcb   : > { %p4019_p6 = scmp.ne.s32.totalorder %s4330_s13, %s4018_s28  ;;  %p4025_p10 = scmp.lt.u32.totalorder %s4018_s28, %s4330_s13 }
  0xcd   : > { %p4021_p8 = pnand %p4019_p6, %p4542_p7 }
  0xcf   : > { %p4022_p9 = pneg %p4021_p8 }
  0xd1   : > { %p4027_p11 = pnand %p4025_p10, %p4022_p9 }
  0xd3   : > { %4030 = shalt.err (!%p4027_p11)
}
  0xd4   : > { %s4031_s11 = scalar_lea.vmem %s978_s1, 64  ;;  %p4039_p13 = scmp.lt.s32.totalorder %s978_s1, %s978_s1 }
  0xd5   : > { %p4032_p2 = scmp.ne.s32.totalorder %s978_s1, %s4031_s11  ;;  %p4040_p0 = scmp.lt.s32.totalorder %s4031_s11, %s4031_s11 }
  0xd7   : > { %p4034_p3 = pnand %p4032_p2, %p4542_p7  ;;  %p4041_p1 = por %p4040_p0, %p4039_p13 }
  0xd9   : > { %p4035_p12 = pneg %p4034_p3 }
  0xdb   : > { %p4042_p4 = pnand %p4041_p1, %p4035_p12 }
  0xdd   : > { %4045 = shalt.err (!%p4042_p4)
}
  0xde   : > { %3694 = dma.hbm_to_vmem [thread:$0]  (!%p4530_p5), %s4330_s13, 64, %s978_s1, [#allocation8]  }
  0xdf   : > { %s4295_s16 = smov [#allocation11]   ;;  %s4296_s0 = smov [#allocation14]  }
  0xe0   : > { %s999_s14 = sshll.u32 %s4295_s16, 4  ;;  %s1021_s9 = sshll.u32 %s4296_s0, 4  ;;  %s1000_s14 = int_to_ptr.vmem [resolvable:$true] %s999_s14  ;;  %s1022_s9 = int_to_ptr.vmem [resolvable:$true] %s1021_s9 }
  0xe1   : > { %s4046_s15 = scalar_lea.hbm %s4340_s21, 64 }
  0xe2   : > { %p4047_p6 = scmp.ne.s32.totalorder %s4340_s21, %s4046_s15  ;;  %p4053_p10 = scmp.lt.u32.totalorder %s4046_s15, %s4340_s21 }
  0xe4   : > { %p4049_p8 = pnand %p4047_p6, %p4542_p7 }
  0xe6   : > { %p4050_p9 = pneg %p4049_p8 }
  0xe8   : > { %p4055_p11 = pnand %p4053_p10, %p4050_p9 }
  0xea   : > { %4058 = shalt.err (!%p4055_p11)
}
  0xeb   : > { %s4059_s18 = scalar_lea.vmem %s1000_s14, 64  ;;  %p4067_p13 = scmp.lt.s32.totalorder %s1000_s14, %s1000_s14 }
  0xec   : > { %p4060_p2 = scmp.ne.s32.totalorder %s1000_s14, %s4059_s18  ;;  %p4068_p0 = scmp.lt.s32.totalorder %s4059_s18, %s4059_s18 }
  0xee   : > { %p4062_p3 = pnand %p4060_p2, %p4542_p7  ;;  %p4069_p1 = por %p4068_p0, %p4067_p13 }
  0xf0   : > { %p4063_p12 = pneg %p4062_p3 }
  0xf2   : > { %p4070_p4 = pnand %p4069_p1, %p4063_p12 }
  0xf4   : > { %4073 = shalt.err (!%p4070_p4)
}
  0xf5   : > { %3700 = dma.hbm_to_vmem [thread:$0]  (!%p4530_p5), %s4340_s21, 64, %s1000_s14, [#allocation10]  }
  0xf6   : > { %s4074_s20 = scalar_lea.hbm %s4350_s29, 64 }
  0xf7   : > { %p4075_p6 = scmp.ne.s32.totalorder %s4350_s29, %s4074_s20  ;;  %p4081_p10 = scmp.lt.u32.totalorder %s4074_s20, %s4350_s29 }
  0xf9   : > { %p4077_p8 = pnand %p4075_p6, %p4542_p7 }
  0xfb   : > { %p4078_p9 = pneg %p4077_p8 }
  0xfd   : > { %p4083_p11 = pnand %p4081_p10, %p4078_p9 }
  0xff   : > { %4086 = shalt.err (!%p4083_p11)
}
 0x100   : > { %s4087_s22 = scalar_lea.vmem %s1022_s9, 64  ;;  %p4095_p13 = scmp.lt.s32.totalorder %s1022_s9, %s1022_s9 }
 0x101   : > { %p4088_p2 = scmp.ne.s32.totalorder %s1022_s9, %s4087_s22  ;;  %p4096_p0 = scmp.lt.s32.totalorder %s4087_s22, %s4087_s22 }
 0x103   : > { %p4090_p3 = pnand %p4088_p2, %p4542_p7  ;;  %p4097_p1 = por %p4096_p0, %p4095_p13 }
 0x105   : > { %p4091_p12 = pneg %p4090_p3 }
 0x107   : > { %p4098_p4 = pnand %p4097_p1, %p4091_p12 }
 0x109   : > { %4101 = shalt.err (!%p4098_p4)
}
 0x10a   : > { %3706 = dma.hbm_to_vmem [thread:$0]  (!%p4530_p5), %s4350_s29, 64, %s1022_s9, [#allocation13]  }
 0x10b   : > { %s4297_s1 = smov [#allocation17]   ;;  %s4298_s7 = smov [#allocation20]  }
 0x10c   : > { %s1043_s2 = sshll.u32 %s4297_s1, 4  ;;  %s1068_s28 = sshll.u32 %s4298_s7, 4  ;;  %s1044_s2 = int_to_ptr.vmem [resolvable:$true] %s1043_s2  ;;  %s1069_s28 = int_to_ptr.vmem [resolvable:$true] %s1068_s28 }
 0x10d   : > { %s4102_s11 = scalar_lea.hbm %s4360_s8, 128 }
 0x10e   : > { %p4103_p6 = scmp.ne.s32.totalorder %s4360_s8, %s4102_s11  ;;  %p4109_p10 = scmp.lt.u32.totalorder %s4102_s11, %s4360_s8 }
 0x110   : > { %p4105_p8 = pnand %p4103_p6, %p4542_p7 }
 0x112   : > { %p4106_p9 = pneg %p4105_p8 }
 0x114   : > { %p4111_p11 = pnand %p4109_p10, %p4106_p9 }
 0x116   : > { %4114 = shalt.err (!%p4111_p11)
}
 0x117   : > { %s4115_s16 = scalar_lea.vmem %s1044_s2, 128  ;;  %p4123_p13 = scmp.lt.s32.totalorder %s1044_s2, %s1044_s2 }
 0x118   : > { %p4116_p2 = scmp.ne.s32.totalorder %s1044_s2, %s4115_s16  ;;  %p4124_p0 = scmp.lt.s32.totalorder %s4115_s16, %s4115_s16 }
 0x11a   : > { %p4118_p3 = pnand %p4116_p2, %p4542_p7  ;;  %p4125_p1 = por %p4124_p0, %p4123_p13 }
 0x11c   : > { %p4119_p12 = pneg %p4118_p3 }
 0x11e   : > { %p4126_p4 = pnand %p4125_p1, %p4119_p12 }
 0x120   : > { %4129 = shalt.err (!%p4126_p4)
}
 0x121   : > { %3712 = dma.hbm_to_vmem [thread:$0]  (!%p4530_p5), %s4360_s8, 128, %s1044_s2, [#allocation16]  }
 0x122   : > { %s4130_s14 = scalar_lea.hbm %s4373_s24, 128 }
 0x123   : > { %p4131_p6 = scmp.ne.s32.totalorder %s4373_s24, %s4130_s14  ;;  %p4137_p10 = scmp.lt.u32.totalorder %s4130_s14, %s4373_s24 }
 0x125   : > { %p4133_p8 = pnand %p4131_p6, %p4542_p7 }
 0x127   : > { %p4134_p9 = pneg %p4133_p8 }
 0x129   : > { %p4139_p11 = pnand %p4137_p10, %p4134_p9 }
 0x12b   : > { %4142 = shalt.err (!%p4139_p11)
}
 0x12c   : > { %s4143_s0 = scalar_lea.vmem %s1069_s28, 128  ;;  %p4151_p13 = scmp.lt.s32.totalorder %s1069_s28, %s1069_s28 }
 0x12d   : > { %p4144_p2 = scmp.ne.s32.totalorder %s1069_s28, %s4143_s0  ;;  %p4152_p0 = scmp.lt.s32.totalorder %s4143_s0, %s4143_s0 }
 0x12f   : > { %p4146_p3 = pnand %p4144_p2, %p4542_p7  ;;  %p4153_p1 = por %p4152_p0, %p4151_p13 }
 0x131   : > { %p4147_p12 = pneg %p4146_p3 }
 0x133   : > { %p4154_p4 = pnand %p4153_p1, %p4147_p12 }
 0x135   : > { %4157 = shalt.err (!%p4154_p4)
}
 0x136   : > { %3718 = dma.hbm_to_vmem [thread:$0]  (!%p4530_p5), %s4373_s24, 128, %s1069_s28, [#allocation19]  }
 0x137   : > { %s4299_s9 = smov [#allocation23]   ;;  %s4300_s18 = smov [#allocation24]  }
 0x138   : > { %s1099_s15 = sshll.u32 %s4299_s9, 4  ;;  %s1110_s20 = sshll.u32 %s4300_s18, 4  ;;  %s1100_s15 = int_to_ptr.vmem [resolvable:$true] %s1099_s15  ;;  %s1111_s20 = int_to_ptr.vmem [resolvable:$true] %s1110_s20 }
 0x139   : > { %s4158_s22 = scalar_lea.hbm %s4383_s6, 64 }
 0x13a   : > { %p4159_p6 = scmp.ne.s32.totalorder %s4383_s6, %s4158_s22  ;;  %p4165_p10 = scmp.lt.u32.totalorder %s4158_s22, %s4383_s6 }
 0x13c   : > { %p4161_p8 = pnand %p4159_p6, %p4542_p7 }
 0x13e   : > { %p4162_p9 = pneg %p4161_p8 }
 0x140   : > { %p4167_p11 = pnand %p4165_p10, %p4162_p9 }
 0x142   : > { %4170 = shalt.err (!%p4167_p11)
}
 0x143   : > { %s4171_s1 = scalar_lea.vmem %s1100_s15, 64  ;;  %p4179_p13 = scmp.lt.s32.totalorder %s1100_s15, %s1100_s15 }
 0x144   : > { %p4172_p2 = scmp.ne.s32.totalorder %s1100_s15, %s4171_s1  ;;  %p4180_p0 = scmp.lt.s32.totalorder %s4171_s1, %s4171_s1 }
 0x146   : > { %p4174_p3 = pnand %p4172_p2, %p4542_p7  ;;  %p4181_p1 = por %p4180_p0, %p4179_p13 }
 0x148   : > { %p4175_p12 = pneg %p4174_p3 }
 0x14a   : > { %p4182_p4 = pnand %p4181_p1, %p4175_p12 }
 0x14c   : > { %4185 = shalt.err (!%p4182_p4)
}
 0x14d   : > { %3724 = dma.hbm_to_vmem [thread:$0]  (!%p4530_p5), %s4383_s6, 64, %s1100_s15, [#allocation22]  }
 0x14e   : > { %s4186_s2 = scalar_lea.hbm %s4388_s12, 128 }
 0x14f   : > { %p4187_p6 = scmp.ne.s32.totalorder %s4388_s12, %s4186_s2  ;;  %p4193_p10 = scmp.lt.u32.totalorder %s4186_s2, %s4388_s12 }
 0x151   : > { %p4189_p8 = pnand %p4187_p6, %p4542_p7 }
 0x153   : > { %p4190_p9 = pneg %p4189_p8 }
 0x155   : > { %p4195_p11 = pnand %p4193_p10, %p4190_p9 }
 0x157   : > { %4198 = shalt.err (!%p4195_p11)
}
 0x158   : > { %s4199_s7 = scalar_lea.vmem %s1111_s20, 128  ;;  %p4207_p13 = scmp.lt.s32.totalorder %s1111_s20, %s1111_s20 }
 0x159   : > { %p4200_p2 = scmp.ne.s32.totalorder %s1111_s20, %s4199_s7  ;;  %p4208_p0 = scmp.lt.s32.totalorder %s4199_s7, %s4199_s7 }
 0x15b   : > { %p4202_p3 = pnand %p4200_p2, %p4542_p7  ;;  %p4209_p1 = por %p4208_p0, %p4207_p13 }
 0x15d   : > { %p4203_p12 = pneg %p4202_p3 }
 0x15f   : > { %p4210_p4 = pnand %p4209_p1, %p4203_p12 }
 0x161   : > { %4213 = shalt.err (!%p4210_p4)
}
 0x162   : > { %3727 = dma.hbm_to_vmem [thread:$0]  (!%p4530_p5), %s4388_s12, 128, %s1111_s20, [#allocation25]  }
 0x163   : > { %p5865_p6 = scmp.ne.s32.totalorder %s5862_s4, 0 }
 0x164   : > { %p5866_p8 = scmp.eq.s32.totalorder (!%p5865_p6), %s4513_s27, 0 }
 0x165   : > { %1194 = sbr.rel (%p5865_p6) target bundleno = 4732 (0x127c), region = 176 }
 0x16c   : > { %4219 = dma.done.wait (%p5866_p8), [#allocation8], 64   ;;  %p5867_p9 = pmov %p5866_p8 }
 0x16d   : > { %p5868_p7 = pmov %p5866_p8 }
 0x16e   : > { %4221 = vsyncadd (%p5867_p9), [#allocation8], 4294967232 }
 0x16f   : > { %4223 = dma.done.wait (%p5868_p7), [#allocation10], 192   ;;  %p5869_p10 = pmov %p5868_p7 }
 0x170   : > { %p5870_p11 = pmov %p5868_p7 }
 0x171   : > { %4225 = vsyncadd (%p5869_p10), [#allocation10], 4294967104 }
 0x172   : > { %4227 = dma.done.wait (%p5870_p11), [#allocation13], 192   ;;  %p5871_p5 = pmov %p5868_p7 }
 0x174   : > { %4229 = vsyncadd (%p5871_p5), [#allocation13], 4294967104  ;;  %p5872_p2 = pmov %p5871_p5 }
 0x176   : > { %4231 = dma.done.wait (%p5872_p2), [#allocation16], 256   ;;  %p5873_p3 = pmov %p5872_p2 }
 0x177   : > { %p5874_p12 = pmov %p5872_p2 }
 0x178   : > { %4233 = vsyncadd (%p5873_p3), [#allocation16], 4294967040 }
 0x179   : > { %4235 = dma.done.wait (%p5874_p12), [#allocation19], 256   ;;  %p5875_p13 = pmov %p5872_p2 }
 0x17a   : > { %p5876_p0 = pmov %p5872_p2 }
 0x17b   : > { %4237 = vsyncadd (%p5875_p13), [#allocation19], 4294967040 }
 0x17c   : > { %4239 = dma.done.wait (%p5876_p0), [#allocation22], 192   ;;  %p5877_p1 = pmov %p5876_p0 }
 0x17d   : > { %p5878_p4 = pmov %p5876_p0 }
 0x17e   : > { %4241 = vsyncadd (%p5877_p1), [#allocation22], 4294967104 }
 0x17f   : > { %4243 = dma.done.wait (%p5878_p4), [#allocation25], 128   ;;  %p5879_p6 = pmov %p5876_p0 }
 0x180   : > { %s5880_s4 = sld [smem:[#allocation34_spill]]  ;;  %p1334_p8 = scmp.lt.s32.totalorder %s4513_s27, 1  ;;  %v4307_v7 = vmov 0   ;;  %v1510_v8 = vld [vmem:[#allocation9] sm:$0xff]  ;;  %v1355_v9 = vlaneseq  ;;  %vm1520_vm8 = vcmask 1043456   ;;  %vm1516_vm9 = vcmask 588800  }
 0x181   : > { %4245 = vsyncadd (%p5879_p6), [#allocation25], 4294967168  ;;  %s4301_s28 = smov 16   ;;  %s4302_s11 = smov 17   ;;  %1559 = vmatprep.mubr.bf16.mxu0 %v4307_v7  ;;  %3822 = vset.pattern.permute.xlu0 %v4307_v7  ;;  %vm1847_vm10 = vcmask 7168   ;;  %vm2111_vm11 = vcmask 64512  }
 0x182   : > { %s5908_s27 = smov (!%p1334_p8, %s4513_s27), 1  ;;  %s4303_s16 = smov 15   ;;  %1694 = vmatprep.mubr.bf16.mxu1 %v4307_v7  ;;  %3823 = vset.pattern.permute.xlu1 %v4307_v7  ;;  %v4764_v10 = vshrl.u32 %v1355_v9, 7  ;;  %v4766_v11 = vand.u32 127, %v1355_v9  ;;  %vm2341_vm12 = vcmask 130048   ;;  %vm2627_vm13 = vcmask 15360  }
 0x183   : > { %s3633_s26 = sshll.u32 %s5908_s27, 4  ;;  %s5835_s14 = smov 1   ;;  %vm3174_vm14 = vcmask 1045504   ;;  %vm3175_vm15 = vcmask 1046528  }
 0x184   : > { %s5833_s0 = smov 127   ;;  %s5831_s9 = smov 113   ;;  %v4769_v12 = vsub.s32 0, %v4764_v10  ;;  %v1379_v13 = vsub.s32 1, %v4764_v10  ;;  %vm1374_vm0 = vcmp.lt.s32.totalorder %v4766_v11, 16  ;;  %vm1357_vm1 = vcmp.lt.s32.totalorder %v4766_v11, 17 }
 0x185   : > { %s5881_s15 = sld [smem:[#allocation33_spill]]  ;;  %s5829_s18 = smov 112   ;;  %v1396_v24 = vsub.s32 2, %v4764_v10  ;;  %v1413_v25 = vsub.s32 3, %v4764_v10  ;;  %vm1391_vm2 = vcmp.lt.s32.totalorder %v4766_v11, 15  ;;  %v1423_v38 = vsub.s32 4, %v4764_v10 }
 0x186   : > { %s4720_s10 = scalar_lea.vmem %s5880_s4, %s3633_s26  ;;  %s5827_s20 = smov 111   ;;  %vm1408_vm3 = vcmp.lt.s32.totalorder %v4766_v11, 1  ;;  %v1440_v39 = vsub.s32 5, %v4764_v10  ;;  %vm1435_vm4 = vcmp.lt.s32.totalorder %v4766_v11, 127  ;;  %v1457_v2 = vsub.s32 6, %v4764_v10 }
 0x187   : > { %v4723_v5 = vld [vmem:[%s4720_s10] sm:$0xff]  ;;  %v4730_v6 = vld [vmem:[%s4720_s10 + $0x8] sm:$0xff]  ;;  %vm1452_vm5 = vcmp.lt.s32.totalorder %v4766_v11, 113  ;;  %vm1469_vm6 = vcmp.lt.s32.totalorder %v4766_v11, 112  ;;  %vm1486_vm7 = vcmp.lt.s32.totalorder %v4766_v11, 111  ;;  %s5882_s22 = sld [smem:[#allocation36_spill]] }
 0x188   : > { %1370 = vrot.lane.b32.xlu1 %v4723_v5, %s4301_s28  ;;  %1351 = vrot.lane.b32.xlu0 %v4723_v5, %s4302_s11  ;;  %s5883_s1 = sld [smem:[#allocation35_spill]]  ;;  %s5884_s2 = sld [smem:[#allocation37_spill]] }
 0x189   : > { %s5885_s7 = sld [smem:[#allocation38_spill]]  ;;  %s5886_s4 = sld [smem:[#allocation39_spill]] }
 0x18a   : > { %s5887_s26 = sld [smem:[#allocation40_spill]] }
 0x18b   : > { %v4773_v14 = vld [vmem:[%s5881_s15] sm:$0xff]  ;;  %v4776_v15 = vld [vmem:[%s5881_s15 + $0x8] sm:$0xff] }
 0x18c   : > { %1372 = vrot.lane.b32.xlu1 %v4730_v6, %s4301_s28  ;;  %1353 = vrot.lane.b32.xlu0 %v4730_v6, %s4302_s11  ;;  %v4782_v18 = vrot.slane %v4776_v15, %v4769_v12  ;;  %v4785_v19 = vrot.slane %v4776_v15, %v1379_v13  ;;  %v4789_v20 = vrot.slane %v4773_v14, %v4769_v12 }
 0x18d   : > { %v4792_v21 = vrot.slane %v4773_v14, %v1379_v13  ;;  %v4813_v40 = vrot.slane %v4773_v14, %v1396_v24  ;;  %v4816_v41 = vrot.slane %v4776_v15, %v1396_v24  ;;  %v4819_v42 = vrot.slane %v4773_v14, %v1413_v25 }
 0x18e   : > { %v4822_v43 = vrot.slane %v4776_v15, %v1413_v25  ;;  %v4830_v48 = vrot.slane %v4776_v15, %v1423_v38  ;;  %v4833_v49 = vrot.slane %v4773_v14, %v1423_v38  ;;  %v4840_v52 = vrot.slane %v4773_v14, %v1440_v39 }
 0x18f   : > { %v4843_v53 = vrot.slane %v4776_v15, %v1440_v39 }
 0x190   : > { %1389 = vrot.lane.b32.xlu1 %v4730_v6, %s4303_s16  ;;  %1387 = vrot.lane.b32.xlu0 %v4723_v5, %s4303_s16  ;;  %v1430_v62 = vmul.f32 %v4830_v48, %v4730_v6  ;;  %v1429_v63 = vmul.f32 %v4833_v49, %v4723_v5 }
 0x194   : > { %1406 = vrot.lane.b32.xlu1 %v4730_v6, %s5835_s14  ;;  %1404 = vrot.lane.b32.xlu0 %v4723_v5, %s5835_s14 }
 0x198   : > { %1433 = vrot.lane.b32.xlu1 %v4730_v6, %s5833_s0  ;;  %1431 = vrot.lane.b32.xlu0 %v4723_v5, %s5833_s0 }
 0x19c   : > { %1450 = vrot.lane.b32.xlu1 %v4730_v6, %s5831_s9  ;;  %1448 = vrot.lane.b32.xlu0 %v4723_v5, %s5831_s9 }
 0x1a0   : > { %1467 = vrot.lane.b32.xlu1 %v4730_v6, %s5829_s18  ;;  %1465 = vrot.lane.b32.xlu0 %v4723_v5, %s5829_s18 }
 0x1a4   : > { %1484 = vrot.lane.b32.xlu1 %v4730_v6, %s5827_s20  ;;  %1482 = vrot.lane.b32.xlu0 %v4723_v5, %s5827_s20 }
 0x1a8   : > { %1513 = vperm.xlu0 %3822, %v1510_v8   ;;  %v1474_v8 = vsub.s32 7, %v4764_v10 }
 0x1aa   : > { %v4870_v10 = vrot.slane %v4773_v14, %v1474_v8 }
 0x1fa   : > { %v1371_v16 = vpop.permute.xlu1 %1370  ;;  %v1352_v17 = vpop.permute.xlu0 %1351 }
 0x1fe   : > { %v1373_v22 = vpop.permute.xlu1 %1372  ;;  %v1354_v23 = vpop.permute.xlu0 %1353 }
 0x1ff   : > { %v1376_v26 = vsel %vm1374_vm0, %v1373_v22, %v1371_v16  ;;  %v1359_v27 = vsel %vm1357_vm1, %v1354_v23, %v1352_v17  ;;  %v1358_v28 = vsel %vm1357_vm1, %v1352_v17, %v1354_v23  ;;  %v1375_v29 = vsel %vm1374_vm0, %v1371_v16, %v1373_v22 }
 0x200   : > { %v1369_v30 = vmul.f32 %v4782_v18, %v1358_v28  ;;  %v1386_v31 = vmul.f32 %v4785_v19, %v1375_v29  ;;  %v1368_v32 = vmul.f32 %v4789_v20, %v1359_v27  ;;  %v1385_v33 = vmul.f32 %v4792_v21, %v1376_v26 }
 0x201   : > { %v4863_v16 = vrot.slane %v4773_v14, %v1457_v2  ;;  %v4866_v17 = vrot.slane %v4776_v15, %v1457_v2  ;;  %v4873_v22 = vrot.slane %v4776_v15, %v1474_v8 }
 0x202   : > { %v1390_v34 = vpop.permute.xlu1 %1389  ;;  %v1388_v35 = vpop.permute.xlu0 %1387  ;;  %v1500_v36 = vpack.c.bf16 %v1386_v31, %v1369_v30  ;;  %v1499_v37 = vpack.c.bf16 %v1385_v33, %v1368_v32  ;;  %v4889_v31 = vld [vmem:[%s5881_s15 + $0x18] ss:$0 sm:$0xff]  ;;  %v4892_v32 = vld [vmem:[%s5881_s15 + $0x10] ss:$0 sm:$0xff] }
 0x203   : > { %v1392_v44 = vsel %vm1391_vm2, %v1388_v35, %v1390_v34  ;;  %v1393_v45 = vsel %vm1391_vm2, %v1390_v34, %v1388_v35 }
 0x204   : > { %1527 = vmatprep.subr.bf16.mxu0 %v1500_v36  ;;  %v1402_v54 = vmul.f32 %v4813_v40, %v1393_v45  ;;  %v1403_v55 = vmul.f32 %v4816_v41, %v1392_v44 }
 0x205   : > { %1528 = vmatpush1.bf16.msra.mxu0 %v1499_v37 }
 0x206   : > { %v1407_v46 = vpop.permute.xlu1 %1406  ;;  %v1405_v47 = vpop.permute.xlu0 %1404 }
 0x207   : > { %v1409_v50 = vsel %vm1408_vm3, %v1405_v47, %v1407_v46  ;;  %v1410_v51 = vsel %vm1408_vm3, %v1407_v46, %v1405_v47 }
 0x208   : > { %v1419_v56 = vmul.f32 %v4819_v42, %v1410_v51  ;;  %v1420_v57 = vmul.f32 %v4822_v43, %v1409_v50  ;;  %v1509_v50 = vld [vmem:[#allocation7] sm:$0xf] }
 0x20a   : > { %v1434_v58 = vpop.permute.xlu1 %1433  ;;  %v1432_v59 = vpop.permute.xlu0 %1431  ;;  %v1502_v60 = vpack.c.bf16 %v1420_v57, %v1403_v55  ;;  %v1501_v61 = vpack.c.bf16 %v1419_v56, %v1402_v54 }
 0x20b   : > { %v1436_v0 = vsel %vm1435_vm4, %v1432_v59, %v1434_v58  ;;  %v1437_v1 = vsel %vm1435_vm4, %v1434_v58, %v1432_v59 }
 0x20c   : > { %v1446_v3 = vmul.f32 %v4840_v52, %v1436_v0  ;;  %v1447_v4 = vmul.f32 %v4843_v53, %v1437_v1  ;;  %1529 = vmatprep.subr.bf16.mxu0 %v1502_v60 }
 0x20d   : > { %1530 = vmatpush1.bf16.msra.mxu0 %v1501_v61 }
 0x20e   : > { %v1451_v6 = vpop.permute.xlu1 %1450  ;;  %v1449_v5 = vpop.permute.xlu0 %1448  ;;  %v1504_v9 = vpack.c.bf16 %v1447_v4, %v1430_v62  ;;  %v1503_v13 = vpack.c.bf16 %v1446_v3, %v1429_v63  ;;  %v1647_v62 = vld [vmem:[#allocation12] sm:$0xff] }
 0x20f   : > { %v1453_v23 = vsel %vm1452_vm5, %v1449_v5, %v1451_v6  ;;  %v1454_v24 = vsel %vm1452_vm5, %v1451_v6, %v1449_v5 }
 0x210   : > { %1531 = vmatprep.subr.bf16.mxu0 %v1504_v9  ;;  %v1463_v14 = vmul.f32 %v4863_v16, %v1453_v23  ;;  %v1464_v15 = vmul.f32 %v4866_v17, %v1454_v24 }
 0x211   : > { %1532 = vmatpush1.bf16.msra.mxu0 %v1503_v13 }
 0x212   : > { %v1468_v25 = vpop.permute.xlu1 %1467  ;;  %v1466_v26 = vpop.permute.xlu0 %1465 }
 0x213   : > { %v1470_v27 = vsel %vm1469_vm6, %v1466_v26, %v1468_v25  ;;  %v1471_v28 = vsel %vm1469_vm6, %v1468_v25, %v1466_v26 }
 0x214   : > { %v1480_v29 = vmul.f32 %v4870_v10, %v1470_v27  ;;  %v1481_v30 = vmul.f32 %v4873_v22, %v1471_v28 }
 0x216   : > { %v1485_v33 = vpop.permute.xlu1 %1484  ;;  %v1483_v34 = vpop.permute.xlu0 %1482  ;;  %v1506_v35 = vpack.c.bf16 %v1481_v30, %v1464_v15  ;;  %v1505_v36 = vpack.c.bf16 %v1480_v29, %v1463_v14 }
 0x217   : > { %v1487_v37 = vsel %vm1486_vm7, %v1483_v34, %v1485_v33  ;;  %v1488_v38 = vsel %vm1486_vm7, %v1485_v33, %v1483_v34 }
 0x218   : > { %v1498_v39 = vmul.f32 %v4889_v31, %v1488_v38  ;;  %1533 = vmatprep.subr.bf16.mxu0 %v1506_v35  ;;  %v1497_v44 = vmul.f32 %v4892_v32, %v1487_v37 }
 0x219   : > { %1534 = vmatpush1.bf16.msra.mxu0 %v1505_v36 }
 0x21a   : > { %v1508_v45 = vpack.c.bf16 %v1498_v39, %v1498_v39  ;;  %v1507_v46 = vpack.c.bf16 %v1497_v44, %v1497_v44 }
 0x21c   : > { %3598 = vmatprep.subr.msk.bf16.mxu0 %vm1520_vm8, %v1508_v45  ;;  %v1522_v47 = vsel %vm1520_vm8, %v1507_v46, 0 }
 0x21d   : > { %1536 = vmatpush1.bf16.msra.mxu0 %v1522_v47 }
 0x220   : > { %3599 = vmatmul.mubr.msk.bf16.vlgmr.msra.gmra.mrb[0].mxu0 %vm1516_vm9, %v1509_v50 }
 0x221   : > { %1831 = vmatprep.mubr.bf16.mxu0 %v4307_v7 }
 0x227   : > { %v1514_v51 = vpop.permute.xlu0 %1513 }
 0x2f3   : > { %v1561_v54 = vpop.f32.mrb[0].mxu0 }
 0x2f4   : > { %v1562_v55 = vadd.f32 %v1561_v54, %v1514_v51  ;;  %v1563_v56 = vpop.f32.mrb[1].mxu0 }
 0x2f5   : > { %v1565_v57 = vpop.f32.mrb[2].mxu0  ;;  %v1564_v59 = vadd.f32 %v1563_v56, %v1514_v51 }
 0x2f6   : > { %v4904_v58 = vmax.f32 %v1562_v55, 0.0  ;;  %v1566_v60 = vpop.f32.mrb[3].mxu0 }
 0x2f7   : > { %v4910_v61 = vmax.f32 %v1564_v59, 0.0 }
 0x2f8   : > { %1578 = vrot.lane.b32.xlu0 %v4904_v58, %s4301_s28  ;;  %1570 = vrot.lane.b32.xlu1 %v4904_v58, %s4302_s11  ;;  %v1602_v56 = vmul.f32 %v4904_v58, %v4833_v49 }
 0x2f9   : > { %v1603_v55 = vmul.f32 %v4910_v61, %v4830_v48 }
 0x2fc   : > { %1586 = vrot.lane.b32.xlu0 %v4904_v58, %s4303_s16  ;;  %1572 = vrot.lane.b32.xlu1 %v4910_v61, %s4302_s11 }
 0x300   : > { %1594 = vrot.lane.b32.xlu0 %v4904_v58, %s5835_s14  ;;  %1580 = vrot.lane.b32.xlu1 %v4910_v61, %s4301_s28 }
 0x304   : > { %1604 = vrot.lane.b32.xlu0 %v4904_v58, %s5833_s0  ;;  %1588 = vrot.lane.b32.xlu1 %v4910_v61, %s4303_s16 }
 0x308   : > { %1612 = vrot.lane.b32.xlu0 %v4904_v58, %s5831_s9  ;;  %1596 = vrot.lane.b32.xlu1 %v4910_v61, %s5835_s14 }
 0x30c   : > { %1620 = vrot.lane.b32.xlu0 %v4904_v58, %s5829_s18  ;;  %1606 = vrot.lane.b32.xlu1 %v4910_v61, %s5833_s0 }
 0x310   : > { %1628 = vrot.lane.b32.xlu0 %v4904_v58, %s5827_s20  ;;  %1614 = vrot.lane.b32.xlu1 %v4910_v61, %s5831_s9 }
 0x314   : > { %1650 = vperm.xlu0 %3822, %v1647_v62   ;;  %1622 = vrot.lane.b32.xlu1 %v4910_v61, %s5829_s18 }
 0x318   : > { %1630 = vrot.lane.b32.xlu1 %v4910_v61, %s5827_s20 }
 0x36a   : > { %v1579_v63 = vpop.permute.xlu0 %1578  ;;  %v1571_v0 = vpop.permute.xlu1 %1570 }
 0x36e   : > { %v1587_v1 = vpop.permute.xlu0 %1586  ;;  %v1573_v2 = vpop.permute.xlu1 %1572 }
 0x36f   : > { %v1575_v3 = vsel %vm1357_vm1, %v1573_v2, %v1571_v0  ;;  %v1574_v4 = vsel %vm1357_vm1, %v1571_v0, %v1573_v2 }
 0x370   : > { %v1577_v13 = vmul.f32 %v1574_v4, %v4782_v18  ;;  %v1576_v24 = vmul.f32 %v1575_v3, %v4789_v20 }
 0x372   : > { %v1595_v8 = vpop.permute.xlu0 %1594  ;;  %v1581_v6 = vpop.permute.xlu1 %1580 }
 0x373   : > { %v1583_v5 = vsel %vm1374_vm0, %v1581_v6, %v1579_v63  ;;  %v1582_v9 = vsel %vm1374_vm0, %v1579_v63, %v1581_v6 }
 0x374   : > { %v1585_v23 = vmul.f32 %v1582_v9, %v4785_v19  ;;  %v1584_v25 = vmul.f32 %v1583_v5, %v4792_v21 }
 0x376   : > { %v1589_v26 = vpop.permute.xlu1 %1588  ;;  %v1637_v27 = vpack.c.bf16 %v1585_v23, %v1577_v13  ;;  %v1636_v28 = vpack.c.bf16 %v1584_v25, %v1576_v24  ;;  %v1605_v14 = vpop.permute.xlu0 %1604 }
 0x377   : > { %v1590_v15 = vsel %vm1391_vm2, %v1587_v1, %v1589_v26  ;;  %v1591_v29 = vsel %vm1391_vm2, %v1589_v26, %v1587_v1 }
 0x378   : > { %1662 = vmatprep.subr.bf16.mxu1 %v1637_v27  ;;  %v1592_v35 = vmul.f32 %v1591_v29, %v4813_v40  ;;  %v1593_v36 = vmul.f32 %v1590_v15, %v4816_v41 }
 0x379   : > { %1663 = vmatpush1.bf16.msra.mxu1 %v1636_v28 }
 0x37a   : > { %v1597_v30 = vpop.permute.xlu1 %1596  ;;  %v1613_v39 = vpop.permute.xlu0 %1612 }
 0x37b   : > { %v1598_v33 = vsel %vm1408_vm3, %v1595_v8, %v1597_v30  ;;  %v1599_v34 = vsel %vm1408_vm3, %v1597_v30, %v1595_v8  ;;  %v1646_v30 = vld [vmem:[#allocation11] sm:$0xf] }
 0x37c   : > { %v1600_v37 = vmul.f32 %v1599_v34, %v4819_v42  ;;  %v1601_v38 = vmul.f32 %v1598_v33, %v4822_v43 }
 0x37e   : > { %v1607_v44 = vpop.permute.xlu1 %1606  ;;  %v1639_v45 = vpack.c.bf16 %v1601_v38, %v1593_v36  ;;  %v1638_v46 = vpack.c.bf16 %v1600_v37, %v1592_v35  ;;  %v1621_v62 = vpop.permute.xlu0 %1620 }
 0x37f   : > { %v1608_v47 = vsel %vm1435_vm4, %v1605_v14, %v1607_v44  ;;  %v1609_v50 = vsel %vm1435_vm4, %v1607_v44, %v1605_v14 }
 0x380   : > { %v1610_v51 = vmul.f32 %v1608_v47, %v4840_v52  ;;  %v1611_v54 = vmul.f32 %v1609_v50, %v4843_v53  ;;  %1664 = vmatprep.subr.bf16.mxu1 %v1639_v45  ;;  %v1784_v50 = vld [vmem:[#allocation15] sm:$0xff] }
 0x381   : > { %1665 = vmatpush1.bf16.msra.mxu1 %v1638_v46 }
 0x382   : > { %v1615_v57 = vpop.permute.xlu1 %1614  ;;  %v1641_v59 = vpack.c.bf16 %v1611_v54, %v1603_v55  ;;  %v1640_v60 = vpack.c.bf16 %v1610_v51, %v1602_v56  ;;  %v1629_v9 = vpop.permute.xlu0 %1628 }
 0x383   : > { %v1616_v63 = vsel %vm1452_vm5, %v1613_v39, %v1615_v57  ;;  %v1617_v0 = vsel %vm1452_vm5, %v1615_v57, %v1613_v39 }
 0x384   : > { %1666 = vmatprep.subr.bf16.mxu1 %v1641_v59  ;;  %v1618_v4 = vmul.f32 %v1616_v63, %v4863_v16  ;;  %v1619_v8 = vmul.f32 %v1617_v0, %v4866_v17 }
 0x385   : > { %1667 = vmatpush1.bf16.msra.mxu1 %v1640_v60 }
 0x386   : > { %v1623_v1 = vpop.permute.xlu1 %1622 }
 0x387   : > { %v1624_v2 = vsel %vm1469_vm6, %v1621_v62, %v1623_v1  ;;  %v1625_v3 = vsel %vm1469_vm6, %v1623_v1, %v1621_v62 }
 0x388   : > { %v1626_v6 = vmul.f32 %v1624_v2, %v4870_v10  ;;  %v1627_v5 = vmul.f32 %v1625_v3, %v4873_v22 }
 0x38a   : > { %v1631_v13 = vpop.permute.xlu1 %1630  ;;  %v1643_v23 = vpack.c.bf16 %v1627_v5, %v1619_v8  ;;  %v1642_v24 = vpack.c.bf16 %v1626_v6, %v1618_v4 }
 0x38b   : > { %v1632_v25 = vsel %vm1486_vm7, %v1629_v9, %v1631_v13  ;;  %v1633_v26 = vsel %vm1486_vm7, %v1631_v13, %v1629_v9 }
 0x38c   : > { %v1635_v27 = vmul.f32 %v4889_v31, %v1633_v26  ;;  %1668 = vmatprep.subr.bf16.mxu1 %v1643_v23  ;;  %v1634_v28 = vmul.f32 %v4892_v32, %v1632_v25 }
 0x38d   : > { %1669 = vmatpush1.bf16.msra.mxu1 %v1642_v24 }
 0x38e   : > { %v1645_v14 = vpack.c.bf16 %v1635_v27, %v1635_v27  ;;  %v1644_v15 = vpack.c.bf16 %v1634_v28, %v1634_v28 }
 0x390   : > { %3600 = vmatprep.subr.msk.bf16.mxu1 %vm1520_vm8, %v1645_v14  ;;  %v1657_v29 = vsel %vm1520_vm8, %v1644_v15, 0 }
 0x391   : > { %1671 = vmatpush1.bf16.msra.mxu1 %v1657_v29 }
 0x393   : > { %v1651_v33 = vpop.permute.xlu0 %1650 }
 0x394   : > { %3601 = vmatmul.mubr.msk.bf16.vlgmr.msra.gmra.mrb[0].mxu1 %vm1516_vm9, %v1646_v30 }
 0x395   : > { %2079 = vmatprep.mubr.bf16.mxu1 %v4307_v7 }
 0x467   : > { %v1696_v34 = vpop.f32.mrb[0].mxu1 }
 0x468   : > { %v1697_v35 = vadd.f32 %v1696_v34, %v1651_v33  ;;  %v1698_v36 = vpop.f32.mrb[1].mxu1 }
 0x469   : > { %v1699_v37 = vadd.f32 %v1698_v36, %v1651_v33  ;;  %v1700_v38 = vpop.f32.mrb[2].mxu1 }
 0x46a   : > { %v1703_v39 = vmax.f32 %v1697_v35, 0.0  ;;  %v1701_v44 = vpop.f32.mrb[3].mxu1 }
 0x46b   : > { %v1704_v45 = vmax.f32 %v1699_v37, 0.0 }
 0x46c   : > { %v1705_v46 = vadd.f32 %v1703_v39, %v4904_v58 }
 0x46d   : > { %v1706_v47 = vadd.f32 %v1704_v45, %v4910_v61 }
 0x46e   : > { %1707 = vrot.lane.b32.xlu1 %v1705_v46, %s4302_s11  ;;  %v1739_v36 = vmul.f32 %v1705_v46, %v4833_v49 }
 0x46f   : > { %1709 = vrot.lane.b32.xlu0 %v1706_v47, %s4302_s11  ;;  %v1740_v39 = vmul.f32 %v1706_v47, %v4830_v48 }
 0x472   : > { %1715 = vrot.lane.b32.xlu1 %v1705_v46, %s4301_s28 }
 0x473   : > { %1717 = vrot.lane.b32.xlu0 %v1706_v47, %s4301_s28 }
 0x476   : > { %1723 = vrot.lane.b32.xlu1 %v1705_v46, %s4303_s16 }
 0x477   : > { %1725 = vrot.lane.b32.xlu0 %v1706_v47, %s4303_s16 }
 0x47a   : > { %1731 = vrot.lane.b32.xlu1 %v1705_v46, %s5835_s14 }
 0x47b   : > { %1733 = vrot.lane.b32.xlu0 %v1706_v47, %s5835_s14 }
 0x47e   : > { %1741 = vrot.lane.b32.xlu1 %v1705_v46, %s5833_s0 }
 0x47f   : > { %1743 = vrot.lane.b32.xlu0 %v1706_v47, %s5833_s0 }
 0x482   : > { %1749 = vrot.lane.b32.xlu1 %v1705_v46, %s5831_s9 }
 0x483   : > { %1751 = vrot.lane.b32.xlu0 %v1706_v47, %s5831_s9 }
 0x486   : > { %1757 = vrot.lane.b32.xlu1 %v1705_v46, %s5829_s18 }
 0x487   : > { %1759 = vrot.lane.b32.xlu0 %v1706_v47, %s5829_s18 }
 0x48a   : > { %1765 = vrot.lane.b32.xlu1 %v1705_v46, %s5827_s20 }
 0x48b   : > { %1767 = vrot.lane.b32.xlu0 %v1706_v47, %s5827_s20 }
 0x48e   : > { %1787 = vperm.xlu1 %3823, %v1784_v50  }
 0x4e0   : > { %v1708_v51 = vpop.permute.xlu1 %1707 }
 0x4e1   : > { %v1710_v54 = vpop.permute.xlu0 %1709 }
 0x4e2   : > { %v1711_v55 = vsel %vm1357_vm1, %v1708_v51, %v1710_v54  ;;  %v1712_v56 = vsel %vm1357_vm1, %v1710_v54, %v1708_v51 }
 0x4e3   : > { %v1713_v63 = vmul.f32 %v1712_v56, %v4789_v20  ;;  %v1714_v0 = vmul.f32 %v1711_v55, %v4782_v18 }
 0x4e4   : > { %v1716_v57 = vpop.permute.xlu1 %1715 }
 0x4e5   : > { %v1718_v59 = vpop.permute.xlu0 %1717 }
 0x4e6   : > { %v1719_v60 = vsel %vm1374_vm0, %v1716_v57, %v1718_v59  ;;  %v1720_v62 = vsel %vm1374_vm0, %v1718_v59, %v1716_v57 }
 0x4e7   : > { %v1721_v1 = vmul.f32 %v1720_v62, %v4792_v21  ;;  %v1722_v2 = vmul.f32 %v1719_v60, %v4785_v19 }
 0x4e8   : > { %v1724_v3 = vpop.permute.xlu1 %1723 }
 0x4e9   : > { %v1773_v4 = vpack.c.bf16 %v1721_v1, %v1713_v63  ;;  %v1726_v8 = vpop.permute.xlu0 %1725  ;;  %v1774_v6 = vpack.c.bf16 %v1722_v2, %v1714_v0 }
 0x4ea   : > { %v1727_v5 = vsel %vm1391_vm2, %v1724_v3, %v1726_v8  ;;  %v1728_v9 = vsel %vm1391_vm2, %v1726_v8, %v1724_v3 }
 0x4eb   : > { %1799 = vmatprep.subr.bf16.mxu0 %v1774_v6  ;;  %v1729_v26 = vmul.f32 %v1728_v9, %v4813_v40  ;;  %v1730_v27 = vmul.f32 %v1727_v5, %v4816_v41 }
 0x4ec   : > { %1800 = vmatpush1.bf16.msra.mxu0 %v1773_v4  ;;  %v1732_v13 = vpop.permute.xlu1 %1731 }
 0x4ed   : > { %v1734_v23 = vpop.permute.xlu0 %1733 }
 0x4ee   : > { %v1735_v24 = vsel %vm1408_vm3, %v1732_v13, %v1734_v23  ;;  %v1736_v25 = vsel %vm1408_vm3, %v1734_v23, %v1732_v13 }
 0x4ef   : > { %v1737_v28 = vmul.f32 %v1736_v25, %v4819_v42  ;;  %v1738_v14 = vmul.f32 %v1735_v24, %v4822_v43  ;;  %v1783_v24 = vld [vmem:[#allocation14] sm:$0xf] }
 0x4f0   : > { %v1742_v15 = vpop.permute.xlu1 %1741 }
 0x4f1   : > { %v1775_v29 = vpack.c.bf16 %v1737_v28, %v1729_v26  ;;  %v1744_v30 = vpop.permute.xlu0 %1743  ;;  %v1776_v33 = vpack.c.bf16 %v1738_v14, %v1730_v27 }
 0x4f2   : > { %v1745_v34 = vsel %vm1435_vm4, %v1742_v15, %v1744_v30  ;;  %v1746_v35 = vsel %vm1435_vm4, %v1744_v30, %v1742_v15 }
 0x4f3   : > { %v1747_v37 = vmul.f32 %v1745_v34, %v4840_v52  ;;  %v1748_v38 = vmul.f32 %v1746_v35, %v4843_v53  ;;  %1801 = vmatprep.subr.bf16.mxu0 %v1776_v33  ;;  %v1845_v33 = vld [vmem:[#allocation17] sm:$0xff] }
 0x4f4   : > { %1802 = vmatpush1.bf16.msra.mxu0 %v1775_v29  ;;  %v1750_v44 = vpop.permute.xlu1 %1749 }
 0x4f5   : > { %v1777_v45 = vpack.c.bf16 %v1747_v37, %v1739_v36  ;;  %v1752_v50 = vpop.permute.xlu0 %1751  ;;  %v1778_v51 = vpack.c.bf16 %v1748_v38, %v1740_v39 }
 0x4f6   : > { %v1753_v54 = vsel %vm1452_vm5, %v1750_v44, %v1752_v50  ;;  %v1754_v55 = vsel %vm1452_vm5, %v1752_v50, %v1750_v44 }
 0x4f7   : > { %1803 = vmatprep.subr.bf16.mxu0 %v1778_v51  ;;  %v1755_v59 = vmul.f32 %v1753_v54, %v4863_v16  ;;  %v1756_v60 = vmul.f32 %v1754_v55, %v4866_v17  ;;  %v1855_v51 = vld [vmem:[#allocation2] sm:$0x1] }
 0x4f8   : > { %v1758_v46 = vpop.permute.xlu1 %1757  ;;  %1804 = vmatpush1.bf16.msra.mxu0 %v1777_v45 }
 0x4f9   : > { %v1760_v56 = vpop.permute.xlu0 %1759 }
 0x4fa   : > { %v1761_v57 = vsel %vm1469_vm6, %v1758_v46, %v1760_v56  ;;  %v1762_v47 = vsel %vm1469_vm6, %v1760_v56, %v1758_v46  ;;  %v1858_v56 = vld [vmem:[#allocation18] sm:$0xff] }
 0x4fb   : > { %v1763_v62 = vmul.f32 %v1761_v57, %v4870_v10  ;;  %v1764_v63 = vmul.f32 %v1762_v47, %v4873_v22  ;;  %v1865_v47 = vld [vmem:[#allocation20] sm:$0xff] }
 0x4fc   : > { %v1766_v0 = vpop.permute.xlu1 %1765 }
 0x4fd   : > { %v1779_v1 = vpack.c.bf16 %v1763_v62, %v1755_v59  ;;  %v1768_v2 = vpop.permute.xlu0 %1767  ;;  %v1780_v3 = vpack.c.bf16 %v1764_v63, %v1756_v60 }
 0x4fe   : > { %v1769_v4 = vsel %vm1486_vm7, %v1766_v0, %v1768_v2  ;;  %v1770_v8 = vsel %vm1486_vm7, %v1768_v2, %v1766_v0 }
 0x4ff   : > { %v1771_v6 = vmul.f32 %v4892_v32, %v1769_v4  ;;  %v1772_v5 = vmul.f32 %v4889_v31, %v1770_v8  ;;  %1805 = vmatprep.subr.bf16.mxu0 %v1780_v3  ;;  %v1880_v3 = vld [vmem:[#allocation21] sm:$0xff] }
 0x500   : > { %1806 = vmatpush1.bf16.msra.mxu0 %v1779_v1  ;;  %v1881_v4 = vld [vmem:[#allocation3] sm:$0x1]  ;;  %v1882_v8 = vld [vmem:[#allocation4] sm:$0x1] }
 0x501   : > { %v1781_v9 = vpack.c.bf16 %v1771_v6, %v1771_v6  ;;  %v1782_v13 = vpack.c.bf16 %v1772_v5, %v1772_v5  ;;  %v1883_v6 = vld [vmem:[#allocation5] sm:$0x1] }
 0x503   : > { %3602 = vmatprep.subr.msk.bf16.mxu0 %vm1520_vm8, %v1782_v13  ;;  %v1794_v23 = vsel %vm1520_vm8, %v1781_v9, 0 }
 0x504   : > { %1808 = vmatpush1.bf16.msra.mxu0 %v1794_v23 }
 0x507   : > { %3603 = vmatmul.mubr.msk.bf16.vlgmr.msra.gmra.mrb[4].mxu0 %vm1516_vm9, %v1783_v24 }
 0x50d   : > { %v1788_v25 = vpop.permute.xlu1 %1787 }
 0x5da   : > { %v1833_v26 = vpop.f32.mrb[4].mxu0 }
 0x5db   : > { %v1834_v27 = vadd.f32 %v1833_v26, %v1788_v25  ;;  %v1835_v28 = vpop.f32.mrb[5].mxu0 }
 0x5dc   : > { %v1836_v14 = vadd.f32 %v1835_v28, %v1788_v25  ;;  %v1837_v15 = vpop.f32.mrb[6].mxu0 }
 0x5dd   : > { %v1838_v29 = vpop.f32.mrb[7].mxu0 }
 0x5de   : > { %v1840_v30 = vadd.f32 %v1836_v14, %v1834_v27 }
 0x5e0   : > { %1841 = vadd.xlane.f32.xlu0 %v1840_v30 }
 0x66d   : > { %v1842_v34 = vpop.xlane.xlu0 %1841 }
 0x66e   : > { %v1844_v35 = vmul.f32 0.00390625, %v1842_v34 }
 0x670   : > { %v1846_v36 = vmul.f32 %v1845_v33, %v1844_v35 }
 0x672   : > { %v1848_v37 = vsel %vm1847_vm10, %v1846_v36, 0.0 }
 0x673   : > { %v1849_v38 = vrot.slane %v1848_v37, 4 }
 0x675   : > { %v1850_v39 = vadd.f32 %v1849_v38, %v1848_v37 }
 0x677   : > { %v1851_v44 = vrot.slane %v1850_v39, 2 }
 0x679   : > { %v1852_v45 = vadd.f32 %v1851_v44, %v1850_v39 }
 0x67b   : > { %v1853_v50 = vrot.slane %v1852_v45, 1 }
 0x67d   : > { %v1854_v54 = vadd.f32 %v1853_v50, %v1852_v45 }
 0x67f   : > { %v1856_v55 = vadd.f32 %v1855_v51, %v1854_v54 }
 0x681   : > { %v1857_v46 = vmax.f32 %v1856_v55, 0.0 }
 0x683   : > { %v1862_v57 = vrot.slane %v1857_v46, %v4769_v12 }
 0x685   : > { %v1863_v59 = vmul.f32 %v1862_v57, %v1858_v56 }
 0x687   : > { %v1866_v60 = vadd.f32 %v1865_v47, %v1863_v59 }
 0x689   : > { %v1867_v62 = vsub.f32 0.0, %v1866_v60 }
 0x68b   : > { %v1868_v63 = vmul.f32 1.442695, %v1867_v62 }
 0x68d   : > { %3844 = vpow2.f32 %v1868_v63 }
 0x697   : > { %v3845_v0 = vpop.eup %3844 }
 0x698   : > { %v1870_v1 = vadd.f32 1.0, %v3845_v0 }
 0x69a   : > { %3846 = vrcp.f32 %v1870_v1 }
 0x6a4   : > { %v3847_v2 = vpop.eup %3846 }
 0x6a5   : > { %1875 = vperm.xlu1 %3823, %v3847_v2  }
 0x6a9   : > { %1896 = vperm.xlu1 %3823, %v1880_v3  }
 0x6ad   : > { %1915 = vperm.xlu1 %3823, %v1881_v4  }
 0x6b1   : > { %1928 = vperm.xlu1 %3823, %v1882_v8  }
 0x6b5   : > { %1886 = vperm.xlu1 %3823, %v1883_v6  }
 0x724   : > { %v1876_v5 = vpop.permute.xlu1 %1875 }
 0x725   : > { %v1878_v9 = vmul.f32 %v1876_v5, %v1834_v27  ;;  %v1879_v13 = vmul.f32 %v1876_v5, %v1836_v14 }
 0x728   : > { %v1897_v23 = vpop.permute.xlu1 %1896 }
 0x729   : > { %v1899_v24 = vmul.f32 %v1897_v23, %v1878_v9  ;;  %v1900_v25 = vmul.f32 %v1897_v23, %v1879_v13 }
 0x72b   : > { %v1901_v26 = vrot.slane %v1899_v24, 4  ;;  %v1907_v28 = vrot.slane %v1900_v25, 4 }
 0x72c   : > { %v1916_v15 = vpop.permute.xlu1 %1915 }
 0x72d   : > { %v1902_v29 = vadd.f32 %v1901_v26, %v1899_v24  ;;  %v1908_v30 = vadd.f32 %v1907_v28, %v1900_v25  ;;  %v1921_v27 = vrot.slane %v1916_v15, %v4769_v12  ;;  %v2094_v28 = vld [vmem:[%s5882_s22] sm:$0xff] }
 0x72f   : > { %v1903_v33 = vrot.slane %v1902_v29, 2  ;;  %v1909_v34 = vrot.slane %v1908_v30, 2 }
 0x730   : > { %v1929_v37 = vpop.permute.xlu1 %1928 }
 0x731   : > { %v1904_v35 = vadd.f32 %v1903_v33, %v1902_v29  ;;  %v1910_v36 = vadd.f32 %v1909_v34, %v1908_v30  ;;  %v1934_v46 = vrot.slane %v1929_v37, %v4769_v12 }
 0x733   : > { %v1905_v38 = vrot.slane %v1904_v35, 1  ;;  %v1911_v39 = vrot.slane %v1910_v36, 1 }
 0x734   : > { %v1887_v51 = vpop.permute.xlu1 %1886 }
 0x735   : > { %v1906_v44 = vadd.f32 %v1905_v38, %v1904_v35  ;;  %v1912_v45 = vadd.f32 %v1911_v39, %v1910_v36  ;;  %v1892_v47 = vrot.slane %v1887_v51, %v4769_v12 }
 0x737   : > { %v1922_v14 = vadd.f32 %v1921_v27, %v1906_v44  ;;  %v1923_v50 = vadd.f32 %v1921_v27, %v1912_v45 }
 0x739   : > { %v1924_v54 = vmax.f32 %v1922_v14, 0.0  ;;  %v1925_v55 = vmax.f32 %v1923_v50, 0.0 }
 0x73b   : > { %v1935_v56 = vmul.f32 %v1934_v46, %v1924_v54  ;;  %v1936_v57 = vmul.f32 %v1934_v46, %v1925_v55 }
 0x73d   : > { %v1937_v59 = vadd.f32 %v1935_v56, %v1892_v47  ;;  %v1938_v60 = vadd.f32 %v1936_v57, %v1892_v47 }
 0x73f   : > { %v1939_v62 = vsub.f32 0.0, %v1937_v59  ;;  %v1940_v63 = vsub.f32 0.0, %v1938_v60 }
 0x741   : > { %v1941_v0 = vmul.f32 1.442695, %v1939_v62  ;;  %v1943_v1 = vmul.f32 1.442695, %v1940_v63 }
 0x743   : > { %3848 = vpow2.f32 %v1941_v0 }
 0x744   : > { %3850 = vpow2.f32 %v1943_v1 }
 0x74d   : > { %v3849_v2 = vpop.eup %3848 }
 0x74e   : > { %v3851_v3 = vpop.eup %3850  ;;  %v1945_v4 = vadd.f32 1.0, %v3849_v2 }
 0x74f   : > { %v1946_v8 = vadd.f32 1.0, %v3851_v3 }
 0x750   : > { %3852 = vrcp.f32 %v1945_v4 }
 0x751   : > { %3854 = vrcp.f32 %v1946_v8 }
 0x75a   : > { %v3853_v6 = vpop.eup %3852 }
 0x75b   : > { %v3855_v5 = vpop.eup %3854  ;;  %v1951_v23 = vmul.f32 %v3853_v6, %v1878_v9  ;;  %v2032_v9 = vld [vmem:[#allocation24] sm:$0xff] }
 0x75c   : > { %v1952_v24 = vmul.f32 %v3855_v5, %v1879_v13  ;;  %v2095_v13 = vld [vmem:[%s5882_s22 + $0x8] sm:$0xff] }
 0x75d   : > { %v1953_v25 = vadd.f32 %v1951_v23, %v4904_v58 }
 0x75e   : > { %v5073_v26 = vadd.f32 %v1952_v24, %v4910_v61 }
 0x75f   : > { %1955 = vrot.lane.b32.xlu1 %v1953_v25, %s4302_s11  ;;  %v1987_v5 = vmul.f32 %v1953_v25, %v4833_v49 }
 0x760   : > { %1965 = vrot.lane.b32.xlu0 %v5073_v26, %s4301_s28 }
 0x763   : > { %1957 = vrot.lane.b32.xlu1 %v5073_v26, %s4302_s11 }
 0x764   : > { %1997 = vrot.lane.b32.xlu0 %v1953_v25, %s5831_s9 }
 0x767   : > { %1963 = vrot.lane.b32.xlu1 %v1953_v25, %s4301_s28 }
 0x768   : > { %2005 = vrot.lane.b32.xlu0 %v1953_v25, %s5829_s18 }
 0x76b   : > { %1971 = vrot.lane.b32.xlu1 %v1953_v25, %s4303_s16 }
 0x76c   : > { %2013 = vrot.lane.b32.xlu0 %v1953_v25, %s5827_s20 }
 0x76f   : > { %1973 = vrot.lane.b32.xlu1 %v5073_v26, %s4303_s16 }
 0x770   : > { %2035 = vperm.xlu0 %3822, %v2032_v9   ;;  %v1988_v9 = vmul.f32 %v5073_v26, %v4830_v48 }
 0x773   : > { %1979 = vrot.lane.b32.xlu1 %v1953_v25, %s5835_s14 }
 0x774   : > { %2103 = vperm.xlu0 %3822, %v2095_v13  }
 0x777   : > { %1981 = vrot.lane.b32.xlu1 %v5073_v26, %s5835_s14 }
 0x77b   : > { %1989 = vrot.lane.b32.xlu1 %v1953_v25, %s5833_s0 }
 0x77f   : > { %1991 = vrot.lane.b32.xlu1 %v5073_v26, %s5833_s0 }
 0x783   : > { %1999 = vrot.lane.b32.xlu1 %v5073_v26, %s5831_s9 }
 0x787   : > { %2007 = vrot.lane.b32.xlu1 %v5073_v26, %s5829_s18 }
 0x78b   : > { %2015 = vrot.lane.b32.xlu1 %v5073_v26, %s5827_s20 }
 0x78f   : > { %2098 = vperm.xlu1 %3823, %v2094_v28  }
 0x7d1   : > { %v1956_v15 = vpop.permute.xlu1 %1955 }
 0x7d2   : > { %v1966_v34 = vpop.permute.xlu0 %1965 }
 0x7d5   : > { %v1958_v29 = vpop.permute.xlu1 %1957 }
 0x7d6   : > { %v1959_v30 = vsel %vm1357_vm1, %v1956_v15, %v1958_v29  ;;  %v1960_v33 = vsel %vm1357_vm1, %v1958_v29, %v1956_v15  ;;  %v1998_v3 = vpop.permute.xlu0 %1997 }
 0x7d7   : > { %v1961_v38 = vmul.f32 %v1960_v33, %v4789_v20  ;;  %v1962_v39 = vmul.f32 %v1959_v30, %v4782_v18 }
 0x7d9   : > { %v1964_v35 = vpop.permute.xlu1 %1963 }
 0x7da   : > { %v1967_v36 = vsel %vm1374_vm0, %v1964_v35, %v1966_v34  ;;  %v1968_v37 = vsel %vm1374_vm0, %v1966_v34, %v1964_v35  ;;  %v2006_v29 = vpop.permute.xlu0 %2005 }
 0x7db   : > { %v1969_v44 = vmul.f32 %v1968_v37, %v4792_v21  ;;  %v1970_v45 = vmul.f32 %v1967_v36, %v4785_v19 }
 0x7dd   : > { %v2021_v27 = vpack.c.bf16 %v1969_v44, %v1961_v38  ;;  %v1972_v14 = vpop.permute.xlu1 %1971  ;;  %v2022_v50 = vpack.c.bf16 %v1970_v45, %v1962_v39 }
 0x7de   : > { %v2014_v39 = vpop.permute.xlu0 %2013 }
 0x7df   : > { %2047 = vmatprep.subr.bf16.mxu1 %v2022_v50 }
 0x7e0   : > { %2048 = vmatpush1.bf16.msra.mxu1 %v2021_v27 }
 0x7e1   : > { %v1974_v51 = vpop.permute.xlu1 %1973 }
 0x7e2   : > { %v1975_v55 = vsel %vm1391_vm2, %v1972_v14, %v1974_v51  ;;  %v1976_v46 = vsel %vm1391_vm2, %v1974_v51, %v1972_v14 }
 0x7e3   : > { %v1977_v59 = vmul.f32 %v1976_v46, %v4813_v40  ;;  %v1978_v60 = vmul.f32 %v1975_v55, %v4816_v41 }
 0x7e5   : > { %v1980_v54 = vpop.permute.xlu1 %1979 }
 0x7e9   : > { %v1982_v56 = vpop.permute.xlu1 %1981 }
 0x7ea   : > { %v1983_v57 = vsel %vm1408_vm3, %v1980_v54, %v1982_v56  ;;  %v1984_v47 = vsel %vm1408_vm3, %v1982_v56, %v1980_v54 }
 0x7eb   : > { %v1985_v62 = vmul.f32 %v1984_v47, %v4819_v42  ;;  %v1986_v63 = vmul.f32 %v1983_v57, %v4822_v43  ;;  %v2031_v57 = vld [vmem:[#allocation23] sm:$0xf] }
 0x7ed   : > { %v2023_v0 = vpack.c.bf16 %v1985_v62, %v1977_v59  ;;  %v1990_v1 = vpop.permute.xlu1 %1989  ;;  %v2024_v2 = vpack.c.bf16 %v1986_v63, %v1978_v60 }
 0x7ef   : > { %2049 = vmatprep.subr.bf16.mxu1 %v2024_v2  ;;  %v2036_v47 = vpop.permute.xlu0 %2035 }
 0x7f0   : > { %2050 = vmatpush1.bf16.msra.mxu1 %v2023_v0 }
 0x7f1   : > { %v1992_v4 = vpop.permute.xlu1 %1991 }
 0x7f2   : > { %v1993_v8 = vsel %vm1435_vm4, %v1990_v1, %v1992_v4  ;;  %v1994_v6 = vsel %vm1435_vm4, %v1992_v4, %v1990_v1 }
 0x7f3   : > { %v1995_v23 = vmul.f32 %v1993_v8, %v4840_v52  ;;  %v1996_v24 = vmul.f32 %v1994_v6, %v4843_v53  ;;  %v3828_v8 = vld [vmem:[%s5883_s1] sm:$0xff]   ;;  %s5888_s1 = sld [smem:[#allocation45_spill]] }
 0x7f5   : > { %v2025_v13 = vpack.c.bf16 %v1995_v23, %v1987_v5  ;;  %v2000_v28 = vpop.permute.xlu1 %1999  ;;  %v2026_v15 = vpack.c.bf16 %v1996_v24, %v1988_v9  ;;  %v2104_v9 = vpop.permute.xlu0 %2103 }
 0x7f6   : > { %v2001_v30 = vsel %vm1452_vm5, %v1998_v3, %v2000_v28  ;;  %v2002_v33 = vsel %vm1452_vm5, %v2000_v28, %v1998_v3 }
 0x7f7   : > { %2051 = vmatprep.subr.bf16.mxu1 %v2026_v15  ;;  %v2003_v26 = vmul.f32 %v2001_v30, %v4863_v16  ;;  %v2004_v36 = vmul.f32 %v2002_v33, %v4866_v17 }
 0x7f8   : > { %2052 = vmatpush1.bf16.msra.mxu1 %v2025_v13 }
 0x7f9   : > { %v2008_v25 = vpop.permute.xlu1 %2007 }
 0x7fa   : > { %v2009_v34 = vsel %vm1469_vm6, %v2006_v29, %v2008_v25  ;;  %v2010_v35 = vsel %vm1469_vm6, %v2008_v25, %v2006_v29 }
 0x7fb   : > { %v2011_v37 = vmul.f32 %v2009_v34, %v4870_v10  ;;  %v2012_v38 = vmul.f32 %v2010_v35, %v4873_v22  ;;  %v3829_v34 = vld [vmem:[%s5884_s2 + $0x4] ss:$8 sps:$4 sm:$0xff]  }
 0x7fc   : > { %v2320_v35 = vld [vmem:[%s5885_s7] sm:$0xff] }
 0x7fd   : > { %v2027_v44 = vpack.c.bf16 %v2011_v37, %v2003_v26  ;;  %v2016_v45 = vpop.permute.xlu1 %2015  ;;  %v2028_v27 = vpack.c.bf16 %v2012_v38, %v2004_v36  ;;  %v2321_v26 = vld [vmem:[%s5885_s7 + $0x8] sm:$0xff] }
 0x7fe   : > { %v2017_v14 = vsel %vm1486_vm7, %v2014_v39, %v2016_v45  ;;  %v2018_v50 = vsel %vm1486_vm7, %v2016_v45, %v2014_v39 }
 0x7ff   : > { %v2019_v51 = vmul.f32 %v4892_v32, %v2017_v14  ;;  %v2020_v54 = vmul.f32 %v4889_v31, %v2018_v50  ;;  %2053 = vmatprep.subr.bf16.mxu1 %v2028_v27 }
 0x800   : > { %2054 = vmatpush1.bf16.msra.mxu1 %v2027_v44 }
 0x801   : > { %v2029_v55 = vpack.c.bf16 %v2019_v51, %v2019_v51  ;;  %v2030_v46 = vpack.c.bf16 %v2020_v54, %v2020_v54 }
 0x803   : > { %3604 = vmatprep.subr.msk.bf16.mxu1 %vm1520_vm8, %v2030_v46  ;;  %v2042_v56 = vsel %vm1520_vm8, %v2029_v55, 0 }
 0x804   : > { %2056 = vmatpush1.bf16.msra.mxu1 %v2042_v56 }
 0x807   : > { %3605 = vmatmul.mubr.msk.bf16.vlgmr.msra.gmra.mrb[4].mxu1 %vm1516_vm9, %v2031_v57 }
 0x808   : > { %2153 = vmatprep.mubr.bf16.mxu1 %v4307_v7 }
 0x80e   : > { %v2099_v6 = vpop.permute.xlu1 %2098 }
 0x8da   : > { %v2081_v59 = vpop.f32.mrb[4].mxu1 }
 0x8db   : > { %v2082_v32 = vadd.f32 %v2081_v59, %v2036_v47  ;;  %v2083_v60 = vpop.f32.mrb[5].mxu1 }
 0x8dc   : > { %v2084_v31 = vadd.f32 %v2083_v60, %v2036_v47  ;;  %v2085_v62 = vpop.f32.mrb[6].mxu1 }
 0x8dd   : > { %v2088_v63 = vadd.f32 %v2082_v32, %v4904_v58  ;;  %v2086_v0 = vpop.f32.mrb[7].mxu1 }
 0x8de   : > { %v2089_v1 = vadd.f32 %v2084_v31, %v4910_v61 }
 0x8df   : > { %v2092_v2 = vpack.c.bf16 %v2088_v63, %v2088_v63 }
 0x8e0   : > { %v2093_v3 = vpack.c.bf16 %v2089_v1, %v2089_v1 }
 0x8e1   : > { %v2116_v4 = vsel %vm1520_vm8, %v2092_v2, 0 }
 0x8e2   : > { %3607 = vmatprep.subr.msk.bf16.mxu1 %vm1520_vm8, %v2093_v3 }
 0x8e3   : > { %2122 = vmatpush1.bf16.msra.mxu1 %v2116_v4 }
 0x8e6   : > { %3608 = vmatmul.mubr.msk.bf16.vlgmr.msra.gmra.mrb[8].mxu1 %vm2111_vm11, %v3828_v8 }
 0x8e7   : > { %3611 = vmatprep.mubr.msk.bf16.mxu1 %vm2341_vm12, %v3829_v34 }
 0x9b9   : > { %v2155_v5 = vpop.f32.mrb[8].mxu1 }
 0x9ba   : > { %v2156_v23 = vadd.f32 %v2155_v5, %v2099_v6  ;;  %v2157_v24 = vpop.f32.mrb[9].mxu1 }
 0x9bb   : > { %v2159_v58 = vpop.f32.mrb[10].mxu1  ;;  %v2158_v29 = vadd.f32 %v2157_v24, %v2099_v6 }
 0x9bc   : > { %v5162_v13 = vmax.f32 %v2156_v23, 0.0  ;;  %v2160_v61 = vadd.f32 %v2159_v58, %v2104_v9  ;;  %v2161_v28 = vpop.f32.mrb[11].mxu1 }
 0x9bd   : > { %v2162_v30 = vadd.f32 %v2161_v28, %v2104_v9  ;;  %v5192_v33 = vmax.f32 %v2158_v29, 0.0 }
 0x9be   : > { %v5164_v15 = vmax.f32 %v2160_v61, 0.0  ;;  %2168 = vrot.lane.b32.xlu1 %v5162_v13, %s4302_s11 }
 0x9bf   : > { %v5196_v25 = vmax.f32 %v2162_v30, 0.0 }
 0x9c0   : > { %2170 = vrot.lane.b32.xlu0 %v5164_v15, %s4302_s11 }
 0x9c2   : > { %2184 = vrot.lane.b32.xlu1 %v5162_v13, %s4301_s28 }
 0x9c4   : > { %2186 = vrot.lane.b32.xlu0 %v5164_v15, %s4301_s28 }
 0x9c6   : > { %2200 = vrot.lane.b32.xlu1 %v5162_v13, %s4303_s16 }
 0x9c8   : > { %2202 = vrot.lane.b32.xlu0 %v5164_v15, %s4303_s16 }
 0x9ca   : > { %2216 = vrot.lane.b32.xlu1 %v5162_v13, %s5835_s14 }
 0x9cc   : > { %2218 = vrot.lane.b32.xlu0 %v5164_v15, %s5835_s14 }
 0x9ce   : > { %2236 = vrot.lane.b32.xlu1 %v5162_v13, %s5833_s0 }
 0x9d0   : > { %2238 = vrot.lane.b32.xlu0 %v5164_v15, %s5833_s0 }
 0x9d2   : > { %2252 = vrot.lane.b32.xlu1 %v5162_v13, %s5831_s9 }
 0x9d4   : > { %2254 = vrot.lane.b32.xlu0 %v5164_v15, %s5831_s9 }
 0x9d6   : > { %2268 = vrot.lane.b32.xlu1 %v5162_v13, %s5829_s18 }
 0x9d8   : > { %2270 = vrot.lane.b32.xlu0 %v5164_v15, %s5829_s18 }
 0x9da   : > { %2172 = vrot.lane.b32.xlu1 %v5192_v33, %s4302_s11 }
 0x9dc   : > { %2174 = vrot.lane.b32.xlu0 %v5196_v25, %s4302_s11 }
 0x9de   : > { %2188 = vrot.lane.b32.xlu1 %v5192_v33, %s4301_s28 }
 0x9e0   : > { %2190 = vrot.lane.b32.xlu0 %v5196_v25, %s4301_s28 }
 0x9e2   : > { %2204 = vrot.lane.b32.xlu1 %v5192_v33, %s4303_s16 }
 0x9e4   : > { %2206 = vrot.lane.b32.xlu0 %v5196_v25, %s4303_s16 }
 0x9e6   : > { %2220 = vrot.lane.b32.xlu1 %v5192_v33, %s5835_s14 }
 0x9e8   : > { %2222 = vrot.lane.b32.xlu0 %v5196_v25, %s5835_s14 }
 0x9ea   : > { %2284 = vrot.lane.b32.xlu1 %v5162_v13, %s5827_s20 }
 0x9ec   : > { %2286 = vrot.lane.b32.xlu0 %v5164_v15, %s5827_s20 }
 0x9ee   : > { %2240 = vrot.lane.b32.xlu1 %v5192_v33, %s5833_s0 }
 0x9f0   : > { %2242 = vrot.lane.b32.xlu0 %v5196_v25, %s5833_s0 }
 0x9f2   : > { %2256 = vrot.lane.b32.xlu1 %v5192_v33, %s5831_s9 }
 0x9f4   : > { %2258 = vrot.lane.b32.xlu0 %v5196_v25, %s5831_s9 }
 0x9f6   : > { %2272 = vrot.lane.b32.xlu1 %v5192_v33, %s5829_s18 }
 0x9f8   : > { %2274 = vrot.lane.b32.xlu0 %v5196_v25, %s5829_s18 }
 0x9fa   : > { %2288 = vrot.lane.b32.xlu1 %v5192_v33, %s5827_s20 }
 0x9fc   : > { %2290 = vrot.lane.b32.xlu0 %v5196_v25, %s5827_s20 }
 0x9fe   : > { %2324 = vperm.xlu1 %3823, %v2320_v35  }
 0xa00   : > { %2329 = vperm.xlu0 %3822, %v2321_v26  }
 0xa30   : > { %v2169_v36 = vpop.permute.xlu1 %2168 }
 0xa32   : > { %v2171_v37 = vpop.permute.xlu0 %2170 }
 0xa34   : > { %v2185_v38 = vpop.permute.xlu1 %2184 }
 0xa36   : > { %v2187_v39 = vpop.permute.xlu0 %2186 }
 0xa38   : > { %v2201_v44 = vpop.permute.xlu1 %2200 }
 0xa3a   : > { %v2203_v45 = vpop.permute.xlu0 %2202 }
 0xa3c   : > { %v2217_v27 = vpop.permute.xlu1 %2216 }
 0xa3e   : > { %v2219_v14 = vpop.permute.xlu0 %2218 }
 0xa40   : > { %v5238_v50 = vpop.permute.xlu1 %2236 }
 0xa42   : > { %v5240_v51 = vpop.permute.xlu0 %2238 }
 0xa44   : > { %v5242_v54 = vpop.permute.xlu1 %2252 }
 0xa46   : > { %v5244_v55 = vpop.permute.xlu0 %2254 }
 0xa48   : > { %v5246_v46 = vpop.permute.xlu1 %2268 }
 0xa4a   : > { %v5248_v56 = vpop.permute.xlu0 %2270 }
 0xa4c   : > { %v2173_v57 = vpop.permute.xlu1 %2172 }
 0xa4d   : > { %v2176_v47 = vsel %vm1357_vm1, %v2169_v36, %v2173_v57  ;;  %v2178_v59 = vsel %vm1357_vm1, %v2173_v57, %v2169_v36 }
 0xa4e   : > { %v2175_v32 = vpop.permute.xlu0 %2174  ;;  %v2180_v62 = vmul.f32 %v2178_v59, %v4789_v20  ;;  %v2181_v63 = vmul.f32 %v2176_v47, %v4782_v18 }
 0xa4f   : > { %v2177_v60 = vsel %vm1357_vm1, %v2171_v37, %v2175_v32  ;;  %v2179_v31 = vsel %vm1357_vm1, %v2175_v32, %v2171_v37 }
 0xa50   : > { %v2182_v0 = vmul.f32 %v2179_v31, %v4789_v20  ;;  %v2183_v1 = vmul.f32 %v2177_v60, %v4782_v18  ;;  %v2189_v2 = vpop.permute.xlu1 %2188 }
 0xa51   : > { %v2192_v3 = vsel %vm1374_vm0, %v2185_v38, %v2189_v2  ;;  %v2194_v4 = vsel %vm1374_vm0, %v2189_v2, %v2185_v38 }
 0xa52   : > { %v2300_v8 = vpack.c.bf16 %v2182_v0, %v2180_v62  ;;  %v2191_v6 = vpop.permute.xlu0 %2190  ;;  %v2301_v5 = vpack.c.bf16 %v2183_v1, %v2181_v63  ;;  %v2196_v9 = vmul.f32 %v2194_v4, %v4792_v21  ;;  %v2197_v58 = vmul.f32 %v2192_v3, %v4785_v19 }
 0xa53   : > { %v2193_v23 = vsel %vm1374_vm0, %v2187_v39, %v2191_v6  ;;  %v2195_v24 = vsel %vm1374_vm0, %v2191_v6, %v2187_v39  ;;  %v2235_v1 = vmul.f32 %v5196_v25, %v4830_v48 }
 0xa54   : > { %v2198_v61 = vmul.f32 %v2195_v24, %v4792_v21  ;;  %v2199_v28 = vmul.f32 %v2193_v23, %v4785_v19  ;;  %2345 = vmatprep.subr.bf16.mxu1 %v2301_v5  ;;  %v2205_v29 = vpop.permute.xlu1 %2204  ;;  %v2234_v24 = vmul.f32 %v5164_v15, %v4833_v49 }
 0xa55   : > { %v2208_v30 = vsel %vm1391_vm2, %v2201_v44, %v2205_v29  ;;  %v2210_v34 = vsel %vm1391_vm2, %v2205_v29, %v2201_v44  ;;  %2346 = vmatpush1.bf16.msra.mxu1 %v2300_v8  ;;  %v2232_v29 = vmul.f32 %v5162_v13, %v4833_v49 }
 0xa56   : > { %v2302_v35 = vpack.c.bf16 %v2198_v61, %v2196_v9  ;;  %v2207_v26 = vpop.permute.xlu0 %2206  ;;  %v2303_v36 = vpack.c.bf16 %v2199_v28, %v2197_v58  ;;  %v2212_v39 = vmul.f32 %v2210_v34, %v4813_v40  ;;  %v2213_v57 = vmul.f32 %v2208_v30, %v4816_v41 }
 0xa57   : > { %v2209_v37 = vsel %vm1391_vm2, %v2203_v45, %v2207_v26  ;;  %v2211_v38 = vsel %vm1391_vm2, %v2207_v26, %v2203_v45  ;;  %v2308_v26 = vpack.c.bf16 %v2234_v24, %v2232_v29 }
 0xa58   : > { %v2214_v47 = vmul.f32 %v2211_v38, %v4813_v40  ;;  %v2215_v59 = vmul.f32 %v2209_v37, %v4816_v41  ;;  %2347 = vmatprep.subr.bf16.mxu1 %v2303_v36  ;;  %v2221_v44 = vpop.permute.xlu1 %2220 }
 0xa59   : > { %v2224_v32 = vsel %vm1408_vm3, %v2217_v27, %v2221_v44  ;;  %v2226_v60 = vsel %vm1408_vm3, %v2221_v44, %v2217_v27  ;;  %2348 = vmatpush1.bf16.msra.mxu1 %v2302_v35 }
 0xa5a   : > { %v2304_v31 = vpack.c.bf16 %v2214_v47, %v2212_v39  ;;  %v2223_v62 = vpop.permute.xlu0 %2222  ;;  %v2305_v45 = vpack.c.bf16 %v2215_v59, %v2213_v57  ;;  %v2228_v2 = vmul.f32 %v2226_v60, %v4819_v42  ;;  %v2229_v3 = vmul.f32 %v2224_v32, %v4822_v43 }
 0xa5b   : > { %v2225_v63 = vsel %vm1408_vm3, %v2219_v14, %v2223_v62  ;;  %v2227_v0 = vsel %vm1408_vm3, %v2223_v62, %v2219_v14  ;;  %v2233_v14 = vmul.f32 %v5192_v33, %v4830_v48 }
 0xa5c   : > { %v2230_v4 = vmul.f32 %v2227_v0, %v4819_v42  ;;  %v2231_v27 = vmul.f32 %v2225_v63, %v4822_v43  ;;  %2349 = vmatprep.subr.bf16.mxu1 %v2305_v45  ;;  %v2285_v8 = vpop.permute.xlu1 %2284 }
 0xa5d   : > { %2350 = vmatpush1.bf16.msra.mxu1 %v2304_v31  ;;  %v2309_v58 = vpack.c.bf16 %v2235_v1, %v2233_v14 }
 0xa5e   : > { %v2306_v6 = vpack.c.bf16 %v2230_v4, %v2228_v2  ;;  %v2287_v5 = vpop.permute.xlu0 %2286  ;;  %v2307_v23 = vpack.c.bf16 %v2231_v27, %v2229_v3 }
 0xa60   : > { %2351 = vmatprep.subr.bf16.mxu1 %v2307_v23  ;;  %v2241_v9 = vpop.permute.xlu1 %2240 }
 0xa61   : > { %v2244_v61 = vsel %vm1435_vm4, %v5238_v50, %v2241_v9  ;;  %v2246_v28 = vsel %vm1435_vm4, %v2241_v9, %v5238_v50  ;;  %2352 = vmatpush1.bf16.msra.mxu1 %v2306_v6 }
 0xa62   : > { %v2243_v30 = vpop.permute.xlu0 %2242  ;;  %2353 = vmatprep.subr.bf16.mxu1 %v2309_v58  ;;  %v2248_v36 = vmul.f32 %v2244_v61, %v4840_v52  ;;  %v2249_v37 = vmul.f32 %v2246_v28, %v4843_v53 }
 0xa63   : > { %v2245_v34 = vsel %vm1435_vm4, %v5240_v51, %v2243_v30  ;;  %v2247_v35 = vsel %vm1435_vm4, %v2243_v30, %v5240_v51 }
 0xa64   : > { %v2250_v50 = vmul.f32 %v2245_v34, %v4840_v52  ;;  %v2251_v38 = vmul.f32 %v2247_v35, %v4843_v53  ;;  %v2257_v39 = vpop.permute.xlu1 %2256  ;;  %v5363_v34 = vld [vmem:[%s5881_s15 + $0x10] ss:$0 sm:$0xff] }
 0xa65   : > { %v2260_v57 = vsel %vm1452_vm5, %v5242_v54, %v2257_v39  ;;  %v2262_v47 = vsel %vm1452_vm5, %v2257_v39, %v5242_v54  ;;  %2354 = vmatpush1.bf16.msra.mxu1 %v2308_v26  ;;  %v5367_v26 = vld [vmem:[%s5881_s15 + $0x18] ss:$0 sm:$0xff]  ;;  %v3831_v39 = vld [vmem:[%s5884_s2] ss:$8 sps:$4 sm:$0xff]   ;;  %s5903_s2 = sld [smem:[#allocation54_spill]] }
 0xa66   : > { %v2310_v51 = vpack.c.bf16 %v2250_v50, %v2248_v36  ;;  %v2259_v59 = vpop.permute.xlu0 %2258  ;;  %v2311_v44 = vpack.c.bf16 %v2251_v38, %v2249_v37  ;;  %v2264_v31 = vmul.f32 %v2260_v57, %v4863_v16  ;;  %v2265_v62 = vmul.f32 %v2262_v47, %v4866_v17 }
 0xa67   : > { %v2261_v32 = vsel %vm1452_vm5, %v5244_v55, %v2259_v59  ;;  %v2263_v60 = vsel %vm1452_vm5, %v2259_v59, %v5244_v55 }
 0xa68   : > { %v2266_v45 = vmul.f32 %v2261_v32, %v4863_v16  ;;  %v2267_v54 = vmul.f32 %v2263_v60, %v4866_v17  ;;  %v2273_v63 = vpop.permute.xlu1 %2272  ;;  %2355 = vmatprep.subr.bf16.mxu1 %v2311_v44 }
 0xa69   : > { %v2276_v0 = vsel %vm1469_vm6, %v5246_v46, %v2273_v63  ;;  %v2278_v1 = vsel %vm1469_vm6, %v2273_v63, %v5246_v46  ;;  %2356 = vmatpush1.bf16.msra.mxu1 %v2310_v51 }
 0xa6a   : > { %v2312_v55 = vpack.c.bf16 %v2266_v45, %v2264_v31  ;;  %v2275_v2 = vpop.permute.xlu0 %2274  ;;  %v2313_v3 = vpack.c.bf16 %v2267_v54, %v2265_v62  ;;  %v2280_v6 = vmul.f32 %v2276_v0, %v4870_v10  ;;  %v2281_v23 = vmul.f32 %v2278_v1, %v4873_v22 }
 0xa6b   : > { %v2277_v4 = vsel %vm1469_vm6, %v5248_v56, %v2275_v2  ;;  %v2279_v27 = vsel %vm1469_vm6, %v2275_v2, %v5248_v56 }
 0xa6c   : > { %v2282_v46 = vmul.f32 %v2277_v4, %v4870_v10  ;;  %v2283_v14 = vmul.f32 %v2279_v27, %v4873_v22  ;;  %v2289_v24 = vpop.permute.xlu1 %2288  ;;  %2357 = vmatprep.subr.bf16.mxu1 %v2313_v3 }
 0xa6d   : > { %v2292_v9 = vsel %vm1486_vm7, %v2285_v8, %v2289_v24  ;;  %v2294_v58 = vsel %vm1486_vm7, %v2289_v24, %v2285_v8  ;;  %2358 = vmatpush1.bf16.msra.mxu1 %v2312_v55  ;;  %v3832_v24 = vld [vmem:[%s5886_s4 + $0x4] ss:$8 sps:$4 sm:$0xff]  }
 0xa6e   : > { %v2314_v61 = vpack.c.bf16 %v2282_v46, %v2280_v6  ;;  %v2291_v56 = vpop.permute.xlu0 %2290  ;;  %v2315_v28 = vpack.c.bf16 %v2283_v14, %v2281_v23  ;;  %v2296_v35 = vmul.f32 %v5363_v34, %v2292_v9  ;;  %v2297_v36 = vmul.f32 %v5367_v26, %v2294_v58  ;;  %3614 = vmatprep.mubr.msk.bf16.mxu0 %vm2341_vm12, %v3832_v24  ;;  %v2548_v9 = vld [vmem:[%s5887_s26] sm:$0xff]  ;;  %v2549_v58 = vld [vmem:[%s5887_s26 + $0x8] sm:$0xff] }
 0xa6f   : > { %v2293_v29 = vsel %vm1486_vm7, %v2287_v5, %v2291_v56  ;;  %v2295_v30 = vsel %vm1486_vm7, %v2291_v56, %v2287_v5 }
 0xa70   : > { %v2298_v8 = vmul.f32 %v5363_v34, %v2293_v29  ;;  %v2299_v37 = vmul.f32 %v5367_v26, %v2295_v30  ;;  %2359 = vmatprep.subr.bf16.mxu1 %v2315_v28 }
 0xa71   : > { %2360 = vmatpush1.bf16.msra.mxu1 %v2314_v61 }
 0xa72   : > { %v2316_v50 = vpack.c.bf16 %v2298_v8, %v2296_v35  ;;  %v2317_v38 = vpack.c.bf16 %v2299_v37, %v2297_v36 }
 0xa74   : > { %2361 = vmatprep.subr.bf16.mxu1 %v2317_v38 }
 0xa75   : > { %2362 = vmatpush1.bf16.msra.mxu1 %v2316_v50 }
 0xa78   : > { %2378 = vmatmul.mubr.bf16.vlgmr.msra.gmra.mrb[12].mxu1 %v3831_v39 }
 0xa7d   : > { %v2325_v5 = vpop.permute.xlu1 %2324 }
 0xa7f   : > { %v2330_v59 = vpop.permute.xlu0 %2329 }
 0xb4b   : > { %v2379_v57 = vpop.f32.mrb[12].mxu1 }
 0xb4c   : > { %v2380_v47 = vadd.f32 %v2379_v57, %v2325_v5  ;;  %v2381_v51 = vpop.f32.mrb[13].mxu1 }
 0xb4d   : > { %v2382_v44 = vadd.f32 %v2381_v51, %v2325_v5  ;;  %v2383_v32 = vpop.f32.mrb[14].mxu1 }
 0xb4e   : > { %v2388_v60 = vmax.f32 %v2380_v47, 0.0  ;;  %v2384_v31 = vadd.f32 %v2383_v32, %v2330_v59  ;;  %v2385_v62 = vpop.f32.mrb[15].mxu1 }
 0xb4f   : > { %v2389_v45 = vmax.f32 %v2382_v44, 0.0  ;;  %v2386_v54 = vadd.f32 %v2385_v62, %v2330_v59 }
 0xb50   : > { %v2392_v63 = vadd.f32 %v2388_v60, %v5162_v13  ;;  %v2390_v0 = vmax.f32 %v2384_v31, 0.0 }
 0xb51   : > { %v2393_v1 = vadd.f32 %v2389_v45, %v5192_v33  ;;  %v2391_v55 = vmax.f32 %v2386_v54, 0.0 }
 0xb52   : > { %v2394_v2 = vadd.f32 %v2390_v0, %v5164_v15  ;;  %2396 = vrot.lane.b32.xlu1 %v2392_v63, %s4302_s11  ;;  %v5380_v4 = vmul.f32 %v2392_v63, %v4833_v49 }
 0xb53   : > { %v2395_v3 = vadd.f32 %v2391_v55, %v5196_v25  ;;  %v5386_v6 = vmul.f32 %v2393_v1, %v4830_v48 }
 0xb54   : > { %2398 = vrot.lane.b32.xlu0 %v2394_v2, %s4302_s11  ;;  %v5383_v27 = vmul.f32 %v2394_v2, %v4833_v49 }
 0xb55   : > { %v5389_v23 = vmul.f32 %v2395_v3, %v4830_v48 }
 0xb56   : > { %2412 = vrot.lane.b32.xlu1 %v2392_v63, %s4301_s28  ;;  %v2536_v46 = vpack.c.bf16 %v5383_v27, %v5380_v4 }
 0xb57   : > { %v2537_v14 = vpack.c.bf16 %v5389_v23, %v5386_v6 }
 0xb58   : > { %2414 = vrot.lane.b32.xlu0 %v2394_v2, %s4301_s28 }
 0xb5a   : > { %2428 = vrot.lane.b32.xlu1 %v2392_v63, %s4303_s16 }
 0xb5c   : > { %2430 = vrot.lane.b32.xlu0 %v2394_v2, %s4303_s16 }
 0xb5e   : > { %2444 = vrot.lane.b32.xlu1 %v2392_v63, %s5835_s14 }
 0xb60   : > { %2446 = vrot.lane.b32.xlu0 %v2394_v2, %s5835_s14 }
 0xb62   : > { %2464 = vrot.lane.b32.xlu1 %v2392_v63, %s5833_s0 }
 0xb64   : > { %2466 = vrot.lane.b32.xlu0 %v2394_v2, %s5833_s0 }
 0xb66   : > { %2480 = vrot.lane.b32.xlu1 %v2392_v63, %s5831_s9 }
 0xb68   : > { %2482 = vrot.lane.b32.xlu0 %v2394_v2, %s5831_s9 }
 0xb6a   : > { %2496 = vrot.lane.b32.xlu1 %v2392_v63, %s5829_s18 }
 0xb6c   : > { %2498 = vrot.lane.b32.xlu0 %v2394_v2, %s5829_s18 }
 0xb6e   : > { %2400 = vrot.lane.b32.xlu1 %v2393_v1, %s4302_s11 }
 0xb70   : > { %2402 = vrot.lane.b32.xlu0 %v2395_v3, %s4302_s11 }
 0xb72   : > { %2416 = vrot.lane.b32.xlu1 %v2393_v1, %s4301_s28 }
 0xb74   : > { %2418 = vrot.lane.b32.xlu0 %v2395_v3, %s4301_s28 }
 0xb76   : > { %2432 = vrot.lane.b32.xlu1 %v2393_v1, %s4303_s16 }
 0xb78   : > { %2434 = vrot.lane.b32.xlu0 %v2395_v3, %s4303_s16 }
 0xb7a   : > { %2448 = vrot.lane.b32.xlu1 %v2393_v1, %s5835_s14 }
 0xb7c   : > { %2450 = vrot.lane.b32.xlu0 %v2395_v3, %s5835_s14  ;;  %s5894_s14 = sld [smem:[#allocation47_spill]] }
 0xb7e   : > { %2512 = vrot.lane.b32.xlu1 %v2392_v63, %s5827_s20 }
 0xb80   : > { %2514 = vrot.lane.b32.xlu0 %v2394_v2, %s5827_s20 }
 0xb82   : > { %2468 = vrot.lane.b32.xlu1 %v2393_v1, %s5833_s0 }
 0xb84   : > { %2470 = vrot.lane.b32.xlu0 %v2395_v3, %s5833_s0  ;;  %s5892_s0 = sld [smem:[#allocation44_spill]] }
 0xb86   : > { %2484 = vrot.lane.b32.xlu1 %v2393_v1, %s5831_s9 }
 0xb88   : > { %2486 = vrot.lane.b32.xlu0 %v2395_v3, %s5831_s9  ;;  %s5891_s9 = sld [smem:[#allocation43_spill]] }
 0xb8a   : > { %2500 = vrot.lane.b32.xlu1 %v2393_v1, %s5829_s18 }
 0xb8c   : > { %2502 = vrot.lane.b32.xlu0 %v2395_v3, %s5829_s18  ;;  %s5890_s18 = sld [smem:[#allocation42_spill]] }
 0xb8e   : > { %2516 = vrot.lane.b32.xlu1 %v2393_v1, %s5827_s20 }
 0xb90   : > { %2518 = vrot.lane.b32.xlu0 %v2395_v3, %s5827_s20  ;;  %s5889_s20 = sld [smem:[#allocation41_spill]] }
 0xb92   : > { %2552 = vperm.xlu1 %3823, %v2548_v9  }
 0xb94   : > { %2557 = vperm.xlu0 %3822, %v2549_v58  }
 0xbc4   : > { %v2397_v61 = vpop.permute.xlu1 %2396 }
 0xbc6   : > { %v2399_v56 = vpop.permute.xlu0 %2398 }
 0xbc8   : > { %v2413_v28 = vpop.permute.xlu1 %2412 }
 0xbca   : > { %v2415_v29 = vpop.permute.xlu0 %2414 }
 0xbcc   : > { %v2429_v30 = vpop.permute.xlu1 %2428 }
 0xbce   : > { %v2431_v35 = vpop.permute.xlu0 %2430 }
 0xbd0   : > { %v2445_v36 = vpop.permute.xlu1 %2444 }
 0xbd2   : > { %v2447_v8 = vpop.permute.xlu0 %2446 }
 0xbd4   : > { %v5429_v37 = vpop.permute.xlu1 %2464 }
 0xbd6   : > { %v5431_v50 = vpop.permute.xlu0 %2466 }
 0xbd8   : > { %v5433_v38 = vpop.permute.xlu1 %2480 }
 0xbda   : > { %v5435_v39 = vpop.permute.xlu0 %2482 }
 0xbdc   : > { %v5437_v5 = vpop.permute.xlu1 %2496 }
 0xbde   : > { %v5439_v57 = vpop.permute.xlu0 %2498 }
 0xbe0   : > { %v2401_v47 = vpop.permute.xlu1 %2400 }
 0xbe1   : > { %v2404_v51 = vsel %vm1357_vm1, %v2397_v61, %v2401_v47  ;;  %v2406_v59 = vsel %vm1357_vm1, %v2401_v47, %v2397_v61 }
 0xbe2   : > { %v2403_v44 = vpop.permute.xlu0 %2402  ;;  %v2408_v31 = vmul.f32 %v2406_v59, %v4789_v20  ;;  %v2409_v62 = vmul.f32 %v2404_v51, %v4782_v18 }
 0xbe3   : > { %v2405_v32 = vsel %vm1357_vm1, %v2399_v56, %v2403_v44  ;;  %v2407_v60 = vsel %vm1357_vm1, %v2403_v44, %v2399_v56 }
 0xbe4   : > { %v2410_v45 = vmul.f32 %v2407_v60, %v4789_v20  ;;  %v2411_v54 = vmul.f32 %v2405_v32, %v4782_v18  ;;  %v2417_v63 = vpop.permute.xlu1 %2416 }
 0xbe5   : > { %v2420_v0 = vsel %vm1374_vm0, %v2413_v28, %v2417_v63  ;;  %v2422_v1 = vsel %vm1374_vm0, %v2417_v63, %v2413_v28 }
 0xbe6   : > { %v2528_v55 = vpack.c.bf16 %v2410_v45, %v2408_v31  ;;  %v2419_v2 = vpop.permute.xlu0 %2418  ;;  %v2529_v3 = vpack.c.bf16 %v2411_v54, %v2409_v62  ;;  %v2424_v58 = vmul.f32 %v2422_v1, %v4792_v21  ;;  %v2425_v61 = vmul.f32 %v2420_v0, %v4785_v19 }
 0xbe7   : > { %v2421_v24 = vsel %vm1374_vm0, %v2415_v29, %v2419_v2  ;;  %v2423_v9 = vsel %vm1374_vm0, %v2419_v2, %v2415_v29 }
 0xbe8   : > { %v2426_v56 = vmul.f32 %v2423_v9, %v4792_v21  ;;  %v2427_v47 = vmul.f32 %v2421_v24, %v4785_v19  ;;  %2572 = vmatprep.subr.bf16.mxu0 %v2529_v3  ;;  %v2433_v51 = vpop.permute.xlu1 %2432 }
 0xbe9   : > { %v2436_v28 = vsel %vm1391_vm2, %v2429_v30, %v2433_v51  ;;  %v2438_v59 = vsel %vm1391_vm2, %v2433_v51, %v2429_v30  ;;  %2573 = vmatpush1.bf16.msra.mxu0 %v2528_v55 }
 0xbea   : > { %v2530_v44 = vpack.c.bf16 %v2426_v56, %v2424_v58  ;;  %v2435_v32 = vpop.permute.xlu0 %2434  ;;  %v2531_v29 = vpack.c.bf16 %v2427_v47, %v2425_v61  ;;  %v2440_v62 = vmul.f32 %v2438_v59, %v4813_v40  ;;  %v2441_v45 = vmul.f32 %v2436_v28, %v4816_v41 }
 0xbeb   : > { %v2437_v60 = vsel %vm1391_vm2, %v2431_v35, %v2435_v32  ;;  %v2439_v31 = vsel %vm1391_vm2, %v2435_v32, %v2431_v35 }
 0xbec   : > { %v2442_v54 = vmul.f32 %v2439_v31, %v4813_v40  ;;  %v2443_v63 = vmul.f32 %v2437_v60, %v4816_v41  ;;  %2574 = vmatprep.subr.bf16.mxu0 %v2531_v29  ;;  %v2449_v30 = vpop.permute.xlu1 %2448 }
 0xbed   : > { %v2452_v0 = vsel %vm1408_vm3, %v2445_v36, %v2449_v30  ;;  %v2454_v1 = vsel %vm1408_vm3, %v2449_v30, %v2445_v36  ;;  %2575 = vmatpush1.bf16.msra.mxu0 %v2530_v44 }
 0xbee   : > { %v2532_v55 = vpack.c.bf16 %v2442_v54, %v2440_v62  ;;  %v2451_v2 = vpop.permute.xlu0 %2450  ;;  %v2533_v35 = vpack.c.bf16 %v2443_v63, %v2441_v45  ;;  %v2456_v9 = vmul.f32 %v2454_v1, %v4819_v42  ;;  %v2457_v58 = vmul.f32 %v2452_v0, %v4822_v43 }
 0xbef   : > { %v2453_v3 = vsel %vm1408_vm3, %v2447_v8, %v2451_v2  ;;  %v2455_v24 = vsel %vm1408_vm3, %v2451_v2, %v2447_v8 }
 0xbf0   : > { %v2458_v61 = vmul.f32 %v2455_v24, %v4819_v42  ;;  %v2459_v56 = vmul.f32 %v2453_v3, %v4822_v43  ;;  %2576 = vmatprep.subr.bf16.mxu0 %v2533_v35  ;;  %v2513_v36 = vpop.permute.xlu1 %2512 }
 0xbf1   : > { %2577 = vmatpush1.bf16.msra.mxu0 %v2532_v55 }
 0xbf2   : > { %v2534_v47 = vpack.c.bf16 %v2458_v61, %v2456_v9  ;;  %v2515_v51 = vpop.permute.xlu0 %2514  ;;  %v2535_v28 = vpack.c.bf16 %v2459_v56, %v2457_v58 }
 0xbf4   : > { %2578 = vmatprep.subr.bf16.mxu0 %v2535_v28  ;;  %v2469_v59 = vpop.permute.xlu1 %2468 }
 0xbf5   : > { %v2472_v8 = vsel %vm1435_vm4, %v5429_v37, %v2469_v59  ;;  %v2474_v44 = vsel %vm1435_vm4, %v2469_v59, %v5429_v37  ;;  %2579 = vmatpush1.bf16.msra.mxu0 %v2534_v47 }
 0xbf6   : > { %v2471_v32 = vpop.permute.xlu0 %2470  ;;  %2580 = vmatprep.subr.bf16.mxu0 %v2537_v14  ;;  %v2476_v31 = vmul.f32 %v2472_v8, %v4840_v52  ;;  %v2477_v62 = vmul.f32 %v2474_v44, %v4843_v53 }
 0xbf7   : > { %v2473_v29 = vsel %vm1435_vm4, %v5431_v50, %v2471_v32  ;;  %v2475_v60 = vsel %vm1435_vm4, %v2471_v32, %v5431_v50 }
 0xbf8   : > { %v2478_v37 = vmul.f32 %v2473_v29, %v4840_v52  ;;  %v2479_v45 = vmul.f32 %v2475_v60, %v4843_v53  ;;  %v2485_v54 = vpop.permute.xlu1 %2484 }
 0xbf9   : > { %v2488_v6 = vsel %vm1452_vm5, %v5433_v38, %v2485_v54  ;;  %v2490_v23 = vsel %vm1452_vm5, %v2485_v54, %v5433_v38  ;;  %2581 = vmatpush1.bf16.msra.mxu0 %v2536_v46  ;;  %v3834_v54 = vld [vmem:[%s5886_s4] ss:$8 sps:$4 sm:$0xff]  }
 0xbfa   : > { %v2538_v14 = vpack.c.bf16 %v2478_v37, %v2476_v31  ;;  %v2487_v50 = vpop.permute.xlu0 %2486  ;;  %v2539_v63 = vpack.c.bf16 %v2479_v45, %v2477_v62  ;;  %v2492_v1 = vmul.f32 %v2488_v6, %v4863_v16  ;;  %v2493_v55 = vmul.f32 %v2490_v23, %v4866_v17 }
 0xbfb   : > { %v2489_v30 = vsel %vm1452_vm5, %v5435_v39, %v2487_v50  ;;  %v2491_v0 = vsel %vm1452_vm5, %v2487_v50, %v5435_v39 }
 0xbfc   : > { %v2494_v38 = vmul.f32 %v2489_v30, %v4863_v16  ;;  %v2495_v4 = vmul.f32 %v2491_v0, %v4866_v17  ;;  %v2501_v27 = vpop.permute.xlu1 %2500  ;;  %2582 = vmatprep.subr.bf16.mxu0 %v2539_v63 }
 0xbfd   : > { %v2504_v46 = vsel %vm1469_vm6, %v5437_v5, %v2501_v27  ;;  %v2506_v2 = vsel %vm1469_vm6, %v2501_v27, %v5437_v5  ;;  %2583 = vmatpush1.bf16.msra.mxu0 %v2538_v14  ;;  %v2623_v27 = vld [vmem:[%s5889_s20] sm:$0xff] }
 0xbfe   : > { %v2540_v39 = vpack.c.bf16 %v2494_v38, %v2492_v1  ;;  %v2503_v35 = vpop.permute.xlu0 %2502  ;;  %v2541_v3 = vpack.c.bf16 %v2495_v4, %v2493_v55  ;;  %v2508_v58 = vmul.f32 %v2504_v46, %v4870_v10  ;;  %v2509_v61 = vmul.f32 %v2506_v2, %v4873_v22  ;;  %v2684_v38 = vld [vmem:[%s5888_s1] sm:$0xff]  ;;  %v2685_v4 = vld [vmem:[%s5888_s1 + $0x8] sm:$0xff]  ;;  %s5900_s1 = sld [smem:[#allocation51_spill]] }
 0xbff   : > { %v2505_v24 = vsel %vm1469_vm6, %v5439_v57, %v2503_v35  ;;  %v2507_v9 = vsel %vm1469_vm6, %v2503_v35, %v5439_v57 }
 0xc00   : > { %v2510_v56 = vmul.f32 %v2505_v24, %v4870_v10  ;;  %v2511_v5 = vmul.f32 %v2507_v9, %v4873_v22  ;;  %v2517_v47 = vpop.permute.xlu1 %2516  ;;  %2584 = vmatprep.subr.bf16.mxu0 %v2541_v3 }
 0xc01   : > { %v2520_v28 = vsel %vm1486_vm7, %v2513_v36, %v2517_v47  ;;  %v2522_v59 = vsel %vm1486_vm7, %v2517_v47, %v2513_v36  ;;  %2585 = vmatpush1.bf16.msra.mxu0 %v2540_v39  ;;  %v2624_v39 = vld [vmem:[%s5889_s20 + $0x8] sm:$0xff] }
 0xc02   : > { %v2542_v8 = vpack.c.bf16 %v2510_v56, %v2508_v58  ;;  %v2519_v57 = vpop.permute.xlu0 %2518  ;;  %v2543_v44 = vpack.c.bf16 %v2511_v5, %v2509_v61  ;;  %v2524_v60 = vmul.f32 %v5363_v34, %v2520_v28  ;;  %v2525_v31 = vmul.f32 %v5367_v26, %v2522_v59 }
 0xc03   : > { %v2521_v32 = vsel %vm1486_vm7, %v2515_v51, %v2519_v57  ;;  %v2523_v29 = vsel %vm1486_vm7, %v2519_v57, %v2515_v51  ;;  %v2637_v57 = vld [vmem:[%s5890_s18] sm:$0x1]  ;;  %s5893_s18 = sld [smem:[#allocation46_spill]] }
 0xc04   : > { %v2526_v62 = vmul.f32 %v5363_v34, %v2521_v32  ;;  %v2527_v37 = vmul.f32 %v5367_v26, %v2523_v29  ;;  %2586 = vmatprep.subr.bf16.mxu0 %v2543_v44 }
 0xc05   : > { %2587 = vmatpush1.bf16.msra.mxu0 %v2542_v8 }
 0xc06   : > { %v2544_v36 = vpack.c.bf16 %v2526_v62, %v2524_v60  ;;  %v2545_v45 = vpack.c.bf16 %v2527_v37, %v2525_v31  ;;  %v2640_v60 = vld [vmem:[%s5891_s9] sm:$0xff]  ;;  %v2641_v62 = vld [vmem:[%s5891_s9 + $0x8] sm:$0xff] }
 0xc08   : > { %2588 = vmatprep.subr.bf16.mxu0 %v2545_v45 }
 0xc09   : > { %2589 = vmatpush1.bf16.msra.mxu0 %v2544_v36 }
 0xc0c   : > { %2605 = vmatmul.mubr.bf16.vlgmr.msra.gmra.mrb[8].mxu0 %v3834_v54 }
 0xc0d   : > { %3114 = vmatprep.mubr.bf16.mxu0 %v4307_v7 }
 0xc11   : > { %v2553_v51 = vpop.permute.xlu1 %2552 }
 0xc13   : > { %v2558_v14 = vpop.permute.xlu0 %2557 }
 0xcdf   : > { %v2606_v6 = vpop.f32.mrb[8].mxu0 }
 0xce0   : > { %v5557_v23 = vadd.f32 %v2606_v6, %v2553_v51  ;;  %v2608_v34 = vpop.f32.mrb[9].mxu0 }
 0xce1   : > { %v5559_v26 = vadd.f32 %v2608_v34, %v2553_v51  ;;  %v2610_v50 = vpop.f32.mrb[10].mxu0  ;;  %v2654_v51 = vld [vmem:[%s5892_s0] sm:$0xff] }
 0xce2   : > { %v5561_v63 = vadd.f32 %v2610_v50, %v2558_v14  ;;  %v2612_v30 = vpop.f32.mrb[11].mxu0 }
 0xce3   : > { %v2615_v0 = vadd.f32 %v5559_v26, %v5557_v23  ;;  %v5565_v1 = vadd.f32 %v2612_v30, %v2558_v14  ;;  %v2655_v14 = vld [vmem:[%s5892_s0 + $0x8] sm:$0xff]  ;;  %s5898_s0 = sld [smem:[#allocation49_spill]] }
 0xce5   : > { %v2618_v55 = vadd.f32 %v5565_v1, %v5561_v63  ;;  %2616 = vadd.xlane.f32.xlu1 %v2615_v0 }
 0xce7   : > { %2619 = vadd.xlane.f32.xlu0 %v2618_v55 }
 0xcf6   : > { %2701 = vperm.xlu1 %3823, %v2684_v38  }
 0xcfa   : > { %2706 = vperm.xlu1 %3823, %v2685_v4  }
 0xd72   : > { %v2617_v46 = vpop.xlane.xlu1 %2616 }
 0xd73   : > { %v2621_v2 = vmul.f32 0.00390625, %v2617_v46 }
 0xd74   : > { %v2620_v35 = vpop.xlane.xlu0 %2619 }
 0xd75   : > { %v2625_v3 = vmul.f32 %v2623_v27, %v2621_v2  ;;  %v2622_v24 = vmul.f32 0.00390625, %v2620_v35 }
 0xd77   : > { %v2626_v9 = vmul.f32 %v2624_v39, %v2622_v24  ;;  %v2628_v58 = vsel %vm2627_vm13, %v2625_v3, 0.0 }
 0xd79   : > { %v2629_v61 = vsel %vm2627_vm13, %v2626_v9, 0.0 }
 0xd7a   : > { %v2630_v56 = vadd.f32 %v2629_v61, %v2628_v58  ;;  %v4310_v58 = vmov 1   ;;  %v2686_v61 = vld [vmem:[%s5893_s18] sm:$0x3]  ;;  %s5897_s18 = sld [smem:[#allocation48_spill]] }
 0xd7c   : > { %v2631_v5 = vrot.slane %v2630_v56, 4 }
 0xd7e   : > { %v2632_v47 = vadd.f32 %v2631_v5, %v2630_v56  ;;  %v2688_v56 = vld [vmem:[#allocation6] sm:$0x1]  ;;  %v2687_v5 = vld [vmem:[%s5894_s14] sm:$0x3]  ;;  %s5895_s14 = smov 1  }
 0xd80   : > { %v2633_v28 = vrot.slane %v2632_v47, 2 }
 0xd82   : > { %v2634_v59 = vadd.f32 %v2633_v28, %v2632_v47  ;;  %v2702_v47 = vpop.permute.xlu1 %2701 }
 0xd84   : > { %v2635_v8 = vrot.slane %v2634_v59, 1 }
 0xd86   : > { %v2636_v44 = vadd.f32 %v2635_v8, %v2634_v59  ;;  %v2707_v28 = vpop.permute.xlu1 %2706 }
 0xd88   : > { %v2638_v32 = vadd.f32 %v2637_v57, %v2636_v44 }
 0xd8a   : > { %v2639_v29 = vmax.f32 %v2638_v32, 0.0 }
 0xd8c   : > { %v2645_v31 = vrot.slane %v2639_v29, %v4769_v12 }
 0xd8e   : > { %v2646_v37 = vmul.f32 %v2645_v31, %v2640_v60  ;;  %v2647_v45 = vmul.f32 %v2645_v31, %v2641_v62 }
 0xd90   : > { %v2648_v36 = vsel %vm2627_vm13, %v2646_v37, 0.0  ;;  %v2651_v54 = vsel %vm2627_vm13, %v2647_v45, 0.0 }
 0xd91   : > { %2649 = vadd.xlane.f32.xlu0 %v2648_v36 }
 0xd95   : > { %2652 = vadd.xlane.f32.xlu0 %v2651_v54 }
 0xe1e   : > { %v2650_v6 = vpop.xlane.xlu0 %2649 }
 0xe1f   : > { %v2656_v34 = vadd.f32 %v2654_v51, %v2650_v6 }
 0xe21   : > { %v2658_v50 = vsub.f32 0.0, %v2656_v34 }
 0xe22   : > { %v2653_v30 = vpop.xlane.xlu0 %2652 }
 0xe23   : > { %v2660_v0 = vmul.f32 1.442695, %v2658_v50  ;;  %v2657_v55 = vadd.f32 %v2655_v14, %v2653_v30 }
 0xe25   : > { %3856 = vpow2.f32 %v2660_v0  ;;  %v2659_v27 = vsub.f32 0.0, %v2657_v55 }
 0xe27   : > { %v2662_v46 = vmul.f32 1.442695, %v2659_v27 }
 0xe29   : > { %3858 = vpow2.f32 %v2662_v46 }
 0xe2f   : > { %v3857_v2 = vpop.eup %3856 }
 0xe30   : > { %v2664_v39 = vadd.f32 1.0, %v3857_v2 }
 0xe32   : > { %3860 = vrcp.f32 %v2664_v39 }
 0xe33   : > { %v3859_v35 = vpop.eup %3858 }
 0xe34   : > { %v2665_v3 = vadd.f32 1.0, %v3859_v35 }
 0xe36   : > { %3862 = vrcp.f32 %v2665_v3 }
 0xe3c   : > { %v3861_v24 = vpop.eup %3860 }
 0xe3d   : > { %2672 = vperm.xlu1 %3823, %v3861_v24  }
 0xe40   : > { %v3863_v9 = vpop.eup %3862 }
 0xe41   : > { %3824 = vset.pattern.permute.xlu1 %v4310_v58  ;;  %2677 = vperm.xlu0 %3822, %v3863_v9  }
 0xe42   : > { %2746 = vperm.xlu1 %3824, %v2684_v38  }
 0xe45   : > { %3825 = vset.pattern.permute.xlu0 %v4310_v58 }
 0xe46   : > { %2750 = vperm.xlu0 %3825, %v2685_v4   ;;  %3826 = vset.pattern.permute.xlu1 %v4307_v7 }
 0xe47   : > { %2729 = vperm.xlu1 %3826, %v2686_v61  }
 0xe4a   : > { %3827 = vset.pattern.permute.xlu0 %v4307_v7 }
 0xe4b   : > { %2691 = vperm.xlu1 %3826, %v2688_v56   ;;  %2738 = vperm.xlu0 %3827, %v2687_v5  }
 0xebc   : > { %v2673_v59 = vpop.permute.xlu1 %2672 }
 0xebd   : > { %v5588_v8 = vmul.f32 %v2673_v59, %v5557_v23  ;;  %v5591_v38 = vmul.f32 %v2673_v59, %v5559_v26 }
 0xebf   : > { %v2709_v32 = vmul.f32 %v2702_v47, %v5588_v8  ;;  %v2710_v29 = vmul.f32 %v2702_v47, %v5591_v38 }
 0xec0   : > { %v2678_v57 = vpop.permute.xlu0 %2677 }
 0xec1   : > { %v5594_v4 = vmul.f32 %v2678_v57, %v5561_v63  ;;  %v5597_v44 = vmul.f32 %v2678_v57, %v5565_v1  ;;  %v2747_v23 = vpop.permute.xlu1 %2746 }
 0xec2   : > { %v2753_v36 = vmul.f32 %v2747_v23, %v5588_v8  ;;  %v2754_v63 = vmul.f32 %v2747_v23, %v5591_v38 }
 0xec3   : > { %v2711_v60 = vmul.f32 %v2707_v28, %v5594_v4  ;;  %v2712_v31 = vmul.f32 %v2707_v28, %v5597_v44 }
 0xec5   : > { %v2713_v62 = vadd.f32 %v2711_v60, %v2709_v32  ;;  %v2720_v37 = vadd.f32 %v2712_v31, %v2710_v29  ;;  %v2751_v26 = vpop.permute.xlu0 %2750 }
 0xec6   : > { %v2755_v45 = vmul.f32 %v2751_v26, %v5594_v4  ;;  %v2756_v1 = vmul.f32 %v2751_v26, %v5597_v44  ;;  %v2730_v9 = vpop.permute.xlu1 %2729 }
 0xec7   : > { %v2714_v54 = vrot.slane %v2713_v62, 4  ;;  %v2721_v51 = vrot.slane %v2720_v37, 4 }
 0xec8   : > { %v2757_v6 = vadd.f32 %v2755_v45, %v2753_v36  ;;  %v2764_v34 = vadd.f32 %v2756_v1, %v2754_v63 }
 0xec9   : > { %v2715_v14 = vadd.f32 %v2714_v54, %v2713_v62  ;;  %v2722_v50 = vadd.f32 %v2721_v51, %v2720_v37 }
 0xeca   : > { %v2758_v30 = vrot.slane %v2757_v6, 4  ;;  %v2765_v0 = vrot.slane %v2764_v34, 4  ;;  %v2692_v23 = vpop.permute.xlu1 %2691  ;;  %v2739_v26 = vpop.permute.xlu0 %2738 }
 0xecb   : > { %v2716_v55 = vrot.slane %v2715_v14, 2  ;;  %v2723_v27 = vrot.slane %v2722_v50, 2  ;;  %v2697_v45 = vrot.slane %v2692_v23, %v4769_v12 }
 0xecc   : > { %v2759_v46 = vadd.f32 %v2758_v30, %v2757_v6  ;;  %v2766_v2 = vadd.f32 %v2765_v0, %v2764_v34 }
 0xecd   : > { %v2717_v39 = vadd.f32 %v2716_v55, %v2715_v14  ;;  %v2724_v35 = vadd.f32 %v2723_v27, %v2722_v50 }
 0xece   : > { %v2760_v3 = vrot.slane %v2759_v46, 2  ;;  %v2767_v24 = vrot.slane %v2766_v2, 2 }
 0xecf   : > { %v2718_v58 = vrot.slane %v2717_v39, 1  ;;  %v2725_v61 = vrot.slane %v2724_v35, 1 }
 0xed0   : > { %v2761_v56 = vadd.f32 %v2760_v3, %v2759_v46  ;;  %v2768_v5 = vadd.f32 %v2767_v24, %v2766_v2 }
 0xed1   : > { %v2719_v47 = vadd.f32 %v2718_v58, %v2717_v39  ;;  %v2726_v28 = vadd.f32 %v2725_v61, %v2724_v35 }
 0xed2   : > { %v2762_v59 = vrot.slane %v2761_v56, 1  ;;  %v2769_v57 = vrot.slane %v2768_v5, 1 }
 0xed3   : > { %v2732_v32 = vadd.f32 %v2730_v9, %v2719_v47  ;;  %v2733_v29 = vadd.f32 %v2730_v9, %v2726_v28 }
 0xed4   : > { %v2763_v60 = vadd.f32 %v2762_v59, %v2761_v56  ;;  %v2770_v31 = vadd.f32 %v2769_v57, %v2768_v5 }
 0xed5   : > { %v2734_v62 = vmax.f32 %v2732_v32, 0.0  ;;  %v2735_v37 = vmax.f32 %v2733_v29, 0.0 }
 0xed6   : > { %v2771_v36 = vadd.f32 %v2763_v60, %v2730_v9  ;;  %v2772_v63 = vadd.f32 %v2770_v31, %v2730_v9 }
 0xed7   : > { %v2741_v51 = vmul.f32 %v2739_v26, %v2734_v62  ;;  %v2742_v6 = vmul.f32 %v2739_v26, %v2735_v37 }
 0xed8   : > { %v2773_v1 = vmax.f32 %v2771_v36, 0.0  ;;  %v2774_v54 = vmax.f32 %v2772_v63, 0.0  ;;  %v2966_v36 = vld [vmem:[%s5898_s0 + $0x8] sm:$0xff]  ;;  %v3044_v63 = vld [vmem:[%s5900_s1 + $0x10] sm:$0xff] }
 0xed9   : > { %v2743_v50 = vadd.f32 %v2741_v51, %v2697_v45  ;;  %v2744_v30 = vadd.f32 %v2742_v6, %v2697_v45  ;;  %v3043_v45 = vld [vmem:[%s5900_s1 + $0x8] sm:$0xff]  ;;  %v3314_v51 = vld [vmem:[%s5903_s2 + $0x10] sm:$0xff] }
 0xeda   : > { %v2775_v34 = vmul.f32 %v2773_v1, %v2739_v26  ;;  %v2776_v14 = vmul.f32 %v2774_v54, %v2739_v26  ;;  %v3042_v26 = vld [vmem:[%s5900_s1] sm:$0xff]  ;;  %v3045_v54 = vld [vmem:[%s5900_s1 + $0x18] sm:$0x1f]  ;;  %v3313_v6 = vld [vmem:[%s5903_s2 + $0x8] sm:$0xff] }
 0xedb   : > { %v3312_v1 = vld [vmem:[%s5903_s2] sm:$0xff] }
 0xedc   : > { %v2779_v0 = vrot.slane %v2775_v34, 1  ;;  %v2780_v55 = vrot.slane %v2776_v14, 1  ;;  %v3315_v34 = vld [vmem:[%s5903_s2 + $0x18] sm:$0xff] }
 0xede   : > { %v2783_v27 = vadd.f32 %v2779_v0, %v2743_v50  ;;  %v2784_v46 = vadd.f32 %v2780_v55, %v2744_v30 }
 0xee0   : > { %v2785_v2 = vsub.f32 0.0, %v2783_v27  ;;  %v2786_v39 = vsub.f32 0.0, %v2784_v46 }
 0xee2   : > { %v2787_v35 = vmul.f32 1.442695, %v2785_v2  ;;  %v2789_v3 = vmul.f32 1.442695, %v2786_v39 }
 0xee4   : > { %3864 = vpow2.f32 %v2787_v35 }
 0xee5   : > { %3866 = vpow2.f32 %v2789_v3 }
 0xeee   : > { %v3865_v24 = vpop.eup %3864 }
 0xeef   : > { %v3867_v9 = vpop.eup %3866  ;;  %v2791_v58 = vadd.f32 1.0, %v3865_v24 }
 0xef0   : > { %v2792_v61 = vadd.f32 1.0, %v3867_v9 }
 0xef1   : > { %3868 = vrcp.f32 %v2791_v58 }
 0xef2   : > { %3870 = vrcp.f32 %v2792_v61 }
 0xefb   : > { %v3869_v56 = vpop.eup %3868 }
 0xefc   : > { %v3871_v5 = vpop.eup %3870  ;;  %v2800_v47 = vrot.slane %v3869_v56, %v4769_v12 }
 0xefd   : > { %v2804_v28 = vrot.slane %v3871_v5, %v4769_v12 }
 0xefe   : > { %v2805_v59 = vmul.f32 %v2800_v47, %v5588_v8  ;;  %v2807_v57 = vmul.f32 %v2800_v47, %v5594_v4 }
 0xeff   : > { %v2806_v32 = vmul.f32 %v2804_v28, %v5591_v38  ;;  %v2808_v29 = vmul.f32 %v2804_v28, %v5597_v44 }
 0xf00   : > { %v2809_v60 = vadd.f32 %v2805_v59, %v5162_v13  ;;  %v2811_v31 = vadd.f32 %v2807_v57, %v5164_v15 }
 0xf01   : > { %v2810_v23 = vadd.f32 %v2806_v32, %v5192_v33  ;;  %v2812_v62 = vadd.f32 %v2808_v29, %v5196_v25 }
 0xf02   : > { %2813 = vrot.lane.b32.xlu1 %v2809_v60, %s4302_s11  ;;  %v5620_v12 = vmul.f32 %v2809_v60, %v4833_v49  ;;  %v5623_v8 = vmul.f32 %v2811_v31, %v4833_v49  ;;  %v2965_v49 = vld [vmem:[%s5898_s0] sm:$0xff] }
 0xf03   : > { %2817 = vrot.lane.b32.xlu0 %v2810_v23, %s4302_s11  ;;  %v5627_v38 = vmul.f32 %v2810_v23, %v4830_v48  ;;  %v5630_v4 = vmul.f32 %v2812_v62, %v4830_v48  ;;  %v3835_v48 = vld [vmem:[%s5897_s18 + $0x4] ss:$8 sps:$4 sm:$0xff]  }
 0xf04   : > { %v2953_v44 = vpack.c.bf16 %v5623_v8, %v5620_v12  ;;  %3617 = vmatprep.mubr.msk.bf16.mxu1 %vm2341_vm12, %v3835_v48 }
 0xf05   : > { %v2954_v37 = vpack.c.bf16 %v5630_v4, %v5627_v38 }
 0xf06   : > { %2815 = vrot.lane.b32.xlu1 %v2811_v31, %s4302_s11 }
 0xf07   : > { %2829 = vrot.lane.b32.xlu0 %v2809_v60, %s4301_s28 }
 0xf0a   : > { %2819 = vrot.lane.b32.xlu1 %v2812_v62, %s4302_s11  ;;  %s5896_s11 = smov 127  }
 0xf0b   : > { %2833 = vrot.lane.b32.xlu0 %v2810_v23, %s4301_s28 }
 0xf0e   : > { %2831 = vrot.lane.b32.xlu1 %v2811_v31, %s4301_s28 }
 0xf0f   : > { %2845 = vrot.lane.b32.xlu0 %v2809_v60, %s4303_s16 }
 0xf12   : > { %2835 = vrot.lane.b32.xlu1 %v2812_v62, %s4301_s28  ;;  %s5899_s28 = smov 113  }
 0xf13   : > { %2849 = vrot.lane.b32.xlu0 %v2810_v23, %s4303_s16 }
 0xf16   : > { %2847 = vrot.lane.b32.xlu1 %v2811_v31, %s4303_s16 }
 0xf17   : > { %2861 = vrot.lane.b32.xlu0 %v2809_v60, %s5895_s14 }
 0xf1a   : > { %2851 = vrot.lane.b32.xlu1 %v2812_v62, %s4303_s16  ;;  %s5901_s16 = smov 112  }
 0xf1b   : > { %2865 = vrot.lane.b32.xlu0 %v2810_v23, %s5895_s14 }
 0xf1e   : > { %2863 = vrot.lane.b32.xlu1 %v2811_v31, %s5895_s14 }
 0xf1f   : > { %2881 = vrot.lane.b32.xlu0 %v2809_v60, %s5896_s11 }
 0xf22   : > { %2867 = vrot.lane.b32.xlu1 %v2812_v62, %s5895_s14  ;;  %s5902_s14 = smov 111  }
 0xf23   : > { %2885 = vrot.lane.b32.xlu0 %v2810_v23, %s5896_s11 }
 0xf26   : > { %2883 = vrot.lane.b32.xlu1 %v2811_v31, %s5896_s11 }
 0xf27   : > { %2897 = vrot.lane.b32.xlu0 %v2809_v60, %s5899_s28 }
 0xf2a   : > { %2887 = vrot.lane.b32.xlu1 %v2812_v62, %s5896_s11  ;;  %s5904_s11 = sld [smem:[#allocation50_spill]] }
 0xf2b   : > { %2901 = vrot.lane.b32.xlu0 %v2810_v23, %s5899_s28 }
 0xf2e   : > { %2899 = vrot.lane.b32.xlu1 %v2811_v31, %s5899_s28 }
 0xf2f   : > { %2913 = vrot.lane.b32.xlu0 %v2809_v60, %s5901_s16 }
 0xf32   : > { %2903 = vrot.lane.b32.xlu1 %v2812_v62, %s5899_s28  ;;  %s5905_s28 = sld [smem:[#allocation53_spill]] }
 0xf33   : > { %2917 = vrot.lane.b32.xlu0 %v2810_v23, %s5901_s16 }
 0xf36   : > { %2915 = vrot.lane.b32.xlu1 %v2811_v31, %s5901_s16 }
 0xf37   : > { %2929 = vrot.lane.b32.xlu0 %v2809_v60, %s5902_s14 }
 0xf3a   : > { %2919 = vrot.lane.b32.xlu1 %v2812_v62, %s5901_s16  ;;  %s5906_s16 = sld [smem:[#allocation52_spill]] }
 0xf3b   : > { %2933 = vrot.lane.b32.xlu0 %v2810_v23, %s5902_s14 }
 0xf3e   : > { %2931 = vrot.lane.b32.xlu1 %v2811_v31, %s5902_s14 }
 0xf3f   : > { %2969 = vperm.xlu0 %3827, %v2965_v49  }
 0xf42   : > { %2935 = vrot.lane.b32.xlu1 %v2812_v62, %s5902_s14 }
 0xf43   : > { %3048 = vperm.xlu0 %3827, %v3042_v26  }
 0xf46   : > { %2974 = vperm.xlu1 %3826, %v2966_v36  }
 0xf47   : > { %3058 = vperm.xlu0 %3827, %v3044_v63  }
 0xf4a   : > { %3053 = vperm.xlu1 %3826, %v3043_v45  }
 0xf4b   : > { %3318 = vperm.xlu0 %3827, %v3312_v1  }
 0xf4e   : > { %3063 = vperm.xlu1 %3826, %v3045_v54  }
 0xf4f   : > { %3328 = vperm.xlu0 %3827, %v3314_v51  }
 0xf52   : > { %3323 = vperm.xlu1 %3826, %v3313_v6  }
 0xf56   : > { %3333 = vperm.xlu1 %3826, %v3315_v34  }
 0xf74   : > { %v2814_v14 = vpop.permute.xlu1 %2813 }
 0xf75   : > { %v2818_v50 = vpop.permute.xlu0 %2817 }
 0xf76   : > { %v2821_v55 = vsel %vm1357_vm1, %v2814_v14, %v2818_v50  ;;  %v2823_v27 = vsel %vm1357_vm1, %v2818_v50, %v2814_v14 }
 0xf77   : > { %v2825_v3 = vmul.f32 %v2823_v27, %v4789_v20  ;;  %v2826_v24 = vmul.f32 %v2821_v55, %v4782_v18 }
 0xf78   : > { %v2816_v30 = vpop.permute.xlu1 %2815 }
 0xf79   : > { %v2830_v0 = vpop.permute.xlu0 %2829 }
 0xf7c   : > { %v2820_v46 = vpop.permute.xlu1 %2819 }
 0xf7d   : > { %v2834_v2 = vpop.permute.xlu0 %2833  ;;  %v2822_v39 = vsel %vm1357_vm1, %v2816_v30, %v2820_v46  ;;  %v2824_v35 = vsel %vm1357_vm1, %v2820_v46, %v2816_v30 }
 0xf7e   : > { %v2827_v9 = vmul.f32 %v2824_v35, %v4789_v20  ;;  %v2828_v58 = vmul.f32 %v2822_v39, %v4782_v18  ;;  %v2837_v28 = vsel %vm1374_vm0, %v2830_v0, %v2834_v2  ;;  %v2839_v59 = vsel %vm1374_vm0, %v2834_v2, %v2830_v0 }
 0xf7f   : > { %v2841_v20 = vmul.f32 %v2839_v59, %v4792_v21  ;;  %v2842_v60 = vmul.f32 %v2837_v28, %v4785_v19 }
 0xf80   : > { %v2945_v61 = vpack.c.bf16 %v2827_v9, %v2825_v3  ;;  %v2832_v56 = vpop.permute.xlu1 %2831  ;;  %v2946_v5 = vpack.c.bf16 %v2828_v58, %v2826_v24 }
 0xf81   : > { %v2846_v47 = vpop.permute.xlu0 %2845 }
 0xf82   : > { %2989 = vmatprep.subr.bf16.mxu1 %v2946_v5 }
 0xf83   : > { %2990 = vmatpush1.bf16.msra.mxu1 %v2945_v61 }
 0xf84   : > { %v2836_v57 = vpop.permute.xlu1 %2835 }
 0xf85   : > { %v2850_v32 = vpop.permute.xlu0 %2849  ;;  %v2838_v29 = vsel %vm1374_vm0, %v2832_v56, %v2836_v57  ;;  %v2840_v18 = vsel %vm1374_vm0, %v2836_v57, %v2832_v56  ;;  %vm3167_vm0 = vcmask 236544  }
 0xf86   : > { %v2843_v31 = vmul.f32 %v2840_v18, %v4792_v21  ;;  %v2844_v23 = vmul.f32 %v2838_v29, %v4785_v19  ;;  %v2853_v36 = vsel %vm1391_vm2, %v2846_v47, %v2850_v32  ;;  %v2855_v63 = vsel %vm1391_vm2, %v2850_v32, %v2846_v47 }
 0xf87   : > { %v2857_v21 = vmul.f32 %v2855_v63, %v4813_v40  ;;  %v2858_v51 = vmul.f32 %v2853_v36, %v4816_v41 }
 0xf88   : > { %v2947_v62 = vpack.c.bf16 %v2843_v31, %v2841_v20  ;;  %v2848_v48 = vpop.permute.xlu1 %2847  ;;  %v2948_v49 = vpack.c.bf16 %v2844_v23, %v2842_v60 }
 0xf89   : > { %v2862_v26 = vpop.permute.xlu0 %2861 }
 0xf8a   : > { %2991 = vmatprep.subr.bf16.mxu1 %v2948_v49 }
 0xf8b   : > { %2992 = vmatpush1.bf16.msra.mxu1 %v2947_v62 }
 0xf8c   : > { %v2852_v45 = vpop.permute.xlu1 %2851 }
 0xf8d   : > { %v2866_v1 = vpop.permute.xlu0 %2865  ;;  %v2854_v54 = vsel %vm1391_vm2, %v2848_v48, %v2852_v45  ;;  %v2856_v19 = vsel %vm1391_vm2, %v2852_v45, %v2848_v48 }
 0xf8e   : > { %v2859_v6 = vmul.f32 %v2856_v19, %v4813_v40  ;;  %v2860_v34 = vmul.f32 %v2854_v54, %v4816_v41  ;;  %v2869_v55 = vsel %vm1408_vm3, %v2862_v26, %v2866_v1  ;;  %v2871_v27 = vsel %vm1408_vm3, %v2866_v1, %v2862_v26 }
 0xf8f   : > { %v2873_v41 = vmul.f32 %v2871_v27, %v4819_v42  ;;  %v2874_v35 = vmul.f32 %v2869_v55, %v4822_v43 }
 0xf90   : > { %v2949_v14 = vpack.c.bf16 %v2859_v6, %v2857_v21  ;;  %v2864_v50 = vpop.permute.xlu1 %2863  ;;  %v2950_v30 = vpack.c.bf16 %v2860_v34, %v2858_v51 }
 0xf91   : > { %v2882_v0 = vpop.permute.xlu0 %2881 }
 0xf92   : > { %2993 = vmatprep.subr.bf16.mxu1 %v2950_v30 }
 0xf93   : > { %2994 = vmatpush1.bf16.msra.mxu1 %v2949_v14 }
 0xf94   : > { %v2868_v46 = vpop.permute.xlu1 %2867 }
 0xf95   : > { %v2886_v2 = vpop.permute.xlu0 %2885  ;;  %v2870_v39 = vsel %vm1408_vm3, %v2864_v50, %v2868_v46  ;;  %v2872_v40 = vsel %vm1408_vm3, %v2868_v46, %v2864_v50 }
 0xf96   : > { %v2875_v3 = vmul.f32 %v2872_v40, %v4819_v42  ;;  %v2876_v24 = vmul.f32 %v2870_v39, %v4822_v43  ;;  %v2889_v5 = vsel %vm1435_vm4, %v2882_v0, %v2886_v2  ;;  %v2891_v47 = vsel %vm1435_vm4, %v2886_v2, %v2882_v0  ;;  %v3875_v39 = vld [vmem:[%s5881_s15 + $0x18] ss:$0 sm:$0xff] }
 0xf97   : > { %v2893_v57 = vmul.f32 %v2889_v5, %v4840_v52  ;;  %v2894_v32 = vmul.f32 %v2891_v47, %v4843_v53 }
 0xf98   : > { %v2951_v9 = vpack.c.bf16 %v2875_v3, %v2873_v41  ;;  %v2884_v58 = vpop.permute.xlu1 %2883  ;;  %v2952_v61 = vpack.c.bf16 %v2876_v24, %v2874_v35 }
 0xf99   : > { %v2898_v56 = vpop.permute.xlu0 %2897 }
 0xf9a   : > { %2995 = vmatprep.subr.bf16.mxu1 %v2952_v61 }
 0xf9b   : > { %2996 = vmatpush1.bf16.msra.mxu1 %v2951_v9  ;;  %v3837_v9 = vld [vmem:[%s5897_s18] ss:$8 sps:$4 sm:$0xff]  }
 0xf9c   : > { %2997 = vmatprep.subr.bf16.mxu1 %v2954_v37  ;;  %v2888_v28 = vpop.permute.xlu1 %2887 }
 0xf9d   : > { %v2902_v42 = vpop.permute.xlu0 %2901  ;;  %v2890_v43 = vsel %vm1435_vm4, %v2884_v58, %v2888_v28  ;;  %v2892_v59 = vsel %vm1435_vm4, %v2888_v28, %v2884_v58 }
 0xf9e   : > { %v2895_v29 = vmul.f32 %v2890_v43, %v4840_v52  ;;  %v2896_v18 = vmul.f32 %v2892_v59, %v4843_v53  ;;  %v2905_v60 = vsel %vm1452_vm5, %v2898_v56, %v2902_v42  ;;  %v2907_v31 = vsel %vm1452_vm5, %v2902_v42, %v2898_v56 }
 0xf9f   : > { %2998 = vmatpush1.bf16.msra.mxu1 %v2953_v44  ;;  %v2909_v8 = vmul.f32 %v2905_v60, %v4863_v16  ;;  %v2910_v44 = vmul.f32 %v2907_v31, %v4866_v17 }
 0xfa0   : > { %v2955_v38 = vpack.c.bf16 %v2895_v29, %v2893_v57  ;;  %v2900_v4 = vpop.permute.xlu1 %2899  ;;  %v2956_v37 = vpack.c.bf16 %v2896_v18, %v2894_v32 }
 0xfa1   : > { %v2914_v20 = vpop.permute.xlu0 %2913 }
 0xfa2   : > { %2999 = vmatprep.subr.bf16.mxu1 %v2956_v37  ;;  %v3838_v37 = vld [vmem:[%s5904_s11] sm:$0xff]  }
 0xfa3   : > { %3000 = vmatpush1.bf16.msra.mxu1 %v2955_v38 }
 0xfa4   : > { %v2904_v23 = vpop.permute.xlu1 %2903 }
 0xfa5   : > { %v2918_v52 = vpop.permute.xlu0 %2917  ;;  %v2906_v53 = vsel %vm1452_vm5, %v2900_v4, %v2904_v23  ;;  %v2908_v12 = vsel %vm1452_vm5, %v2904_v23, %v2900_v4 }
 0xfa6   : > { %v2911_v62 = vmul.f32 %v2906_v53, %v4863_v16  ;;  %v2912_v48 = vmul.f32 %v2908_v12, %v4866_v17  ;;  %v2921_v45 = vsel %vm1469_vm6, %v2914_v20, %v2918_v52  ;;  %v2923_v1 = vsel %vm1469_vm6, %v2918_v52, %v2914_v20  ;;  %v3839_v20 = vld [vmem:[%s5904_s11 + $0x8] sm:$0x7f]  }
 0xfa7   : > { %v2925_v17 = vmul.f32 %v2921_v45, %v4870_v10  ;;  %v2926_v21 = vmul.f32 %v2923_v1, %v4873_v22 }
 0xfa8   : > { %v2957_v49 = vpack.c.bf16 %v2911_v62, %v2909_v8  ;;  %v2916_v26 = vpop.permute.xlu1 %2915  ;;  %v2958_v36 = vpack.c.bf16 %v2912_v48, %v2910_v44 }
 0xfa9   : > { %v2930_v63 = vpop.permute.xlu0 %2929 }
 0xfaa   : > { %3001 = vmatprep.subr.bf16.mxu1 %v2958_v36 }
 0xfab   : > { %3002 = vmatpush1.bf16.msra.mxu1 %v2957_v49 }
 0xfac   : > { %v2920_v54 = vpop.permute.xlu1 %2919 }
 0xfad   : > { %v2922_v19 = vsel %vm1469_vm6, %v2916_v26, %v2920_v54  ;;  %v2924_v16 = vsel %vm1469_vm6, %v2920_v54, %v2916_v26  ;;  %v2934_v34 = vpop.permute.xlu0 %2933 }
 0xfae   : > { %v2927_v51 = vmul.f32 %v2922_v19, %v4870_v10  ;;  %v2928_v6 = vmul.f32 %v2924_v16, %v4873_v22  ;;  %v2937_v0 = vsel %vm1486_vm7, %v2930_v63, %v2934_v34  ;;  %v2939_v55 = vsel %vm1486_vm7, %v2934_v34, %v2930_v63  ;;  %v3874_v22 = vld [vmem:[%s5881_s15 + $0x10] ss:$0 sm:$0xff] }
 0xfaf   : > { %v2941_v2 = vmul.f32 %v3874_v22, %v2937_v0  ;;  %v2942_v40 = vmul.f32 %v3875_v39, %v2939_v55 }
 0xfb0   : > { %v2959_v14 = vpack.c.bf16 %v2927_v51, %v2925_v17  ;;  %v2932_v50 = vpop.permute.xlu1 %2931  ;;  %v2960_v30 = vpack.c.bf16 %v2928_v6, %v2926_v21  ;;  %v4311_v51 = vmov 65535  }
 0xfb1   : > { %v3176_v6 = vsel %vm3174_vm14, 4294967295, %v4311_v51 }
 0xfb2   : > { %3003 = vmatprep.subr.bf16.mxu1 %v2960_v30 }
 0xfb3   : > { %3004 = vmatpush1.bf16.msra.mxu1 %v2959_v14 }
 0xfb4   : > { %v2936_v27 = vpop.permute.xlu1 %2935 }
 0xfb5   : > { %v2938_v46 = vsel %vm1486_vm7, %v2932_v50, %v2936_v27  ;;  %v2940_v10 = vsel %vm1486_vm7, %v2936_v27, %v2932_v50  ;;  %v3177_v27 = vsel %vm3175_vm15, %v3176_v6, 0 }
 0xfb6   : > { %v2943_v41 = vmul.f32 %v3874_v22, %v2938_v46  ;;  %v2944_v35 = vmul.f32 %v3875_v39, %v2940_v10  ;;  %v3876_v22 = vld [vmem:[%s4720_s10 + $0x8] sm:$0xff]  ;;  %v3877_v39 = vld [vmem:[%s4720_s10] sm:$0xff]  ;;  %s3634_s10 = sshll.u32 %s5908_s27, 6 }
 0xfb7   : > { %s1343_s14 = scalar_lea.vmem %s4493_s23, %s3634_s10 }
 0xfb8   : > { %v2961_v3 = vpack.c.bf16 %v2943_v41, %v2941_v2  ;;  %v2962_v24 = vpack.c.bf16 %v2944_v35, %v2942_v40  ;;  %v3148_v2 = vpack.c.bf16 %v3876_v22, %v3876_v22  ;;  %v3147_v40 = vpack.c.bf16 %v3877_v39, %v3877_v39  ;;  %v3840_v35 = vld [vmem:[%s5905_s28] sm:$0xff]  }
 0xfba   : > { %3005 = vmatprep.subr.bf16.mxu1 %v2962_v24  ;;  %v3841_v24 = vld [vmem:[%s5905_s28 + $0x8] sm:$0xff]  }
 0xfbb   : > { %3006 = vmatpush1.bf16.msra.mxu1 %v2961_v3  ;;  %v3254_v3 = vsel %vm1520_vm8, %v3147_v40, 0 }
 0xfbe   : > { %3022 = vmatmul.mubr.bf16.vlgmr.msra.gmra.mrb[16].mxu1 %v3837_v9  ;;  %v2970_v58 = vpop.permute.xlu0 %2969  ;;  %v3842_v9 = vld [vmem:[%s5906_s16] sm:$0xff]  }
 0xfc5   : > { %v2975_v47 = vpop.permute.xlu1 %2974 }
 0xfc9   : > { %v3054_v31 = vpop.permute.xlu1 %3053 }
 0xfcd   : > { %v3064_v54 = vpop.permute.xlu1 %3063 }
0x1091   : > { %v3023_v61 = vpop.f32.mrb[16].mxu1 }
0x1092   : > { %v3024_v56 = vadd.f32 %v3023_v61, %v2970_v58  ;;  %v3025_v5 = vpop.f32.mrb[17].mxu1 }
0x1093   : > { %v3026_v11 = vadd.f32 %v3025_v5, %v2970_v58  ;;  %v3027_v28 = vpop.f32.mrb[18].mxu1  ;;  %v3843_v58 = vld [vmem:[%s5906_s16 + $0x8] sm:$0xff]  }
0x1094   : > { %v3028_v42 = vadd.f32 %v3027_v28, %v2975_v47  ;;  %v3029_v43 = vpop.f32.mrb[19].mxu1  ;;  %v3032_v57 = vadd.f32 %v3024_v56, %v5162_v13  ;;  %v3049_v13 = vpop.permute.xlu0 %3048 }
0x1095   : > { %v3030_v59 = vadd.f32 %v3029_v43, %v2975_v47  ;;  %v3033_v29 = vadd.f32 %v3026_v11, %v5192_v33  ;;  %v3324_v11 = vpop.permute.xlu1 %3323 }
0x1096   : > { %v3034_v32 = vadd.f32 %v3028_v42, %v5164_v15 }
0x1097   : > { %v3035_v18 = vadd.f32 %v3030_v59, %v5196_v25 }
0x1098   : > { %v3040_v38 = vpack.c.bf16 %v3034_v32, %v3032_v57  ;;  %v3059_v26 = vpop.permute.xlu0 %3058 }
0x1099   : > { %v3041_v4 = vpack.c.bf16 %v3035_v18, %v3033_v29 }
0x109b   : > { %3082 = vmatprep.subr.bf16.mxu0 %v3041_v4 }
0x109c   : > { %3083 = vmatpush1.bf16.msra.mxu0 %v3040_v38  ;;  %v3319_v61 = vpop.permute.xlu0 %3318  ;;  %v3334_v38 = vpop.permute.xlu1 %3333 }
0x109f   : > { %3620 = vmatmul.mubr.msk.bf16.vlgmr.msra.gmra.mrb[12].mxu0 %vm2341_vm12, %v3838_v37 }
0x10a0   : > { %3124 = vmatprep.mubr.bf16.mxu0 %v4307_v7 }
0x10a7   : > { %3621 = vmatmul.mubr.msk.bf16.gmra.mrb[16].mxu0 %vm2341_vm12, %v3839_v20 }
0x10a8   : > { %3216 = vmatprep.mubr.bf16.mxu0 %v4307_v7 }
0x1172   : > { %v3116_v15 = vpop.f32.mrb[12].mxu0 }
0x1173   : > { %v3117_v60 = vadd.f32 %v3116_v15, %v3049_v13  ;;  %v3118_v33 = vpop.f32.mrb[13].mxu0 }
0x1174   : > { %v3119_v25 = vadd.f32 %v3118_v33, %v3049_v13  ;;  %v3120_v23 = vpop.f32.mrb[14].mxu0 }
0x1175   : > { %v3121_v52 = vadd.f32 %v3120_v23, %v3054_v31  ;;  %v3122_v53 = vpop.f32.mrb[15].mxu0  ;;  %v3135_v8 = vmax.f32 %v3117_v60, 0.0 }
0x1176   : > { %v3123_v12 = vadd.f32 %v3122_v53, %v3054_v31  ;;  %v3136_v62 = vmax.f32 %v3119_v25, 0.0 }
0x1177   : > { %v3137_v44 = vmax.f32 %v3121_v52, 0.0 }
0x1178   : > { %v3138_v48 = vmax.f32 %v3123_v12, 0.0 }
0x1179   : > { %v3153_v49 = vpack.c.bf16 %v3137_v44, %v3135_v8 }
0x117a   : > { %v3154_v36 = vpack.c.bf16 %v3138_v48, %v3136_v62  ;;  %v3126_v63 = vpop.f32.mrb[16].mxu0 }
0x117b   : > { %v3127_v45 = vadd.f32 %v3126_v63, %v3059_v26  ;;  %v3128_v1 = vpop.f32.mrb[17].mxu0 }
0x117c   : > { %v3129_v19 = vadd.f32 %v3128_v1, %v3059_v26  ;;  %v3130_v16 = vpop.f32.mrb[18].mxu0  ;;  %3184 = vmatprep.subr.bf16.mxu0 %v3154_v36 }
0x117d   : > { %v3131_v17 = vadd.f32 %v3130_v16, %v3064_v54  ;;  %v3132_v21 = vpop.f32.mrb[19].mxu0  ;;  %3185 = vmatpush1.bf16.msra.mxu0 %v3153_v49  ;;  %v3139_v14 = vmax.f32 %v3127_v45, 0.0 }
0x117e   : > { %v3133_v34 = vadd.f32 %v3132_v21, %v3064_v54  ;;  %v3140_v30 = vmax.f32 %v3129_v19, 0.0 }
0x117f   : > { %v3141_v50 = vmax.f32 %v3131_v17, 0.0 }
0x1180   : > { %v3142_v0 = vmax.f32 %v3133_v34, 0.0 }
0x1181   : > { %v3155_v55 = vpack.c.bf16 %v3141_v50, %v3139_v14 }
0x1182   : > { %v3156_v46 = vpack.c.bf16 %v3142_v0, %v3140_v30 }
0x1183   : > { %v3179_v41 = vand.u32 %v3177_v27, %v3155_v55 }
0x1184   : > { %v3182_v10 = vand.u32 %v3177_v27, %v3156_v46 }
0x1186   : > { %3186 = vmatprep.subr.bf16.mxu0 %v3182_v10 }
0x1187   : > { %3187 = vmatpush1.bf16.msra.mxu0 %v3179_v41 }
0x1188   : > { %3628 = vmatprep.subr.msk.bf16.mxu0 %vm1520_vm8, %v3148_v2 }
0x118a   : > { %3624 = vmatmul.mubr.msk.bf16.vlgmr.msra.gmra.mrb[20].mxu0 %vm3167_vm0, %v3840_v35 }
0x118b   : > { %3260 = vmatpush1.bf16.msra.mxu0 %v3254_v3  ;;  %3226 = vmatprep.mubr.bf16.mxu0 %v4307_v7 }
0x1192   : > { %3625 = vmatmul.mubr.msk.bf16.gmra.mrb[24].mxu0 %vm3167_vm0, %v3841_v24 }
0x1193   : > { %3291 = vmatprep.mubr.bf16.mxu0 %v4307_v7 }
0x119a   : > { %3629 = vmatmul.mubr.msk.bf16.vlgmr.msra.gmra.mrb[20].mxu0 %vm2111_vm11, %v3842_v9 }
0x119b   : > { %3301 = vmatprep.mubr.bf16.mxu0 %v4307_v7  ;;  %v3329_v7 = vpop.permute.xlu0 %3328 }
0x11a2   : > { %3630 = vmatmul.mubr.msk.bf16.gmra.mrb[24].mxu0 %vm2111_vm11, %v3843_v58 }
0x126d   : > { %v3293_v56 = vpop.f32.mrb[20].mxu0 }
0x126e   : > { %v3336_v5 = vadd.f32 %v3319_v61, %v3293_v56  ;;  %v3295_v47 = vpop.f32.mrb[21].mxu0 }
0x126f   : > { %v3337_v28 = vadd.f32 %v3319_v61, %v3295_v47  ;;  %v3297_v42 = vpop.f32.mrb[22].mxu0 }
0x1270   : > { %3344 = vst [vmem:[%s1343_s14] sm:$0xff] %v3336_v5  ;;  %v3338_v43 = vadd.f32 %v3324_v11, %v3297_v42  ;;  %v3299_v59 = vpop.f32.mrb[23].mxu0 }
0x1271   : > { %3345 = vst [vmem:[%s1343_s14 + $0x8] sm:$0xff] %v3337_v28  ;;  %v3339_v57 = vadd.f32 %v3324_v11, %v3299_v59 }
0x1272   : > { %3346 = vst [vmem:[%s1343_s14 + $0x10] sm:$0xff] %v3338_v43 }
0x1273   : > { %3347 = vst [vmem:[%s1343_s14 + $0x18] sm:$0xff] %v3339_v57 }
0x1275   : > { %v3303_v32 = vpop.f32.mrb[24].mxu0 }
0x1276   : > { %v3340_v29 = vadd.f32 %v3329_v7, %v3303_v32  ;;  %v3305_v18 = vpop.f32.mrb[25].mxu0 }
0x1277   : > { %v3341_v4 = vadd.f32 %v3329_v7, %v3305_v18  ;;  %v3307_v37 = vpop.f32.mrb[26].mxu0 }
0x1278   : > { %3348 = vst [vmem:[%s1343_s14 + $0x20] sm:$0xff] %v3340_v29  ;;  %v3342_v20 = vadd.f32 %v3334_v38, %v3307_v37  ;;  %v3309_v13 = vpop.f32.mrb[27].mxu0 }
0x1279   : > { %3349 = vst [vmem:[%s1343_s14 + $0x28] sm:$0xff] %v3341_v4  ;;  %v3343_v15 = vadd.f32 %v3334_v38, %v3309_v13 }
0x127a   : > { %3350 = vst [vmem:[%s1343_s14 + $0x30] sm:$0xff] %v3342_v20 }
0x127b   : > { %3351 = vst [vmem:[%s1343_s14 + $0x38] sm:$0xff] %v3343_v15 }
0x127c PF: > { %s106_s5 = sadd.s32 1, %s4248_s5  }
0x127d   : > { %p103_p9 = scmp.ge.s32.totalorder %s106_s5, 4  }
0x127f   :  { %105 = sbr.rel (!%p103_p9) target bundleno = 85 (0x55), region = 294 }
0x1286   :  { %3373 = vsyncpa [#allocation8], 1 }
0x1287   :  { %3375 = vsyncpa [#allocation8 + $0x1], 1 }
0x1288   :  { %3376 = vsyncpa [#allocation10], 1 }
0x1289   :  { %3377 = vsyncpa [#allocation13], 1 }
0x128a   :  { %3378 = vsyncpa [#allocation16], 1 }
0x128b   :  { %3379 = vsyncpa [#allocation19], 1 }
0x128c   :  { %3380 = vsyncpa [#allocation22], 1 }
0x128d   :  { %3381 = vsyncpa [#allocation25], 1 }

</bundles_post_ra>
